<compile_context>
chip_gen: v5e
topology: v5e:2x2
jax: 0.10.0
libtpu: 0.0.40
codegen_flags: <defaults>
</compile_context>

<pallas_src>
import functools

import jax
import jax.numpy as jnp
from jax.experimental import pallas as pl
from jax.experimental.pallas import tpu as pltpu


# ---------------------------------------------------------------------------
# Fused Pallas kernel: all GRU layers + h_n.mean(0) + fc in one program
# ---------------------------------------------------------------------------
def _fused_gru_fc_kernel(*refs, num_layers, batch):
    """refs = (x, [wi_l, wh_l, bi_l, bh_l] * num_layers, fc_w, fc_b, out).

    x    : (T*B, D0)   time-major flattened input.
    wi_l : (D_l, 6H)   input->gate weights, gates fused [r|z|n], directions
                       fused along lanes: cols [0:3H]=fwd, [3H:6H]=bwd.
    wh_l : (2H, 6H)    block-diagonal hidden->gate weights:
                       [0:H, 0:3H]=Wh_fwd^T, [H:2H, 3H:6H]=Wh_bwd^T, 0 elsewhere
                       (keeps the two directions independent in one matmul).
    bi_l : (1, 6H)     [b_ih_fwd | b_ih_bwd]
    bh_l : (1, 6H)     [b_hh_fwd | b_hh_bwd]
    fc_w : (H, O)      pre-transposed Linear weight.
    fc_b : (1, O)
    out  : (B, O)
    """
    x_ref = refs[0]
    fcw_ref = refs[1 + 4 * num_layers]
    fcb_ref = refs[2 + 4 * num_layers]
    out_ref = refs[3 + 4 * num_layers]

    B = batch
    TB = x_ref.shape[0]
    T = TB // B
    H = fcw_ref.shape[0]
    H2, H3 = 2 * H, 3 * H

    xin = x_ref[...]                                   # (T*B, D_layer)
    hn_sum = jnp.zeros((B, H), jnp.float32)            # running sum of final hiddens

    for layer in range(num_layers):
        wi_ref, wh_ref, bi_ref, bh_ref = refs[1 + 4 * layer: 5 + 4 * layer]

        # Hoisted gate- and direction-fused input projection (one matmul/layer).
        gx = (jnp.dot(xin, wi_ref[...], preferred_element_type=jnp.float32)
              + bi_ref[...])                           # (T*B, 6H)
        wh = wh_ref[...]                               # (2H, 6H) block-diagonal
        bh = bh_ref[...]                               # (1, 6H)

        # Interleaved fwd/bwd recurrence: h is [h_fwd | h_bwd] lane-packed.
        h = jnp.zeros((B, H2), jnp.float32)
        outs_f, outs_b = [], []
        for t in range(T):                             # statically unrolled
            tr = T - 1 - t                             # bwd walks time reversed
            gx_f = gx[t * B:(t + 1) * B, :H3]          # fwd gates, input time t
            gx_b = gx[tr * B:(tr + 1) * B, H3:]        # bwd gates, input time tr
            # One MXU push covers both directions' hidden projections.
            gh = jnp.dot(h, wh, preferred_element_type=jnp.float32) + bh  # (B,6H)
            h_f0 = h[:, :H]
            h_b0 = h[:, H:]
            # forward direction gates (PyTorch order r, z, n)
            r_f = jax.nn.sigmoid(gx_f[:, :H] + gh[:, :H])
            z_f = jax.nn.sigmoid(gx_f[:, H:H2] + gh[:, H:H2])
            n_f = jnp.tanh(gx_f[:, H2:H3] + r_f * gh[:, H2:H3])
            h_f = (1.0 - z_f) * n_f + z_f * h_f0
            # backward direction gates
            r_b = jax.nn.sigmoid(gx_b[:, :H] + gh[:, H3:H3 + H])
            z_b = jax.nn.sigmoid(gx_b[:, H:H2] + gh[:, H3 + H:H3 + H2])
            n_b = jnp.tanh(gx_b[:, H2:H3] + r_b * gh[:, H3 + H2:])
            h_b = (1.0 - z_b) * n_b + z_b * h_b0
            h = jnp.concatenate([h_f, h_b], axis=-1)   # (B, 2H)
            outs_f.append(h_f)
            outs_b.append(h_b)

        # Final hiddens: fwd after time T-1 (outs_f[-1]); bwd after time 0
        # (outs_b[-1], since step T-1 of the loop processed input time 0).
        hn_sum = hn_sum + outs_f[-1] + outs_b[-1]

        if layer + 1 < num_layers:
            # Assemble the lane-packed (T*B, 2H) output once (no per-step stores).
            out_f = jnp.concatenate(outs_f, axis=0)            # time-major
            out_b = jnp.concatenate(outs_b[::-1], axis=0)      # reorder to output time
            xin = jnp.concatenate([out_f, out_b], axis=-1)     # (T*B, 2H)

    # Fused head: h_n.mean(0) + fc.
    # TODO(synk): O=150 -> one masked partial store for 2 rows; negligible here.
    y = hn_sum * (1.0 / (2.0 * num_layers))
    out_ref[...] = (jnp.dot(y, fcw_ref[...], preferred_element_type=jnp.float32)
                    + fcb_ref[...])


# ---------------------------------------------------------------------------
# Wrapper: exactly one pallas_call per forward
# ---------------------------------------------------------------------------
def my_model_forward(x_tm, prep, *, batch):
    """x_tm: (T*B, input_size) time-major flattened input (see prepare_input)."""
    num_layers = len(prep["layers"])
    out_dim = prep["fc_w_t"].shape[1]
    flat = [x_tm]
    for layer in prep["layers"]:
        flat.extend(layer)
    flat.extend([prep["fc_w_t"], prep["fc_b"]])

    vmem = pl.BlockSpec(memory_space=pltpu.MemorySpace.VMEM)
    kernel = functools.partial(_fused_gru_fc_kernel,
                               num_layers=num_layers, batch=batch)
    return pl.pallas_call(
        kernel,
        out_shape=jax.ShapeDtypeStruct((batch, out_dim), jnp.float32),
        in_specs=[vmem] * len(flat),
        out_specs=vmem,
    )(*flat)


def prepare_input(x):
    """One-time (B, T, D) -> (T*B, D) time-major flatten (data-prep, not per-call)."""
    B, T, D = x.shape
    return jnp.transpose(x, (1, 0, 2)).reshape(T * B, D)


def prepare_params(params):
    """One-time conversion of PyTorch-layout params into fused kernel layout."""
    prep = {"layers": []}
    for (fwd, bwd) in params["gru"]:
        w_ih_f, w_hh_f, b_ih_f, b_hh_f = fwd
        w_ih_b, w_hh_b, b_ih_b, b_hh_b = bwd
        H = w_hh_f.shape[1]
        wi = jnp.concatenate([w_ih_f.T, w_ih_b.T], axis=1)          # (D_l, 6H)
        wh = jnp.zeros((2 * H, 6 * H), jnp.float32)                 # block-diagonal
        wh = wh.at[:H, :3 * H].set(w_hh_f.T)
        wh = wh.at[H:, 3 * H:].set(w_hh_b.T)
        bi = jnp.concatenate([b_ih_f, b_ih_b])[None, :]             # (1, 6H)
        bh = jnp.concatenate([b_hh_f, b_hh_b])[None, :]             # (1, 6H)
        prep["layers"].append((wi, wh, bi, bh))
    prep["fc_w_t"] = params["fc_w"].T                               # (H, O)
    prep["fc_b"] = params["fc_b"][None, :]                          # (1, O)
    return prep


# ---------------------------------------------------------------------------
# Pure-JAX reference (PyTorch GRU semantics) for correctness checking
# ---------------------------------------------------------------------------
def _gru_dir_ref(x_tm, w_ih, w_hh, b_ih, b_hh):
    H = w_hh.shape[1]

    def cell(h, x_t):
        gx = x_t @ w_ih.T + b_ih
        gh = h @ w_hh.T + b_hh
        r = jax.nn.sigmoid(gx[:, :H] + gh[:, :H])
        z = jax.nn.sigmoid(gx[:, H:2 * H] + gh[:, H:2 * H])
        n = jnp.tanh(gx[:, 2 * H:] + r * gh[:, 2 * H:])
        h_new = (1.0 - z) * n + z * h
        return h_new, h_new

    h0 = jnp.zeros((x_tm.shape[1], H), jnp.float32)
    _, outs = jax.lax.scan(cell, h0, x_tm)
    return outs


def my_model_forward_ref(x, params):
    x_tm = jnp.transpose(x, (1, 0, 2))
    h_finals = []
    layer_in = x_tm
    for (fwd, bwd) in params["gru"]:
        out_f = _gru_dir_ref(layer_in, *fwd)
        out_b_rev = _gru_dir_ref(layer_in[::-1], *bwd)
        h_finals.append(out_f[-1])
        h_finals.append(out_b_rev[-1])
        layer_in = jnp.concatenate([out_f, out_b_rev[::-1]], axis=-1)
    y = jnp.stack(h_finals, axis=0).mean(axis=0)
    return y @ params["fc_w"].T + params["fc_b"]


# ---------------------------------------------------------------------------
# Deterministic parameter init (same shapes as torch.nn.GRU / nn.Linear)
# ---------------------------------------------------------------------------
def init_params(key, input_size, hidden_size, num_layers, num_classes=150):
    k_gru = 1.0 / jnp.sqrt(hidden_size)
    params = {"gru": []}
    for layer in range(num_layers):
        d_in = input_size if layer == 0 else 2 * hidden_size
        dir_params = []
        for _direction in range(2):  # bidirectional
            key, k1, k2, k3, k4 = jax.random.split(key, 5)
            w_ih = jax.random.uniform(k1, (3 * hidden_size, d_in),
                                      jnp.float32, -k_gru, k_gru)
            w_hh = jax.random.uniform(k2, (3 * hidden_size, hidden_size),
                                      jnp.float32, -k_gru, k_gru)
            b_ih = jax.random.uniform(k3, (3 * hidden_size,),
                                      jnp.float32, -k_gru, k_gru)
            b_hh = jax.random.uniform(k4, (3 * hidden_size,),
                                      jnp.float32, -k_gru, k_gru)
            dir_params.append((w_ih, w_hh, b_ih, b_hh))
        params["gru"].append(tuple(dir_params))
    key, k1, k2 = jax.random.split(key, 3)
    k_fc = 1.0 / jnp.sqrt(hidden_size)
    params["fc_w"] = jax.random.uniform(k1, (num_classes, hidden_size),
                                        jnp.float32, -k_fc, k_fc)
    params["fc_b"] = jax.random.uniform(k2, (num_classes,),
                                        jnp.float32, -k_fc, k_fc)
    return params


# ---------------------------------------------------------------------------
if __name__ == "__main__":
    INPUT_SIZE = 16
    HIDDEN_SIZE = 32
    NUM_LAYERS = 2
    BATCH = 2
    SEQ = 8

    root = jax.random.PRNGKey(0)
    k_params, k_x = jax.random.split(root)
    params = init_params(k_params, INPUT_SIZE, HIDDEN_SIZE, NUM_LAYERS)
    prep = prepare_params(params)                     # one-time layout prep
    x = jax.random.normal(k_x, (BATCH, SEQ, INPUT_SIZE), jnp.float32)
    x_tm = prepare_input(x)                           # one-time data prep

    fwd = jax.jit(functools.partial(my_model_forward, batch=BATCH))
    y = jax.block_until_ready(fwd(x_tm, prep))
    y_ref = jax.block_until_ready(my_model_forward_ref(x, params))

    assert y.shape == (BATCH, 150), y.shape
    assert jnp.allclose(y, y_ref, atol=1e-4, rtol=1e-4), \
        float(jnp.max(jnp.abs(y - y_ref)))
    print("KERNEL_OK")
</pallas_src>

<mosaic_0001>
module attributes {stable_mosaic.version = 11 : i64} {
  func.func @_fused_gru_fc_kernel(%arg0: memref<16x16xf32, #tpu.memory_space<vmem>>, %arg1: memref<16x192xf32, #tpu.memory_space<vmem>>, %arg2: memref<64x192xf32, #tpu.memory_space<vmem>>, %arg3: memref<1x192xf32, #tpu.memory_space<vmem>>, %arg4: memref<1x192xf32, #tpu.memory_space<vmem>>, %arg5: memref<64x192xf32, #tpu.memory_space<vmem>>, %arg6: memref<64x192xf32, #tpu.memory_space<vmem>>, %arg7: memref<1x192xf32, #tpu.memory_space<vmem>>, %arg8: memref<1x192xf32, #tpu.memory_space<vmem>>, %arg9: memref<32x150xf32, #tpu.memory_space<vmem>>, %arg10: memref<1x150xf32, #tpu.memory_space<vmem>>, %arg11: memref<2x150xf32, #tpu.memory_space<vmem>>) attributes {dimension_semantics = [], scalar_prefetch = 0 : i64, scratch_operands = 0 : i64, tpu.core_type = #tpu.core_type<tc>} {
    %c0 = arith.constant 0 : index
    %c0_0 = arith.constant 0 : index
    %0 = vector.load %arg0[%c0, %c0_0] : memref<16x16xf32, #tpu.memory_space<vmem>>, vector<16x16xf32>
    %cst = arith.constant 0.000000e+00 : f32
    %1 = vector.broadcast %cst : f32 to vector<2x32xf32>
    %c0_1 = arith.constant 0 : index
    %c0_2 = arith.constant 0 : index
    %2 = vector.load %arg1[%c0_1, %c0_2] : memref<16x192xf32, #tpu.memory_space<vmem>>, vector<16x192xf32>
    %cst_3 = arith.constant dense<0.000000e+00> : vector<16x192xf32>
    %3 = tpu.matmul %0, %2, %cst_3 {dimension_numbers = #tpu.dot_dimension_numbers<[1], [0], [0], [1], [0, 0, 1, 1], [], []>} : vector<16x16xf32>, vector<16x192xf32>, vector<16x192xf32> -> vector<16x192xf32>
    %c0_4 = arith.constant 0 : index
    %c0_5 = arith.constant 0 : index
    %4 = vector.load %arg3[%c0_4, %c0_5] : memref<1x192xf32, #tpu.memory_space<vmem>>, vector<1x192xf32>
    %5 = vector.broadcast %4 : vector<1x192xf32> to vector<16x192xf32>
    %6 = arith.addf %3, %5 : vector<16x192xf32>
    %c0_6 = arith.constant 0 : index
    %c0_7 = arith.constant 0 : index
    %7 = vector.load %arg2[%c0_6, %c0_7] : memref<64x192xf32, #tpu.memory_space<vmem>>, vector<64x192xf32>
    %c0_8 = arith.constant 0 : index
    %c0_9 = arith.constant 0 : index
    %8 = vector.load %arg4[%c0_8, %c0_9] : memref<1x192xf32, #tpu.memory_space<vmem>>, vector<1x192xf32>
    %cst_10 = arith.constant 0.000000e+00 : f32
    %9 = vector.broadcast %cst_10 : f32 to vector<2x64xf32>
    %10 = vector.extract_strided_slice %6 {offsets = [0, 0], sizes = [2, 96], strides = [1, 1]} : vector<16x192xf32> to vector<2x96xf32>
    %11 = vector.extract_strided_slice %6 {offsets = [14, 96], sizes = [2, 96], strides = [1, 1]} : vector<16x192xf32> to vector<2x96xf32>
    %cst_11 = arith.constant dense<0.000000e+00> : vector<2x192xf32>
    %12 = tpu.matmul %9, %7, %cst_11 {dimension_numbers = #tpu.dot_dimension_numbers<[1], [0], [0], [1], [0, 0, 1, 1], [], []>} : vector<2x64xf32>, vector<64x192xf32>, vector<2x192xf32> -> vector<2x192xf32>
    %13 = vector.broadcast %8 : vector<1x192xf32> to vector<2x192xf32>
    %14 = arith.addf %12, %13 : vector<2x192xf32>
    %15 = vector.extract_strided_slice %9 {offsets = [0, 0], sizes = [2, 32], strides = [1, 1]} : vector<2x64xf32> to vector<2x32xf32>
    %16 = vector.extract_strided_slice %9 {offsets = [0, 32], sizes = [2, 32], strides = [1, 1]} : vector<2x64xf32> to vector<2x32xf32>
    %17 = vector.extract_strided_slice %10 {offsets = [0, 0], sizes = [2, 32], strides = [1, 1]} : vector<2x96xf32> to vector<2x32xf32>
    %18 = vector.extract_strided_slice %14 {offsets = [0, 0], sizes = [2, 32], strides = [1, 1]} : vector<2x192xf32> to vector<2x32xf32>
    %19 = arith.addf %17, %18 : vector<2x32xf32>
    %20 = arith.negf %19 : vector<2x32xf32>
    %21 = math.exp %20 : vector<2x32xf32>
    %cst_12 = arith.constant 1.000000e+00 : f32
    %22 = vector.broadcast %cst_12 : f32 to vector<2x32xf32>
    %23 = arith.addf %22, %21 : vector<2x32xf32>
    %24 = arith.divf %22, %23 : vector<2x32xf32>
    %25 = vector.extract_strided_slice %10 {offsets = [0, 32], sizes = [2, 32], strides = [1, 1]} : vector<2x96xf32> to vector<2x32xf32>
    %26 = vector.extract_strided_slice %14 {offsets = [0, 32], sizes = [2, 32], strides = [1, 1]} : vector<2x192xf32> to vector<2x32xf32>
    %27 = arith.addf %25, %26 : vector<2x32xf32>
    %28 = arith.negf %27 : vector<2x32xf32>
    %29 = math.exp %28 : vector<2x32xf32>
    %cst_13 = arith.constant 1.000000e+00 : f32
    %30 = vector.broadcast %cst_13 : f32 to vector<2x32xf32>
    %31 = arith.addf %30, %29 : vector<2x32xf32>
    %32 = arith.divf %30, %31 : vector<2x32xf32>
    %33 = vector.extract_strided_slice %10 {offsets = [0, 64], sizes = [2, 32], strides = [1, 1]} : vector<2x96xf32> to vector<2x32xf32>
    %34 = vector.extract_strided_slice %14 {offsets = [0, 64], sizes = [2, 32], strides = [1, 1]} : vector<2x192xf32> to vector<2x32xf32>
    %35 = arith.mulf %24, %34 : vector<2x32xf32>
    %36 = arith.addf %33, %35 : vector<2x32xf32>
    %37 = math.tanh %36 : vector<2x32xf32>
    %cst_14 = arith.constant 1.000000e+00 : f32
    %38 = vector.broadcast %cst_14 : f32 to vector<2x32xf32>
    %39 = arith.subf %38, %32 : vector<2x32xf32>
    %40 = arith.mulf %39, %37 : vector<2x32xf32>
    %41 = arith.mulf %32, %15 : vector<2x32xf32>
    %42 = arith.addf %40, %41 : vector<2x32xf32>
    %43 = vector.extract_strided_slice %11 {offsets = [0, 0], sizes = [2, 32], strides = [1, 1]} : vector<2x96xf32> to vector<2x32xf32>
    %44 = vector.extract_strided_slice %14 {offsets = [0, 96], sizes = [2, 32], strides = [1, 1]} : vector<2x192xf32> to vector<2x32xf32>
    %45 = arith.addf %43, %44 : vector<2x32xf32>
    %46 = arith.negf %45 : vector<2x32xf32>
    %47 = math.exp %46 : vector<2x32xf32>
    %cst_15 = arith.constant 1.000000e+00 : f32
    %48 = vector.broadcast %cst_15 : f32 to vector<2x32xf32>
    %49 = arith.addf %48, %47 : vector<2x32xf32>
    %50 = arith.divf %48, %49 : vector<2x32xf32>
    %51 = vector.extract_strided_slice %11 {offsets = [0, 32], sizes = [2, 32], strides = [1, 1]} : vector<2x96xf32> to vector<2x32xf32>
    %52 = vector.extract_strided_slice %14 {offsets = [0, 128], sizes = [2, 32], strides = [1, 1]} : vector<2x192xf32> to vector<2x32xf32>
    %53 = arith.addf %51, %52 : vector<2x32xf32>
    %54 = arith.negf %53 : vector<2x32xf32>
    %55 = math.exp %54 : vector<2x32xf32>
    %cst_16 = arith.constant 1.000000e+00 : f32
    %56 = vector.broadcast %cst_16 : f32 to vector<2x32xf32>
    %57 = arith.addf %56, %55 : vector<2x32xf32>
    %58 = arith.divf %56, %57 : vector<2x32xf32>
    %59 = vector.extract_strided_slice %11 {offsets = [0, 64], sizes = [2, 32], strides = [1, 1]} : vector<2x96xf32> to vector<2x32xf32>
    %60 = vector.extract_strided_slice %14 {offsets = [0, 160], sizes = [2, 32], strides = [1, 1]} : vector<2x192xf32> to vector<2x32xf32>
    %61 = arith.mulf %50, %60 : vector<2x32xf32>
    %62 = arith.addf %59, %61 : vector<2x32xf32>
    %63 = math.tanh %62 : vector<2x32xf32>
    %cst_17 = arith.constant 1.000000e+00 : f32
    %64 = vector.broadcast %cst_17 : f32 to vector<2x32xf32>
    %65 = arith.subf %64, %58 : vector<2x32xf32>
    %66 = arith.mulf %65, %63 : vector<2x32xf32>
    %67 = arith.mulf %58, %16 : vector<2x32xf32>
    %68 = arith.addf %66, %67 : vector<2x32xf32>
    %69 = tpu.concatenate %42, %68 in 1 : vector<2x32xf32>, vector<2x32xf32> -> vector<2x64xf32>
    %70 = vector.extract_strided_slice %6 {offsets = [2, 0], sizes = [2, 96], strides = [1, 1]} : vector<16x192xf32> to vector<2x96xf32>
    %71 = vector.extract_strided_slice %6 {offsets = [12, 96], sizes = [2, 96], strides = [1, 1]} : vector<16x192xf32> to vector<2x96xf32>
    %cst_18 = arith.constant dense<0.000000e+00> : vector<2x192xf32>
    %72 = tpu.matmul %69, %7, %cst_18 {dimension_numbers = #tpu.dot_dimension_numbers<[1], [0], [0], [1], [0, 0, 1, 1], [], []>} : vector<2x64xf32>, vector<64x192xf32>, vector<2x192xf32> -> vector<2x192xf32>
    %73 = vector.broadcast %8 : vector<1x192xf32> to vector<2x192xf32>
    %74 = arith.addf %72, %73 : vector<2x192xf32>
    %75 = vector.extract_strided_slice %69 {offsets = [0, 0], sizes = [2, 32], strides = [1, 1]} : vector<2x64xf32> to vector<2x32xf32>
    %76 = vector.extract_strided_slice %69 {offsets = [0, 32], sizes = [2, 32], strides = [1, 1]} : vector<2x64xf32> to vector<2x32xf32>
    %77 = vector.extract_strided_slice %70 {offsets = [0, 0], sizes = [2, 32], strides = [1, 1]} : vector<2x96xf32> to vector<2x32xf32>
    %78 = vector.extract_strided_slice %74 {offsets = [0, 0], sizes = [2, 32], strides = [1, 1]} : vector<2x192xf32> to vector<2x32xf32>
    %79 = arith.addf %77, %78 : vector<2x32xf32>
    %80 = arith.negf %79 : vector<2x32xf32>
    %81 = math.exp %80 : vector<2x32xf32>
    %cst_19 = arith.constant 1.000000e+00 : f32
    %82 = vector.broadcast %cst_19 : f32 to vector<2x32xf32>
    %83 = arith.addf %82, %81 : vector<2x32xf32>
    %84 = arith.divf %82, %83 : vector<2x32xf32>
    %85 = vector.extract_strided_slice %70 {offsets = [0, 32], sizes = [2, 32], strides = [1, 1]} : vector<2x96xf32> to vector<2x32xf32>
    %86 = vector.extract_strided_slice %74 {offsets = [0, 32], sizes = [2, 32], strides = [1, 1]} : vector<2x192xf32> to vector<2x32xf32>
    %87 = arith.addf %85, %86 : vector<2x32xf32>
    %88 = arith.negf %87 : vector<2x32xf32>
    %89 = math.exp %88 : vector<2x32xf32>
    %cst_20 = arith.constant 1.000000e+00 : f32
    %90 = vector.broadcast %cst_20 : f32 to vector<2x32xf32>
    %91 = arith.addf %90, %89 : vector<2x32xf32>
    %92 = arith.divf %90, %91 : vector<2x32xf32>
    %93 = vector.extract_strided_slice %70 {offsets = [0, 64], sizes = [2, 32], strides = [1, 1]} : vector<2x96xf32> to vector<2x32xf32>
    %94 = vector.extract_strided_slice %74 {offsets = [0, 64], sizes = [2, 32], strides = [1, 1]} : vector<2x192xf32> to vector<2x32xf32>
    %95 = arith.mulf %84, %94 : vector<2x32xf32>
    %96 = arith.addf %93, %95 : vector<2x32xf32>
    %97 = math.tanh %96 : vector<2x32xf32>
    %cst_21 = arith.constant 1.000000e+00 : f32
    %98 = vector.broadcast %cst_21 : f32 to vector<2x32xf32>
    %99 = arith.subf %98, %92 : vector<2x32xf32>
    %100 = arith.mulf %99, %97 : vector<2x32xf32>
    %101 = arith.mulf %92, %75 : vector<2x32xf32>
    %102 = arith.addf %100, %101 : vector<2x32xf32>
    %103 = vector.extract_strided_slice %71 {offsets = [0, 0], sizes = [2, 32], strides = [1, 1]} : vector<2x96xf32> to vector<2x32xf32>
    %104 = vector.extract_strided_slice %74 {offsets = [0, 96], sizes = [2, 32], strides = [1, 1]} : vector<2x192xf32> to vector<2x32xf32>
    %105 = arith.addf %103, %104 : vector<2x32xf32>
    %106 = arith.negf %105 : vector<2x32xf32>
    %107 = math.exp %106 : vector<2x32xf32>
    %cst_22 = arith.constant 1.000000e+00 : f32
    %108 = vector.broadcast %cst_22 : f32 to vector<2x32xf32>
    %109 = arith.addf %108, %107 : vector<2x32xf32>
    %110 = arith.divf %108, %109 : vector<2x32xf32>
    %111 = vector.extract_strided_slice %71 {offsets = [0, 32], sizes = [2, 32], strides = [1, 1]} : vector<2x96xf32> to vector<2x32xf32>
    %112 = vector.extract_strided_slice %74 {offsets = [0, 128], sizes = [2, 32], strides = [1, 1]} : vector<2x192xf32> to vector<2x32xf32>
    %113 = arith.addf %111, %112 : vector<2x32xf32>
    %114 = arith.negf %113 : vector<2x32xf32>
    %115 = math.exp %114 : vector<2x32xf32>
    %cst_23 = arith.constant 1.000000e+00 : f32
    %116 = vector.broadcast %cst_23 : f32 to vector<2x32xf32>
    %117 = arith.addf %116, %115 : vector<2x32xf32>
    %118 = arith.divf %116, %117 : vector<2x32xf32>
    %119 = vector.extract_strided_slice %71 {offsets = [0, 64], sizes = [2, 32], strides = [1, 1]} : vector<2x96xf32> to vector<2x32xf32>
    %120 = vector.extract_strided_slice %74 {offsets = [0, 160], sizes = [2, 32], strides = [1, 1]} : vector<2x192xf32> to vector<2x32xf32>
    %121 = arith.mulf %110, %120 : vector<2x32xf32>
    %122 = arith.addf %119, %121 : vector<2x32xf32>
    %123 = math.tanh %122 : vector<2x32xf32>
    %cst_24 = arith.constant 1.000000e+00 : f32
    %124 = vector.broadcast %cst_24 : f32 to vector<2x32xf32>
    %125 = arith.subf %124, %118 : vector<2x32xf32>
    %126 = arith.mulf %125, %123 : vector<2x32xf32>
    %127 = arith.mulf %118, %76 : vector<2x32xf32>
    %128 = arith.addf %126, %127 : vector<2x32xf32>
    %129 = tpu.concatenate %102, %128 in 1 : vector<2x32xf32>, vector<2x32xf32> -> vector<2x64xf32>
    %130 = vector.extract_strided_slice %6 {offsets = [4, 0], sizes = [2, 96], strides = [1, 1]} : vector<16x192xf32> to vector<2x96xf32>
    %131 = vector.extract_strided_slice %6 {offsets = [10, 96], sizes = [2, 96], strides = [1, 1]} : vector<16x192xf32> to vector<2x96xf32>
    %cst_25 = arith.constant dense<0.000000e+00> : vector<2x192xf32>
    %132 = tpu.matmul %129, %7, %cst_25 {dimension_numbers = #tpu.dot_dimension_numbers<[1], [0], [0], [1], [0, 0, 1, 1], [], []>} : vector<2x64xf32>, vector<64x192xf32>, vector<2x192xf32> -> vector<2x192xf32>
    %133 = vector.broadcast %8 : vector<1x192xf32> to vector<2x192xf32>
    %134 = arith.addf %132, %133 : vector<2x192xf32>
    %135 = vector.extract_strided_slice %129 {offsets = [0, 0], sizes = [2, 32], strides = [1, 1]} : vector<2x64xf32> to vector<2x32xf32>
    %136 = vector.extract_strided_slice %129 {offsets = [0, 32], sizes = [2, 32], strides = [1, 1]} : vector<2x64xf32> to vector<2x32xf32>
    %137 = vector.extract_strided_slice %130 {offsets = [0, 0], sizes = [2, 32], strides = [1, 1]} : vector<2x96xf32> to vector<2x32xf32>
    %138 = vector.extract_strided_slice %134 {offsets = [0, 0], sizes = [2, 32], strides = [1, 1]} : vector<2x192xf32> to vector<2x32xf32>
    %139 = arith.addf %137, %138 : vector<2x32xf32>
    %140 = arith.negf %139 : vector<2x32xf32>
    %141 = math.exp %140 : vector<2x32xf32>
    %cst_26 = arith.constant 1.000000e+00 : f32
    %142 = vector.broadcast %cst_26 : f32 to vector<2x32xf32>
    %143 = arith.addf %142, %141 : vector<2x32xf32>
    %144 = arith.divf %142, %143 : vector<2x32xf32>
    %145 = vector.extract_strided_slice %130 {offsets = [0, 32], sizes = [2, 32], strides = [1, 1]} : vector<2x96xf32> to vector<2x32xf32>
    %146 = vector.extract_strided_slice %134 {offsets = [0, 32], sizes = [2, 32], strides = [1, 1]} : vector<2x192xf32> to vector<2x32xf32>
    %147 = arith.addf %145, %146 : vector<2x32xf32>
    %148 = arith.negf %147 : vector<2x32xf32>
    %149 = math.exp %148 : vector<2x32xf32>
    %cst_27 = arith.constant 1.000000e+00 : f32
    %150 = vector.broadcast %cst_27 : f32 to vector<2x32xf32>
    %151 = arith.addf %150, %149 : vector<2x32xf32>
    %152 = arith.divf %150, %151 : vector<2x32xf32>
    %153 = vector.extract_strided_slice %130 {offsets = [0, 64], sizes = [2, 32], strides = [1, 1]} : vector<2x96xf32> to vector<2x32xf32>
    %154 = vector.extract_strided_slice %134 {offsets = [0, 64], sizes = [2, 32], strides = [1, 1]} : vector<2x192xf32> to vector<2x32xf32>
    %155 = arith.mulf %144, %154 : vector<2x32xf32>
    %156 = arith.addf %153, %155 : vector<2x32xf32>
    %157 = math.tanh %156 : vector<2x32xf32>
    %cst_28 = arith.constant 1.000000e+00 : f32
    %158 = vector.broadcast %cst_28 : f32 to vector<2x32xf32>
    %159 = arith.subf %158, %152 : vector<2x32xf32>
    %160 = arith.mulf %159, %157 : vector<2x32xf32>
    %161 = arith.mulf %152, %135 : vector<2x32xf32>
    %162 = arith.addf %160, %161 : vector<2x32xf32>
    %163 = vector.extract_strided_slice %131 {offsets = [0, 0], sizes = [2, 32], strides = [1, 1]} : vector<2x96xf32> to vector<2x32xf32>
    %164 = vector.extract_strided_slice %134 {offsets = [0, 96], sizes = [2, 32], strides = [1, 1]} : vector<2x192xf32> to vector<2x32xf32>
    %165 = arith.addf %163, %164 : vector<2x32xf32>
    %166 = arith.negf %165 : vector<2x32xf32>
    %167 = math.exp %166 : vector<2x32xf32>
    %cst_29 = arith.constant 1.000000e+00 : f32
    %168 = vector.broadcast %cst_29 : f32 to vector<2x32xf32>
    %169 = arith.addf %168, %167 : vector<2x32xf32>
    %170 = arith.divf %168, %169 : vector<2x32xf32>
    %171 = vector.extract_strided_slice %131 {offsets = [0, 32], sizes = [2, 32], strides = [1, 1]} : vector<2x96xf32> to vector<2x32xf32>
    %172 = vector.extract_strided_slice %134 {offsets = [0, 128], sizes = [2, 32], strides = [1, 1]} : vector<2x192xf32> to vector<2x32xf32>
    %173 = arith.addf %171, %172 : vector<2x32xf32>
    %174 = arith.negf %173 : vector<2x32xf32>
    %175 = math.exp %174 : vector<2x32xf32>
    %cst_30 = arith.constant 1.000000e+00 : f32
    %176 = vector.broadcast %cst_30 : f32 to vector<2x32xf32>
    %177 = arith.addf %176, %175 : vector<2x32xf32>
    %178 = arith.divf %176, %177 : vector<2x32xf32>
    %179 = vector.extract_strided_slice %131 {offsets = [0, 64], sizes = [2, 32], strides = [1, 1]} : vector<2x96xf32> to vector<2x32xf32>
    %180 = vector.extract_strided_slice %134 {offsets = [0, 160], sizes = [2, 32], strides = [1, 1]} : vector<2x192xf32> to vector<2x32xf32>
    %181 = arith.mulf %170, %180 : vector<2x32xf32>
    %182 = arith.addf %179, %181 : vector<2x32xf32>
    %183 = math.tanh %182 : vector<2x32xf32>
    %cst_31 = arith.constant 1.000000e+00 : f32
    %184 = vector.broadcast %cst_31 : f32 to vector<2x32xf32>
    %185 = arith.subf %184, %178 : vector<2x32xf32>
    %186 = arith.mulf %185, %183 : vector<2x32xf32>
    %187 = arith.mulf %178, %136 : vector<2x32xf32>
    %188 = arith.addf %186, %187 : vector<2x32xf32>
    %189 = tpu.concatenate %162, %188 in 1 : vector<2x32xf32>, vector<2x32xf32> -> vector<2x64xf32>
    %190 = vector.extract_strided_slice %6 {offsets = [6, 0], sizes = [2, 96], strides = [1, 1]} : vector<16x192xf32> to vector<2x96xf32>
    %191 = vector.extract_strided_slice %6 {offsets = [8, 96], sizes = [2, 96], strides = [1, 1]} : vector<16x192xf32> to vector<2x96xf32>
    %cst_32 = arith.constant dense<0.000000e+00> : vector<2x192xf32>
    %192 = tpu.matmul %189, %7, %cst_32 {dimension_numbers = #tpu.dot_dimension_numbers<[1], [0], [0], [1], [0, 0, 1, 1], [], []>} : vector<2x64xf32>, vector<64x192xf32>, vector<2x192xf32> -> vector<2x192xf32>
    %193 = vector.broadcast %8 : vector<1x192xf32> to vector<2x192xf32>
    %194 = arith.addf %192, %193 : vector<2x192xf32>
    %195 = vector.extract_strided_slice %189 {offsets = [0, 0], sizes = [2, 32], strides = [1, 1]} : vector<2x64xf32> to vector<2x32xf32>
    %196 = vector.extract_strided_slice %189 {offsets = [0, 32], sizes = [2, 32], strides = [1, 1]} : vector<2x64xf32> to vector<2x32xf32>
    %197 = vector.extract_strided_slice %190 {offsets = [0, 0], sizes = [2, 32], strides = [1, 1]} : vector<2x96xf32> to vector<2x32xf32>
    %198 = vector.extract_strided_slice %194 {offsets = [0, 0], sizes = [2, 32], strides = [1, 1]} : vector<2x192xf32> to vector<2x32xf32>
    %199 = arith.addf %197, %198 : vector<2x32xf32>
    %200 = arith.negf %199 : vector<2x32xf32>
    %201 = math.exp %200 : vector<2x32xf32>
    %cst_33 = arith.constant 1.000000e+00 : f32
    %202 = vector.broadcast %cst_33 : f32 to vector<2x32xf32>
    %203 = arith.addf %202, %201 : vector<2x32xf32>
    %204 = arith.divf %202, %203 : vector<2x32xf32>
    %205 = vector.extract_strided_slice %190 {offsets = [0, 32], sizes = [2, 32], strides = [1, 1]} : vector<2x96xf32> to vector<2x32xf32>
    %206 = vector.extract_strided_slice %194 {offsets = [0, 32], sizes = [2, 32], strides = [1, 1]} : vector<2x192xf32> to vector<2x32xf32>
    %207 = arith.addf %205, %206 : vector<2x32xf32>
    %208 = arith.negf %207 : vector<2x32xf32>
    %209 = math.exp %208 : vector<2x32xf32>
    %cst_34 = arith.constant 1.000000e+00 : f32
    %210 = vector.broadcast %cst_34 : f32 to vector<2x32xf32>
    %211 = arith.addf %210, %209 : vector<2x32xf32>
    %212 = arith.divf %210, %211 : vector<2x32xf32>
    %213 = vector.extract_strided_slice %190 {offsets = [0, 64], sizes = [2, 32], strides = [1, 1]} : vector<2x96xf32> to vector<2x32xf32>
    %214 = vector.extract_strided_slice %194 {offsets = [0, 64], sizes = [2, 32], strides = [1, 1]} : vector<2x192xf32> to vector<2x32xf32>
    %215 = arith.mulf %204, %214 : vector<2x32xf32>
    %216 = arith.addf %213, %215 : vector<2x32xf32>
    %217 = math.tanh %216 : vector<2x32xf32>
    %cst_35 = arith.constant 1.000000e+00 : f32
    %218 = vector.broadcast %cst_35 : f32 to vector<2x32xf32>
    %219 = arith.subf %218, %212 : vector<2x32xf32>
    %220 = arith.mulf %219, %217 : vector<2x32xf32>
    %221 = arith.mulf %212, %195 : vector<2x32xf32>
    %222 = arith.addf %220, %221 : vector<2x32xf32>
    %223 = vector.extract_strided_slice %191 {offsets = [0, 0], sizes = [2, 32], strides = [1, 1]} : vector<2x96xf32> to vector<2x32xf32>
    %224 = vector.extract_strided_slice %194 {offsets = [0, 96], sizes = [2, 32], strides = [1, 1]} : vector<2x192xf32> to vector<2x32xf32>
    %225 = arith.addf %223, %224 : vector<2x32xf32>
    %226 = arith.negf %225 : vector<2x32xf32>
    %227 = math.exp %226 : vector<2x32xf32>
    %cst_36 = arith.constant 1.000000e+00 : f32
    %228 = vector.broadcast %cst_36 : f32 to vector<2x32xf32>
    %229 = arith.addf %228, %227 : vector<2x32xf32>
    %230 = arith.divf %228, %229 : vector<2x32xf32>
    %231 = vector.extract_strided_slice %191 {offsets = [0, 32], sizes = [2, 32], strides = [1, 1]} : vector<2x96xf32> to vector<2x32xf32>
    %232 = vector.extract_strided_slice %194 {offsets = [0, 128], sizes = [2, 32], strides = [1, 1]} : vector<2x192xf32> to vector<2x32xf32>
    %233 = arith.addf %231, %232 : vector<2x32xf32>
    %234 = arith.negf %233 : vector<2x32xf32>
    %235 = math.exp %234 : vector<2x32xf32>
    %cst_37 = arith.constant 1.000000e+00 : f32
    %236 = vector.broadcast %cst_37 : f32 to vector<2x32xf32>
    %237 = arith.addf %236, %235 : vector<2x32xf32>
    %238 = arith.divf %236, %237 : vector<2x32xf32>
    %239 = vector.extract_strided_slice %191 {offsets = [0, 64], sizes = [2, 32], strides = [1, 1]} : vector<2x96xf32> to vector<2x32xf32>
    %240 = vector.extract_strided_slice %194 {offsets = [0, 160], sizes = [2, 32], strides = [1, 1]} : vector<2x192xf32> to vector<2x32xf32>
    %241 = arith.mulf %230, %240 : vector<2x32xf32>
    %242 = arith.addf %239, %241 : vector<2x32xf32>
    %243 = math.tanh %242 : vector<2x32xf32>
    %cst_38 = arith.constant 1.000000e+00 : f32
    %244 = vector.broadcast %cst_38 : f32 to vector<2x32xf32>
    %245 = arith.subf %244, %238 : vector<2x32xf32>
    %246 = arith.mulf %245, %243 : vector<2x32xf32>
    %247 = arith.mulf %238, %196 : vector<2x32xf32>
    %248 = arith.addf %246, %247 : vector<2x32xf32>
    %249 = tpu.concatenate %222, %248 in 1 : vector<2x32xf32>, vector<2x32xf32> -> vector<2x64xf32>
    %250 = vector.extract_strided_slice %6 {offsets = [8, 0], sizes = [2, 96], strides = [1, 1]} : vector<16x192xf32> to vector<2x96xf32>
    %251 = vector.extract_strided_slice %6 {offsets = [6, 96], sizes = [2, 96], strides = [1, 1]} : vector<16x192xf32> to vector<2x96xf32>
    %cst_39 = arith.constant dense<0.000000e+00> : vector<2x192xf32>
    %252 = tpu.matmul %249, %7, %cst_39 {dimension_numbers = #tpu.dot_dimension_numbers<[1], [0], [0], [1], [0, 0, 1, 1], [], []>} : vector<2x64xf32>, vector<64x192xf32>, vector<2x192xf32> -> vector<2x192xf32>
    %253 = vector.broadcast %8 : vector<1x192xf32> to vector<2x192xf32>
    %254 = arith.addf %252, %253 : vector<2x192xf32>
    %255 = vector.extract_strided_slice %249 {offsets = [0, 0], sizes = [2, 32], strides = [1, 1]} : vector<2x64xf32> to vector<2x32xf32>
    %256 = vector.extract_strided_slice %249 {offsets = [0, 32], sizes = [2, 32], strides = [1, 1]} : vector<2x64xf32> to vector<2x32xf32>
    %257 = vector.extract_strided_slice %250 {offsets = [0, 0], sizes = [2, 32], strides = [1, 1]} : vector<2x96xf32> to vector<2x32xf32>
    %258 = vector.extract_strided_slice %254 {offsets = [0, 0], sizes = [2, 32], strides = [1, 1]} : vector<2x192xf32> to vector<2x32xf32>
    %259 = arith.addf %257, %258 : vector<2x32xf32>
    %260 = arith.negf %259 : vector<2x32xf32>
    %261 = math.exp %260 : vector<2x32xf32>
    %cst_40 = arith.constant 1.000000e+00 : f32
    %262 = vector.broadcast %cst_40 : f32 to vector<2x32xf32>
    %263 = arith.addf %262, %261 : vector<2x32xf32>
    %264 = arith.divf %262, %263 : vector<2x32xf32>
    %265 = vector.extract_strided_slice %250 {offsets = [0, 32], sizes = [2, 32], strides = [1, 1]} : vector<2x96xf32> to vector<2x32xf32>
    %266 = vector.extract_strided_slice %254 {offsets = [0, 32], sizes = [2, 32], strides = [1, 1]} : vector<2x192xf32> to vector<2x32xf32>
    %267 = arith.addf %265, %266 : vector<2x32xf32>
    %268 = arith.negf %267 : vector<2x32xf32>
    %269 = math.exp %268 : vector<2x32xf32>
    %cst_41 = arith.constant 1.000000e+00 : f32
    %270 = vector.broadcast %cst_41 : f32 to vector<2x32xf32>
    %271 = arith.addf %270, %269 : vector<2x32xf32>
    %272 = arith.divf %270, %271 : vector<2x32xf32>
    %273 = vector.extract_strided_slice %250 {offsets = [0, 64], sizes = [2, 32], strides = [1, 1]} : vector<2x96xf32> to vector<2x32xf32>
    %274 = vector.extract_strided_slice %254 {offsets = [0, 64], sizes = [2, 32], strides = [1, 1]} : vector<2x192xf32> to vector<2x32xf32>
    %275 = arith.mulf %264, %274 : vector<2x32xf32>
    %276 = arith.addf %273, %275 : vector<2x32xf32>
    %277 = math.tanh %276 : vector<2x32xf32>
    %cst_42 = arith.constant 1.000000e+00 : f32
    %278 = vector.broadcast %cst_42 : f32 to vector<2x32xf32>
    %279 = arith.subf %278, %272 : vector<2x32xf32>
    %280 = arith.mulf %279, %277 : vector<2x32xf32>
    %281 = arith.mulf %272, %255 : vector<2x32xf32>
    %282 = arith.addf %280, %281 : vector<2x32xf32>
    %283 = vector.extract_strided_slice %251 {offsets = [0, 0], sizes = [2, 32], strides = [1, 1]} : vector<2x96xf32> to vector<2x32xf32>
    %284 = vector.extract_strided_slice %254 {offsets = [0, 96], sizes = [2, 32], strides = [1, 1]} : vector<2x192xf32> to vector<2x32xf32>
    %285 = arith.addf %283, %284 : vector<2x32xf32>
    %286 = arith.negf %285 : vector<2x32xf32>
    %287 = math.exp %286 : vector<2x32xf32>
    %cst_43 = arith.constant 1.000000e+00 : f32
    %288 = vector.broadcast %cst_43 : f32 to vector<2x32xf32>
    %289 = arith.addf %288, %287 : vector<2x32xf32>
    %290 = arith.divf %288, %289 : vector<2x32xf32>
    %291 = vector.extract_strided_slice %251 {offsets = [0, 32], sizes = [2, 32], strides = [1, 1]} : vector<2x96xf32> to vector<2x32xf32>
    %292 = vector.extract_strided_slice %254 {offsets = [0, 128], sizes = [2, 32], strides = [1, 1]} : vector<2x192xf32> to vector<2x32xf32>
    %293 = arith.addf %291, %292 : vector<2x32xf32>
    %294 = arith.negf %293 : vector<2x32xf32>
    %295 = math.exp %294 : vector<2x32xf32>
    %cst_44 = arith.constant 1.000000e+00 : f32
    %296 = vector.broadcast %cst_44 : f32 to vector<2x32xf32>
    %297 = arith.addf %296, %295 : vector<2x32xf32>
    %298 = arith.divf %296, %297 : vector<2x32xf32>
    %299 = vector.extract_strided_slice %251 {offsets = [0, 64], sizes = [2, 32], strides = [1, 1]} : vector<2x96xf32> to vector<2x32xf32>
    %300 = vector.extract_strided_slice %254 {offsets = [0, 160], sizes = [2, 32], strides = [1, 1]} : vector<2x192xf32> to vector<2x32xf32>
    %301 = arith.mulf %290, %300 : vector<2x32xf32>
    %302 = arith.addf %299, %301 : vector<2x32xf32>
    %303 = math.tanh %302 : vector<2x32xf32>
    %cst_45 = arith.constant 1.000000e+00 : f32
    %304 = vector.broadcast %cst_45 : f32 to vector<2x32xf32>
    %305 = arith.subf %304, %298 : vector<2x32xf32>
    %306 = arith.mulf %305, %303 : vector<2x32xf32>
    %307 = arith.mulf %298, %256 : vector<2x32xf32>
    %308 = arith.addf %306, %307 : vector<2x32xf32>
    %309 = tpu.concatenate %282, %308 in 1 : vector<2x32xf32>, vector<2x32xf32> -> vector<2x64xf32>
    %310 = vector.extract_strided_slice %6 {offsets = [10, 0], sizes = [2, 96], strides = [1, 1]} : vector<16x192xf32> to vector<2x96xf32>
    %311 = vector.extract_strided_slice %6 {offsets = [4, 96], sizes = [2, 96], strides = [1, 1]} : vector<16x192xf32> to vector<2x96xf32>
    %cst_46 = arith.constant dense<0.000000e+00> : vector<2x192xf32>
    %312 = tpu.matmul %309, %7, %cst_46 {dimension_numbers = #tpu.dot_dimension_numbers<[1], [0], [0], [1], [0, 0, 1, 1], [], []>} : vector<2x64xf32>, vector<64x192xf32>, vector<2x192xf32> -> vector<2x192xf32>
    %313 = vector.broadcast %8 : vector<1x192xf32> to vector<2x192xf32>
    %314 = arith.addf %312, %313 : vector<2x192xf32>
    %315 = vector.extract_strided_slice %309 {offsets = [0, 0], sizes = [2, 32], strides = [1, 1]} : vector<2x64xf32> to vector<2x32xf32>
    %316 = vector.extract_strided_slice %309 {offsets = [0, 32], sizes = [2, 32], strides = [1, 1]} : vector<2x64xf32> to vector<2x32xf32>
    %317 = vector.extract_strided_slice %310 {offsets = [0, 0], sizes = [2, 32], strides = [1, 1]} : vector<2x96xf32> to vector<2x32xf32>
    %318 = vector.extract_strided_slice %314 {offsets = [0, 0], sizes = [2, 32], strides = [1, 1]} : vector<2x192xf32> to vector<2x32xf32>
    %319 = arith.addf %317, %318 : vector<2x32xf32>
    %320 = arith.negf %319 : vector<2x32xf32>
    %321 = math.exp %320 : vector<2x32xf32>
    %cst_47 = arith.constant 1.000000e+00 : f32
    %322 = vector.broadcast %cst_47 : f32 to vector<2x32xf32>
    %323 = arith.addf %322, %321 : vector<2x32xf32>
    %324 = arith.divf %322, %323 : vector<2x32xf32>
    %325 = vector.extract_strided_slice %310 {offsets = [0, 32], sizes = [2, 32], strides = [1, 1]} : vector<2x96xf32> to vector<2x32xf32>
    %326 = vector.extract_strided_slice %314 {offsets = [0, 32], sizes = [2, 32], strides = [1, 1]} : vector<2x192xf32> to vector<2x32xf32>
    %327 = arith.addf %325, %326 : vector<2x32xf32>
    %328 = arith.negf %327 : vector<2x32xf32>
    %329 = math.exp %328 : vector<2x32xf32>
    %cst_48 = arith.constant 1.000000e+00 : f32
    %330 = vector.broadcast %cst_48 : f32 to vector<2x32xf32>
    %331 = arith.addf %330, %329 : vector<2x32xf32>
    %332 = arith.divf %330, %331 : vector<2x32xf32>
    %333 = vector.extract_strided_slice %310 {offsets = [0, 64], sizes = [2, 32], strides = [1, 1]} : vector<2x96xf32> to vector<2x32xf32>
    %334 = vector.extract_strided_slice %314 {offsets = [0, 64], sizes = [2, 32], strides = [1, 1]} : vector<2x192xf32> to vector<2x32xf32>
    %335 = arith.mulf %324, %334 : vector<2x32xf32>
    %336 = arith.addf %333, %335 : vector<2x32xf32>
    %337 = math.tanh %336 : vector<2x32xf32>
    %cst_49 = arith.constant 1.000000e+00 : f32
    %338 = vector.broadcast %cst_49 : f32 to vector<2x32xf32>
    %339 = arith.subf %338, %332 : vector<2x32xf32>
    %340 = arith.mulf %339, %337 : vector<2x32xf32>
    %341 = arith.mulf %332, %315 : vector<2x32xf32>
    %342 = arith.addf %340, %341 : vector<2x32xf32>
    %343 = vector.extract_strided_slice %311 {offsets = [0, 0], sizes = [2, 32], strides = [1, 1]} : vector<2x96xf32> to vector<2x32xf32>
    %344 = vector.extract_strided_slice %314 {offsets = [0, 96], sizes = [2, 32], strides = [1, 1]} : vector<2x192xf32> to vector<2x32xf32>
    %345 = arith.addf %343, %344 : vector<2x32xf32>
    %346 = arith.negf %345 : vector<2x32xf32>
    %347 = math.exp %346 : vector<2x32xf32>
    %cst_50 = arith.constant 1.000000e+00 : f32
    %348 = vector.broadcast %cst_50 : f32 to vector<2x32xf32>
    %349 = arith.addf %348, %347 : vector<2x32xf32>
    %350 = arith.divf %348, %349 : vector<2x32xf32>
    %351 = vector.extract_strided_slice %311 {offsets = [0, 32], sizes = [2, 32], strides = [1, 1]} : vector<2x96xf32> to vector<2x32xf32>
    %352 = vector.extract_strided_slice %314 {offsets = [0, 128], sizes = [2, 32], strides = [1, 1]} : vector<2x192xf32> to vector<2x32xf32>
    %353 = arith.addf %351, %352 : vector<2x32xf32>
    %354 = arith.negf %353 : vector<2x32xf32>
    %355 = math.exp %354 : vector<2x32xf32>
    %cst_51 = arith.constant 1.000000e+00 : f32
    %356 = vector.broadcast %cst_51 : f32 to vector<2x32xf32>
    %357 = arith.addf %356, %355 : vector<2x32xf32>
    %358 = arith.divf %356, %357 : vector<2x32xf32>
    %359 = vector.extract_strided_slice %311 {offsets = [0, 64], sizes = [2, 32], strides = [1, 1]} : vector<2x96xf32> to vector<2x32xf32>
    %360 = vector.extract_strided_slice %314 {offsets = [0, 160], sizes = [2, 32], strides = [1, 1]} : vector<2x192xf32> to vector<2x32xf32>
    %361 = arith.mulf %350, %360 : vector<2x32xf32>
    %362 = arith.addf %359, %361 : vector<2x32xf32>
    %363 = math.tanh %362 : vector<2x32xf32>
    %cst_52 = arith.constant 1.000000e+00 : f32
    %364 = vector.broadcast %cst_52 : f32 to vector<2x32xf32>
    %365 = arith.subf %364, %358 : vector<2x32xf32>
    %366 = arith.mulf %365, %363 : vector<2x32xf32>
    %367 = arith.mulf %358, %316 : vector<2x32xf32>
    %368 = arith.addf %366, %367 : vector<2x32xf32>
    %369 = tpu.concatenate %342, %368 in 1 : vector<2x32xf32>, vector<2x32xf32> -> vector<2x64xf32>
    %370 = vector.extract_strided_slice %6 {offsets = [12, 0], sizes = [2, 96], strides = [1, 1]} : vector<16x192xf32> to vector<2x96xf32>
    %371 = vector.extract_strided_slice %6 {offsets = [2, 96], sizes = [2, 96], strides = [1, 1]} : vector<16x192xf32> to vector<2x96xf32>
    %cst_53 = arith.constant dense<0.000000e+00> : vector<2x192xf32>
    %372 = tpu.matmul %369, %7, %cst_53 {dimension_numbers = #tpu.dot_dimension_numbers<[1], [0], [0], [1], [0, 0, 1, 1], [], []>} : vector<2x64xf32>, vector<64x192xf32>, vector<2x192xf32> -> vector<2x192xf32>
    %373 = vector.broadcast %8 : vector<1x192xf32> to vector<2x192xf32>
    %374 = arith.addf %372, %373 : vector<2x192xf32>
    %375 = vector.extract_strided_slice %369 {offsets = [0, 0], sizes = [2, 32], strides = [1, 1]} : vector<2x64xf32> to vector<2x32xf32>
    %376 = vector.extract_strided_slice %369 {offsets = [0, 32], sizes = [2, 32], strides = [1, 1]} : vector<2x64xf32> to vector<2x32xf32>
    %377 = vector.extract_strided_slice %370 {offsets = [0, 0], sizes = [2, 32], strides = [1, 1]} : vector<2x96xf32> to vector<2x32xf32>
    %378 = vector.extract_strided_slice %374 {offsets = [0, 0], sizes = [2, 32], strides = [1, 1]} : vector<2x192xf32> to vector<2x32xf32>
    %379 = arith.addf %377, %378 : vector<2x32xf32>
    %380 = arith.negf %379 : vector<2x32xf32>
    %381 = math.exp %380 : vector<2x32xf32>
    %cst_54 = arith.constant 1.000000e+00 : f32
    %382 = vector.broadcast %cst_54 : f32 to vector<2x32xf32>
    %383 = arith.addf %382, %381 : vector<2x32xf32>
    %384 = arith.divf %382, %383 : vector<2x32xf32>
    %385 = vector.extract_strided_slice %370 {offsets = [0, 32], sizes = [2, 32], strides = [1, 1]} : vector<2x96xf32> to vector<2x32xf32>
    %386 = vector.extract_strided_slice %374 {offsets = [0, 32], sizes = [2, 32], strides = [1, 1]} : vector<2x192xf32> to vector<2x32xf32>
    %387 = arith.addf %385, %386 : vector<2x32xf32>
    %388 = arith.negf %387 : vector<2x32xf32>
    %389 = math.exp %388 : vector<2x32xf32>
    %cst_55 = arith.constant 1.000000e+00 : f32
    %390 = vector.broadcast %cst_55 : f32 to vector<2x32xf32>
    %391 = arith.addf %390, %389 : vector<2x32xf32>
    %392 = arith.divf %390, %391 : vector<2x32xf32>
    %393 = vector.extract_strided_slice %370 {offsets = [0, 64], sizes = [2, 32], strides = [1, 1]} : vector<2x96xf32> to vector<2x32xf32>
    %394 = vector.extract_strided_slice %374 {offsets = [0, 64], sizes = [2, 32], strides = [1, 1]} : vector<2x192xf32> to vector<2x32xf32>
    %395 = arith.mulf %384, %394 : vector<2x32xf32>
    %396 = arith.addf %393, %395 : vector<2x32xf32>
    %397 = math.tanh %396 : vector<2x32xf32>
    %cst_56 = arith.constant 1.000000e+00 : f32
    %398 = vector.broadcast %cst_56 : f32 to vector<2x32xf32>
    %399 = arith.subf %398, %392 : vector<2x32xf32>
    %400 = arith.mulf %399, %397 : vector<2x32xf32>
    %401 = arith.mulf %392, %375 : vector<2x32xf32>
    %402 = arith.addf %400, %401 : vector<2x32xf32>
    %403 = vector.extract_strided_slice %371 {offsets = [0, 0], sizes = [2, 32], strides = [1, 1]} : vector<2x96xf32> to vector<2x32xf32>
    %404 = vector.extract_strided_slice %374 {offsets = [0, 96], sizes = [2, 32], strides = [1, 1]} : vector<2x192xf32> to vector<2x32xf32>
    %405 = arith.addf %403, %404 : vector<2x32xf32>
    %406 = arith.negf %405 : vector<2x32xf32>
    %407 = math.exp %406 : vector<2x32xf32>
    %cst_57 = arith.constant 1.000000e+00 : f32
    %408 = vector.broadcast %cst_57 : f32 to vector<2x32xf32>
    %409 = arith.addf %408, %407 : vector<2x32xf32>
    %410 = arith.divf %408, %409 : vector<2x32xf32>
    %411 = vector.extract_strided_slice %371 {offsets = [0, 32], sizes = [2, 32], strides = [1, 1]} : vector<2x96xf32> to vector<2x32xf32>
    %412 = vector.extract_strided_slice %374 {offsets = [0, 128], sizes = [2, 32], strides = [1, 1]} : vector<2x192xf32> to vector<2x32xf32>
    %413 = arith.addf %411, %412 : vector<2x32xf32>
    %414 = arith.negf %413 : vector<2x32xf32>
    %415 = math.exp %414 : vector<2x32xf32>
    %cst_58 = arith.constant 1.000000e+00 : f32
    %416 = vector.broadcast %cst_58 : f32 to vector<2x32xf32>
    %417 = arith.addf %416, %415 : vector<2x32xf32>
    %418 = arith.divf %416, %417 : vector<2x32xf32>
    %419 = vector.extract_strided_slice %371 {offsets = [0, 64], sizes = [2, 32], strides = [1, 1]} : vector<2x96xf32> to vector<2x32xf32>
    %420 = vector.extract_strided_slice %374 {offsets = [0, 160], sizes = [2, 32], strides = [1, 1]} : vector<2x192xf32> to vector<2x32xf32>
    %421 = arith.mulf %410, %420 : vector<2x32xf32>
    %422 = arith.addf %419, %421 : vector<2x32xf32>
    %423 = math.tanh %422 : vector<2x32xf32>
    %cst_59 = arith.constant 1.000000e+00 : f32
    %424 = vector.broadcast %cst_59 : f32 to vector<2x32xf32>
    %425 = arith.subf %424, %418 : vector<2x32xf32>
    %426 = arith.mulf %425, %423 : vector<2x32xf32>
    %427 = arith.mulf %418, %376 : vector<2x32xf32>
    %428 = arith.addf %426, %427 : vector<2x32xf32>
    %429 = tpu.concatenate %402, %428 in 1 : vector<2x32xf32>, vector<2x32xf32> -> vector<2x64xf32>
    %430 = vector.extract_strided_slice %6 {offsets = [14, 0], sizes = [2, 96], strides = [1, 1]} : vector<16x192xf32> to vector<2x96xf32>
    %431 = vector.extract_strided_slice %6 {offsets = [0, 96], sizes = [2, 96], strides = [1, 1]} : vector<16x192xf32> to vector<2x96xf32>
    %cst_60 = arith.constant dense<0.000000e+00> : vector<2x192xf32>
    %432 = tpu.matmul %429, %7, %cst_60 {dimension_numbers = #tpu.dot_dimension_numbers<[1], [0], [0], [1], [0, 0, 1, 1], [], []>} : vector<2x64xf32>, vector<64x192xf32>, vector<2x192xf32> -> vector<2x192xf32>
    %433 = vector.broadcast %8 : vector<1x192xf32> to vector<2x192xf32>
    %434 = arith.addf %432, %433 : vector<2x192xf32>
    %435 = vector.extract_strided_slice %429 {offsets = [0, 0], sizes = [2, 32], strides = [1, 1]} : vector<2x64xf32> to vector<2x32xf32>
    %436 = vector.extract_strided_slice %429 {offsets = [0, 32], sizes = [2, 32], strides = [1, 1]} : vector<2x64xf32> to vector<2x32xf32>
    %437 = vector.extract_strided_slice %430 {offsets = [0, 0], sizes = [2, 32], strides = [1, 1]} : vector<2x96xf32> to vector<2x32xf32>
    %438 = vector.extract_strided_slice %434 {offsets = [0, 0], sizes = [2, 32], strides = [1, 1]} : vector<2x192xf32> to vector<2x32xf32>
    %439 = arith.addf %437, %438 : vector<2x32xf32>
    %440 = arith.negf %439 : vector<2x32xf32>
    %441 = math.exp %440 : vector<2x32xf32>
    %cst_61 = arith.constant 1.000000e+00 : f32
    %442 = vector.broadcast %cst_61 : f32 to vector<2x32xf32>
    %443 = arith.addf %442, %441 : vector<2x32xf32>
    %444 = arith.divf %442, %443 : vector<2x32xf32>
    %445 = vector.extract_strided_slice %430 {offsets = [0, 32], sizes = [2, 32], strides = [1, 1]} : vector<2x96xf32> to vector<2x32xf32>
    %446 = vector.extract_strided_slice %434 {offsets = [0, 32], sizes = [2, 32], strides = [1, 1]} : vector<2x192xf32> to vector<2x32xf32>
    %447 = arith.addf %445, %446 : vector<2x32xf32>
    %448 = arith.negf %447 : vector<2x32xf32>
    %449 = math.exp %448 : vector<2x32xf32>
    %cst_62 = arith.constant 1.000000e+00 : f32
    %450 = vector.broadcast %cst_62 : f32 to vector<2x32xf32>
    %451 = arith.addf %450, %449 : vector<2x32xf32>
    %452 = arith.divf %450, %451 : vector<2x32xf32>
    %453 = vector.extract_strided_slice %430 {offsets = [0, 64], sizes = [2, 32], strides = [1, 1]} : vector<2x96xf32> to vector<2x32xf32>
    %454 = vector.extract_strided_slice %434 {offsets = [0, 64], sizes = [2, 32], strides = [1, 1]} : vector<2x192xf32> to vector<2x32xf32>
    %455 = arith.mulf %444, %454 : vector<2x32xf32>
    %456 = arith.addf %453, %455 : vector<2x32xf32>
    %457 = math.tanh %456 : vector<2x32xf32>
    %cst_63 = arith.constant 1.000000e+00 : f32
    %458 = vector.broadcast %cst_63 : f32 to vector<2x32xf32>
    %459 = arith.subf %458, %452 : vector<2x32xf32>
    %460 = arith.mulf %459, %457 : vector<2x32xf32>
    %461 = arith.mulf %452, %435 : vector<2x32xf32>
    %462 = arith.addf %460, %461 : vector<2x32xf32>
    %463 = vector.extract_strided_slice %431 {offsets = [0, 0], sizes = [2, 32], strides = [1, 1]} : vector<2x96xf32> to vector<2x32xf32>
    %464 = vector.extract_strided_slice %434 {offsets = [0, 96], sizes = [2, 32], strides = [1, 1]} : vector<2x192xf32> to vector<2x32xf32>
    %465 = arith.addf %463, %464 : vector<2x32xf32>
    %466 = arith.negf %465 : vector<2x32xf32>
    %467 = math.exp %466 : vector<2x32xf32>
    %cst_64 = arith.constant 1.000000e+00 : f32
    %468 = vector.broadcast %cst_64 : f32 to vector<2x32xf32>
    %469 = arith.addf %468, %467 : vector<2x32xf32>
    %470 = arith.divf %468, %469 : vector<2x32xf32>
    %471 = vector.extract_strided_slice %431 {offsets = [0, 32], sizes = [2, 32], strides = [1, 1]} : vector<2x96xf32> to vector<2x32xf32>
    %472 = vector.extract_strided_slice %434 {offsets = [0, 128], sizes = [2, 32], strides = [1, 1]} : vector<2x192xf32> to vector<2x32xf32>
    %473 = arith.addf %471, %472 : vector<2x32xf32>
    %474 = arith.negf %473 : vector<2x32xf32>
    %475 = math.exp %474 : vector<2x32xf32>
    %cst_65 = arith.constant 1.000000e+00 : f32
    %476 = vector.broadcast %cst_65 : f32 to vector<2x32xf32>
    %477 = arith.addf %476, %475 : vector<2x32xf32>
    %478 = arith.divf %476, %477 : vector<2x32xf32>
    %479 = vector.extract_strided_slice %431 {offsets = [0, 64], sizes = [2, 32], strides = [1, 1]} : vector<2x96xf32> to vector<2x32xf32>
    %480 = vector.extract_strided_slice %434 {offsets = [0, 160], sizes = [2, 32], strides = [1, 1]} : vector<2x192xf32> to vector<2x32xf32>
    %481 = arith.mulf %470, %480 : vector<2x32xf32>
    %482 = arith.addf %479, %481 : vector<2x32xf32>
    %483 = math.tanh %482 : vector<2x32xf32>
    %cst_66 = arith.constant 1.000000e+00 : f32
    %484 = vector.broadcast %cst_66 : f32 to vector<2x32xf32>
    %485 = arith.subf %484, %478 : vector<2x32xf32>
    %486 = arith.mulf %485, %483 : vector<2x32xf32>
    %487 = arith.mulf %478, %436 : vector<2x32xf32>
    %488 = arith.addf %486, %487 : vector<2x32xf32>
    %489 = arith.addf %1, %462 : vector<2x32xf32>
    %490 = arith.addf %489, %488 : vector<2x32xf32>
    %491 = tpu.concatenate %42, %102, %162, %222, %282, %342, %402, %462 in 0 : vector<2x32xf32>, vector<2x32xf32>, vector<2x32xf32>, vector<2x32xf32>, vector<2x32xf32>, vector<2x32xf32>, vector<2x32xf32>, vector<2x32xf32> -> vector<16x32xf32>
    %492 = tpu.concatenate %488, %428, %368, %308, %248, %188, %128, %68 in 0 : vector<2x32xf32>, vector<2x32xf32>, vector<2x32xf32>, vector<2x32xf32>, vector<2x32xf32>, vector<2x32xf32>, vector<2x32xf32>, vector<2x32xf32> -> vector<16x32xf32>
    %493 = tpu.concatenate %491, %492 in 1 : vector<16x32xf32>, vector<16x32xf32> -> vector<16x64xf32>
    %c0_67 = arith.constant 0 : index
    %c0_68 = arith.constant 0 : index
    %494 = vector.load %arg5[%c0_67, %c0_68] : memref<64x192xf32, #tpu.memory_space<vmem>>, vector<64x192xf32>
    %cst_69 = arith.constant dense<0.000000e+00> : vector<16x192xf32>
    %495 = tpu.matmul %493, %494, %cst_69 {dimension_numbers = #tpu.dot_dimension_numbers<[1], [0], [0], [1], [0, 0, 1, 1], [], []>} : vector<16x64xf32>, vector<64x192xf32>, vector<16x192xf32> -> vector<16x192xf32>
    %c0_70 = arith.constant 0 : index
    %c0_71 = arith.constant 0 : index
    %496 = vector.load %arg7[%c0_70, %c0_71] : memref<1x192xf32, #tpu.memory_space<vmem>>, vector<1x192xf32>
    %497 = vector.broadcast %496 : vector<1x192xf32> to vector<16x192xf32>
    %498 = arith.addf %495, %497 : vector<16x192xf32>
    %c0_72 = arith.constant 0 : index
    %c0_73 = arith.constant 0 : index
    %499 = vector.load %arg6[%c0_72, %c0_73] : memref<64x192xf32, #tpu.memory_space<vmem>>, vector<64x192xf32>
    %c0_74 = arith.constant 0 : index
    %c0_75 = arith.constant 0 : index
    %500 = vector.load %arg8[%c0_74, %c0_75] : memref<1x192xf32, #tpu.memory_space<vmem>>, vector<1x192xf32>
    %cst_76 = arith.constant 0.000000e+00 : f32
    %501 = vector.broadcast %cst_76 : f32 to vector<2x64xf32>
    %502 = vector.extract_strided_slice %498 {offsets = [0, 0], sizes = [2, 96], strides = [1, 1]} : vector<16x192xf32> to vector<2x96xf32>
    %503 = vector.extract_strided_slice %498 {offsets = [14, 96], sizes = [2, 96], strides = [1, 1]} : vector<16x192xf32> to vector<2x96xf32>
    %cst_77 = arith.constant dense<0.000000e+00> : vector<2x192xf32>
    %504 = tpu.matmul %501, %499, %cst_77 {dimension_numbers = #tpu.dot_dimension_numbers<[1], [0], [0], [1], [0, 0, 1, 1], [], []>} : vector<2x64xf32>, vector<64x192xf32>, vector<2x192xf32> -> vector<2x192xf32>
    %505 = vector.broadcast %500 : vector<1x192xf32> to vector<2x192xf32>
    %506 = arith.addf %504, %505 : vector<2x192xf32>
    %507 = vector.extract_strided_slice %501 {offsets = [0, 0], sizes = [2, 32], strides = [1, 1]} : vector<2x64xf32> to vector<2x32xf32>
    %508 = vector.extract_strided_slice %501 {offsets = [0, 32], sizes = [2, 32], strides = [1, 1]} : vector<2x64xf32> to vector<2x32xf32>
    %509 = vector.extract_strided_slice %502 {offsets = [0, 0], sizes = [2, 32], strides = [1, 1]} : vector<2x96xf32> to vector<2x32xf32>
    %510 = vector.extract_strided_slice %506 {offsets = [0, 0], sizes = [2, 32], strides = [1, 1]} : vector<2x192xf32> to vector<2x32xf32>
    %511 = arith.addf %509, %510 : vector<2x32xf32>
    %512 = arith.negf %511 : vector<2x32xf32>
    %513 = math.exp %512 : vector<2x32xf32>
    %cst_78 = arith.constant 1.000000e+00 : f32
    %514 = vector.broadcast %cst_78 : f32 to vector<2x32xf32>
    %515 = arith.addf %514, %513 : vector<2x32xf32>
    %516 = arith.divf %514, %515 : vector<2x32xf32>
    %517 = vector.extract_strided_slice %502 {offsets = [0, 32], sizes = [2, 32], strides = [1, 1]} : vector<2x96xf32> to vector<2x32xf32>
    %518 = vector.extract_strided_slice %506 {offsets = [0, 32], sizes = [2, 32], strides = [1, 1]} : vector<2x192xf32> to vector<2x32xf32>
    %519 = arith.addf %517, %518 : vector<2x32xf32>
    %520 = arith.negf %519 : vector<2x32xf32>
    %521 = math.exp %520 : vector<2x32xf32>
    %cst_79 = arith.constant 1.000000e+00 : f32
    %522 = vector.broadcast %cst_79 : f32 to vector<2x32xf32>
    %523 = arith.addf %522, %521 : vector<2x32xf32>
    %524 = arith.divf %522, %523 : vector<2x32xf32>
    %525 = vector.extract_strided_slice %502 {offsets = [0, 64], sizes = [2, 32], strides = [1, 1]} : vector<2x96xf32> to vector<2x32xf32>
    %526 = vector.extract_strided_slice %506 {offsets = [0, 64], sizes = [2, 32], strides = [1, 1]} : vector<2x192xf32> to vector<2x32xf32>
    %527 = arith.mulf %516, %526 : vector<2x32xf32>
    %528 = arith.addf %525, %527 : vector<2x32xf32>
    %529 = math.tanh %528 : vector<2x32xf32>
    %cst_80 = arith.constant 1.000000e+00 : f32
    %530 = vector.broadcast %cst_80 : f32 to vector<2x32xf32>
    %531 = arith.subf %530, %524 : vector<2x32xf32>
    %532 = arith.mulf %531, %529 : vector<2x32xf32>
    %533 = arith.mulf %524, %507 : vector<2x32xf32>
    %534 = arith.addf %532, %533 : vector<2x32xf32>
    %535 = vector.extract_strided_slice %503 {offsets = [0, 0], sizes = [2, 32], strides = [1, 1]} : vector<2x96xf32> to vector<2x32xf32>
    %536 = vector.extract_strided_slice %506 {offsets = [0, 96], sizes = [2, 32], strides = [1, 1]} : vector<2x192xf32> to vector<2x32xf32>
    %537 = arith.addf %535, %536 : vector<2x32xf32>
    %538 = arith.negf %537 : vector<2x32xf32>
    %539 = math.exp %538 : vector<2x32xf32>
    %cst_81 = arith.constant 1.000000e+00 : f32
    %540 = vector.broadcast %cst_81 : f32 to vector<2x32xf32>
    %541 = arith.addf %540, %539 : vector<2x32xf32>
    %542 = arith.divf %540, %541 : vector<2x32xf32>
    %543 = vector.extract_strided_slice %503 {offsets = [0, 32], sizes = [2, 32], strides = [1, 1]} : vector<2x96xf32> to vector<2x32xf32>
    %544 = vector.extract_strided_slice %506 {offsets = [0, 128], sizes = [2, 32], strides = [1, 1]} : vector<2x192xf32> to vector<2x32xf32>
    %545 = arith.addf %543, %544 : vector<2x32xf32>
    %546 = arith.negf %545 : vector<2x32xf32>
    %547 = math.exp %546 : vector<2x32xf32>
    %cst_82 = arith.constant 1.000000e+00 : f32
    %548 = vector.broadcast %cst_82 : f32 to vector<2x32xf32>
    %549 = arith.addf %548, %547 : vector<2x32xf32>
    %550 = arith.divf %548, %549 : vector<2x32xf32>
    %551 = vector.extract_strided_slice %503 {offsets = [0, 64], sizes = [2, 32], strides = [1, 1]} : vector<2x96xf32> to vector<2x32xf32>
    %552 = vector.extract_strided_slice %506 {offsets = [0, 160], sizes = [2, 32], strides = [1, 1]} : vector<2x192xf32> to vector<2x32xf32>
    %553 = arith.mulf %542, %552 : vector<2x32xf32>
    %554 = arith.addf %551, %553 : vector<2x32xf32>
    %555 = math.tanh %554 : vector<2x32xf32>
    %cst_83 = arith.constant 1.000000e+00 : f32
    %556 = vector.broadcast %cst_83 : f32 to vector<2x32xf32>
    %557 = arith.subf %556, %550 : vector<2x32xf32>
    %558 = arith.mulf %557, %555 : vector<2x32xf32>
    %559 = arith.mulf %550, %508 : vector<2x32xf32>
    %560 = arith.addf %558, %559 : vector<2x32xf32>
    %561 = tpu.concatenate %534, %560 in 1 : vector<2x32xf32>, vector<2x32xf32> -> vector<2x64xf32>
    %562 = vector.extract_strided_slice %498 {offsets = [2, 0], sizes = [2, 96], strides = [1, 1]} : vector<16x192xf32> to vector<2x96xf32>
    %563 = vector.extract_strided_slice %498 {offsets = [12, 96], sizes = [2, 96], strides = [1, 1]} : vector<16x192xf32> to vector<2x96xf32>
    %cst_84 = arith.constant dense<0.000000e+00> : vector<2x192xf32>
    %564 = tpu.matmul %561, %499, %cst_84 {dimension_numbers = #tpu.dot_dimension_numbers<[1], [0], [0], [1], [0, 0, 1, 1], [], []>} : vector<2x64xf32>, vector<64x192xf32>, vector<2x192xf32> -> vector<2x192xf32>
    %565 = vector.broadcast %500 : vector<1x192xf32> to vector<2x192xf32>
    %566 = arith.addf %564, %565 : vector<2x192xf32>
    %567 = vector.extract_strided_slice %561 {offsets = [0, 0], sizes = [2, 32], strides = [1, 1]} : vector<2x64xf32> to vector<2x32xf32>
    %568 = vector.extract_strided_slice %561 {offsets = [0, 32], sizes = [2, 32], strides = [1, 1]} : vector<2x64xf32> to vector<2x32xf32>
    %569 = vector.extract_strided_slice %562 {offsets = [0, 0], sizes = [2, 32], strides = [1, 1]} : vector<2x96xf32> to vector<2x32xf32>
    %570 = vector.extract_strided_slice %566 {offsets = [0, 0], sizes = [2, 32], strides = [1, 1]} : vector<2x192xf32> to vector<2x32xf32>
    %571 = arith.addf %569, %570 : vector<2x32xf32>
    %572 = arith.negf %571 : vector<2x32xf32>
    %573 = math.exp %572 : vector<2x32xf32>
    %cst_85 = arith.constant 1.000000e+00 : f32
    %574 = vector.broadcast %cst_85 : f32 to vector<2x32xf32>
    %575 = arith.addf %574, %573 : vector<2x32xf32>
    %576 = arith.divf %574, %575 : vector<2x32xf32>
    %577 = vector.extract_strided_slice %562 {offsets = [0, 32], sizes = [2, 32], strides = [1, 1]} : vector<2x96xf32> to vector<2x32xf32>
    %578 = vector.extract_strided_slice %566 {offsets = [0, 32], sizes = [2, 32], strides = [1, 1]} : vector<2x192xf32> to vector<2x32xf32>
    %579 = arith.addf %577, %578 : vector<2x32xf32>
    %580 = arith.negf %579 : vector<2x32xf32>
    %581 = math.exp %580 : vector<2x32xf32>
    %cst_86 = arith.constant 1.000000e+00 : f32
    %582 = vector.broadcast %cst_86 : f32 to vector<2x32xf32>
    %583 = arith.addf %582, %581 : vector<2x32xf32>
    %584 = arith.divf %582, %583 : vector<2x32xf32>
    %585 = vector.extract_strided_slice %562 {offsets = [0, 64], sizes = [2, 32], strides = [1, 1]} : vector<2x96xf32> to vector<2x32xf32>
    %586 = vector.extract_strided_slice %566 {offsets = [0, 64], sizes = [2, 32], strides = [1, 1]} : vector<2x192xf32> to vector<2x32xf32>
    %587 = arith.mulf %576, %586 : vector<2x32xf32>
    %588 = arith.addf %585, %587 : vector<2x32xf32>
    %589 = math.tanh %588 : vector<2x32xf32>
    %cst_87 = arith.constant 1.000000e+00 : f32
    %590 = vector.broadcast %cst_87 : f32 to vector<2x32xf32>
    %591 = arith.subf %590, %584 : vector<2x32xf32>
    %592 = arith.mulf %591, %589 : vector<2x32xf32>
    %593 = arith.mulf %584, %567 : vector<2x32xf32>
    %594 = arith.addf %592, %593 : vector<2x32xf32>
    %595 = vector.extract_strided_slice %563 {offsets = [0, 0], sizes = [2, 32], strides = [1, 1]} : vector<2x96xf32> to vector<2x32xf32>
    %596 = vector.extract_strided_slice %566 {offsets = [0, 96], sizes = [2, 32], strides = [1, 1]} : vector<2x192xf32> to vector<2x32xf32>
    %597 = arith.addf %595, %596 : vector<2x32xf32>
    %598 = arith.negf %597 : vector<2x32xf32>
    %599 = math.exp %598 : vector<2x32xf32>
    %cst_88 = arith.constant 1.000000e+00 : f32
    %600 = vector.broadcast %cst_88 : f32 to vector<2x32xf32>
    %601 = arith.addf %600, %599 : vector<2x32xf32>
    %602 = arith.divf %600, %601 : vector<2x32xf32>
    %603 = vector.extract_strided_slice %563 {offsets = [0, 32], sizes = [2, 32], strides = [1, 1]} : vector<2x96xf32> to vector<2x32xf32>
    %604 = vector.extract_strided_slice %566 {offsets = [0, 128], sizes = [2, 32], strides = [1, 1]} : vector<2x192xf32> to vector<2x32xf32>
    %605 = arith.addf %603, %604 : vector<2x32xf32>
    %606 = arith.negf %605 : vector<2x32xf32>
    %607 = math.exp %606 : vector<2x32xf32>
    %cst_89 = arith.constant 1.000000e+00 : f32
    %608 = vector.broadcast %cst_89 : f32 to vector<2x32xf32>
    %609 = arith.addf %608, %607 : vector<2x32xf32>
    %610 = arith.divf %608, %609 : vector<2x32xf32>
    %611 = vector.extract_strided_slice %563 {offsets = [0, 64], sizes = [2, 32], strides = [1, 1]} : vector<2x96xf32> to vector<2x32xf32>
    %612 = vector.extract_strided_slice %566 {offsets = [0, 160], sizes = [2, 32], strides = [1, 1]} : vector<2x192xf32> to vector<2x32xf32>
    %613 = arith.mulf %602, %612 : vector<2x32xf32>
    %614 = arith.addf %611, %613 : vector<2x32xf32>
    %615 = math.tanh %614 : vector<2x32xf32>
    %cst_90 = arith.constant 1.000000e+00 : f32
    %616 = vector.broadcast %cst_90 : f32 to vector<2x32xf32>
    %617 = arith.subf %616, %610 : vector<2x32xf32>
    %618 = arith.mulf %617, %615 : vector<2x32xf32>
    %619 = arith.mulf %610, %568 : vector<2x32xf32>
    %620 = arith.addf %618, %619 : vector<2x32xf32>
    %621 = tpu.concatenate %594, %620 in 1 : vector<2x32xf32>, vector<2x32xf32> -> vector<2x64xf32>
    %622 = vector.extract_strided_slice %498 {offsets = [4, 0], sizes = [2, 96], strides = [1, 1]} : vector<16x192xf32> to vector<2x96xf32>
    %623 = vector.extract_strided_slice %498 {offsets = [10, 96], sizes = [2, 96], strides = [1, 1]} : vector<16x192xf32> to vector<2x96xf32>
    %cst_91 = arith.constant dense<0.000000e+00> : vector<2x192xf32>
    %624 = tpu.matmul %621, %499, %cst_91 {dimension_numbers = #tpu.dot_dimension_numbers<[1], [0], [0], [1], [0, 0, 1, 1], [], []>} : vector<2x64xf32>, vector<64x192xf32>, vector<2x192xf32> -> vector<2x192xf32>
    %625 = vector.broadcast %500 : vector<1x192xf32> to vector<2x192xf32>
    %626 = arith.addf %624, %625 : vector<2x192xf32>
    %627 = vector.extract_strided_slice %621 {offsets = [0, 0], sizes = [2, 32], strides = [1, 1]} : vector<2x64xf32> to vector<2x32xf32>
    %628 = vector.extract_strided_slice %621 {offsets = [0, 32], sizes = [2, 32], strides = [1, 1]} : vector<2x64xf32> to vector<2x32xf32>
    %629 = vector.extract_strided_slice %622 {offsets = [0, 0], sizes = [2, 32], strides = [1, 1]} : vector<2x96xf32> to vector<2x32xf32>
    %630 = vector.extract_strided_slice %626 {offsets = [0, 0], sizes = [2, 32], strides = [1, 1]} : vector<2x192xf32> to vector<2x32xf32>
    %631 = arith.addf %629, %630 : vector<2x32xf32>
    %632 = arith.negf %631 : vector<2x32xf32>
    %633 = math.exp %632 : vector<2x32xf32>
    %cst_92 = arith.constant 1.000000e+00 : f32
    %634 = vector.broadcast %cst_92 : f32 to vector<2x32xf32>
    %635 = arith.addf %634, %633 : vector<2x32xf32>
    %636 = arith.divf %634, %635 : vector<2x32xf32>
    %637 = vector.extract_strided_slice %622 {offsets = [0, 32], sizes = [2, 32], strides = [1, 1]} : vector<2x96xf32> to vector<2x32xf32>
    %638 = vector.extract_strided_slice %626 {offsets = [0, 32], sizes = [2, 32], strides = [1, 1]} : vector<2x192xf32> to vector<2x32xf32>
    %639 = arith.addf %637, %638 : vector<2x32xf32>
    %640 = arith.negf %639 : vector<2x32xf32>
    %641 = math.exp %640 : vector<2x32xf32>
    %cst_93 = arith.constant 1.000000e+00 : f32
    %642 = vector.broadcast %cst_93 : f32 to vector<2x32xf32>
    %643 = arith.addf %642, %641 : vector<2x32xf32>
    %644 = arith.divf %642, %643 : vector<2x32xf32>
    %645 = vector.extract_strided_slice %622 {offsets = [0, 64], sizes = [2, 32], strides = [1, 1]} : vector<2x96xf32> to vector<2x32xf32>
    %646 = vector.extract_strided_slice %626 {offsets = [0, 64], sizes = [2, 32], strides = [1, 1]} : vector<2x192xf32> to vector<2x32xf32>
    %647 = arith.mulf %636, %646 : vector<2x32xf32>
    %648 = arith.addf %645, %647 : vector<2x32xf32>
    %649 = math.tanh %648 : vector<2x32xf32>
    %cst_94 = arith.constant 1.000000e+00 : f32
    %650 = vector.broadcast %cst_94 : f32 to vector<2x32xf32>
    %651 = arith.subf %650, %644 : vector<2x32xf32>
    %652 = arith.mulf %651, %649 : vector<2x32xf32>
    %653 = arith.mulf %644, %627 : vector<2x32xf32>
    %654 = arith.addf %652, %653 : vector<2x32xf32>
    %655 = vector.extract_strided_slice %623 {offsets = [0, 0], sizes = [2, 32], strides = [1, 1]} : vector<2x96xf32> to vector<2x32xf32>
    %656 = vector.extract_strided_slice %626 {offsets = [0, 96], sizes = [2, 32], strides = [1, 1]} : vector<2x192xf32> to vector<2x32xf32>
    %657 = arith.addf %655, %656 : vector<2x32xf32>
    %658 = arith.negf %657 : vector<2x32xf32>
    %659 = math.exp %658 : vector<2x32xf32>
    %cst_95 = arith.constant 1.000000e+00 : f32
    %660 = vector.broadcast %cst_95 : f32 to vector<2x32xf32>
    %661 = arith.addf %660, %659 : vector<2x32xf32>
    %662 = arith.divf %660, %661 : vector<2x32xf32>
    %663 = vector.extract_strided_slice %623 {offsets = [0, 32], sizes = [2, 32], strides = [1, 1]} : vector<2x96xf32> to vector<2x32xf32>
    %664 = vector.extract_strided_slice %626 {offsets = [0, 128], sizes = [2, 32], strides = [1, 1]} : vector<2x192xf32> to vector<2x32xf32>
    %665 = arith.addf %663, %664 : vector<2x32xf32>
    %666 = arith.negf %665 : vector<2x32xf32>
    %667 = math.exp %666 : vector<2x32xf32>
    %cst_96 = arith.constant 1.000000e+00 : f32
    %668 = vector.broadcast %cst_96 : f32 to vector<2x32xf32>
    %669 = arith.addf %668, %667 : vector<2x32xf32>
    %670 = arith.divf %668, %669 : vector<2x32xf32>
    %671 = vector.extract_strided_slice %623 {offsets = [0, 64], sizes = [2, 32], strides = [1, 1]} : vector<2x96xf32> to vector<2x32xf32>
    %672 = vector.extract_strided_slice %626 {offsets = [0, 160], sizes = [2, 32], strides = [1, 1]} : vector<2x192xf32> to vector<2x32xf32>
    %673 = arith.mulf %662, %672 : vector<2x32xf32>
    %674 = arith.addf %671, %673 : vector<2x32xf32>
    %675 = math.tanh %674 : vector<2x32xf32>
    %cst_97 = arith.constant 1.000000e+00 : f32
    %676 = vector.broadcast %cst_97 : f32 to vector<2x32xf32>
    %677 = arith.subf %676, %670 : vector<2x32xf32>
    %678 = arith.mulf %677, %675 : vector<2x32xf32>
    %679 = arith.mulf %670, %628 : vector<2x32xf32>
    %680 = arith.addf %678, %679 : vector<2x32xf32>
    %681 = tpu.concatenate %654, %680 in 1 : vector<2x32xf32>, vector<2x32xf32> -> vector<2x64xf32>
    %682 = vector.extract_strided_slice %498 {offsets = [6, 0], sizes = [2, 96], strides = [1, 1]} : vector<16x192xf32> to vector<2x96xf32>
    %683 = vector.extract_strided_slice %498 {offsets = [8, 96], sizes = [2, 96], strides = [1, 1]} : vector<16x192xf32> to vector<2x96xf32>
    %cst_98 = arith.constant dense<0.000000e+00> : vector<2x192xf32>
    %684 = tpu.matmul %681, %499, %cst_98 {dimension_numbers = #tpu.dot_dimension_numbers<[1], [0], [0], [1], [0, 0, 1, 1], [], []>} : vector<2x64xf32>, vector<64x192xf32>, vector<2x192xf32> -> vector<2x192xf32>
    %685 = vector.broadcast %500 : vector<1x192xf32> to vector<2x192xf32>
    %686 = arith.addf %684, %685 : vector<2x192xf32>
    %687 = vector.extract_strided_slice %681 {offsets = [0, 0], sizes = [2, 32], strides = [1, 1]} : vector<2x64xf32> to vector<2x32xf32>
    %688 = vector.extract_strided_slice %681 {offsets = [0, 32], sizes = [2, 32], strides = [1, 1]} : vector<2x64xf32> to vector<2x32xf32>
    %689 = vector.extract_strided_slice %682 {offsets = [0, 0], sizes = [2, 32], strides = [1, 1]} : vector<2x96xf32> to vector<2x32xf32>
    %690 = vector.extract_strided_slice %686 {offsets = [0, 0], sizes = [2, 32], strides = [1, 1]} : vector<2x192xf32> to vector<2x32xf32>
    %691 = arith.addf %689, %690 : vector<2x32xf32>
    %692 = arith.negf %691 : vector<2x32xf32>
    %693 = math.exp %692 : vector<2x32xf32>
    %cst_99 = arith.constant 1.000000e+00 : f32
    %694 = vector.broadcast %cst_99 : f32 to vector<2x32xf32>
    %695 = arith.addf %694, %693 : vector<2x32xf32>
    %696 = arith.divf %694, %695 : vector<2x32xf32>
    %697 = vector.extract_strided_slice %682 {offsets = [0, 32], sizes = [2, 32], strides = [1, 1]} : vector<2x96xf32> to vector<2x32xf32>
    %698 = vector.extract_strided_slice %686 {offsets = [0, 32], sizes = [2, 32], strides = [1, 1]} : vector<2x192xf32> to vector<2x32xf32>
    %699 = arith.addf %697, %698 : vector<2x32xf32>
    %700 = arith.negf %699 : vector<2x32xf32>
    %701 = math.exp %700 : vector<2x32xf32>
    %cst_100 = arith.constant 1.000000e+00 : f32
    %702 = vector.broadcast %cst_100 : f32 to vector<2x32xf32>
    %703 = arith.addf %702, %701 : vector<2x32xf32>
    %704 = arith.divf %702, %703 : vector<2x32xf32>
    %705 = vector.extract_strided_slice %682 {offsets = [0, 64], sizes = [2, 32], strides = [1, 1]} : vector<2x96xf32> to vector<2x32xf32>
    %706 = vector.extract_strided_slice %686 {offsets = [0, 64], sizes = [2, 32], strides = [1, 1]} : vector<2x192xf32> to vector<2x32xf32>
    %707 = arith.mulf %696, %706 : vector<2x32xf32>
    %708 = arith.addf %705, %707 : vector<2x32xf32>
    %709 = math.tanh %708 : vector<2x32xf32>
    %cst_101 = arith.constant 1.000000e+00 : f32
    %710 = vector.broadcast %cst_101 : f32 to vector<2x32xf32>
    %711 = arith.subf %710, %704 : vector<2x32xf32>
    %712 = arith.mulf %711, %709 : vector<2x32xf32>
    %713 = arith.mulf %704, %687 : vector<2x32xf32>
    %714 = arith.addf %712, %713 : vector<2x32xf32>
    %715 = vector.extract_strided_slice %683 {offsets = [0, 0], sizes = [2, 32], strides = [1, 1]} : vector<2x96xf32> to vector<2x32xf32>
    %716 = vector.extract_strided_slice %686 {offsets = [0, 96], sizes = [2, 32], strides = [1, 1]} : vector<2x192xf32> to vector<2x32xf32>
    %717 = arith.addf %715, %716 : vector<2x32xf32>
    %718 = arith.negf %717 : vector<2x32xf32>
    %719 = math.exp %718 : vector<2x32xf32>
    %cst_102 = arith.constant 1.000000e+00 : f32
    %720 = vector.broadcast %cst_102 : f32 to vector<2x32xf32>
    %721 = arith.addf %720, %719 : vector<2x32xf32>
    %722 = arith.divf %720, %721 : vector<2x32xf32>
    %723 = vector.extract_strided_slice %683 {offsets = [0, 32], sizes = [2, 32], strides = [1, 1]} : vector<2x96xf32> to vector<2x32xf32>
    %724 = vector.extract_strided_slice %686 {offsets = [0, 128], sizes = [2, 32], strides = [1, 1]} : vector<2x192xf32> to vector<2x32xf32>
    %725 = arith.addf %723, %724 : vector<2x32xf32>
    %726 = arith.negf %725 : vector<2x32xf32>
    %727 = math.exp %726 : vector<2x32xf32>
    %cst_103 = arith.constant 1.000000e+00 : f32
    %728 = vector.broadcast %cst_103 : f32 to vector<2x32xf32>
    %729 = arith.addf %728, %727 : vector<2x32xf32>
    %730 = arith.divf %728, %729 : vector<2x32xf32>
    %731 = vector.extract_strided_slice %683 {offsets = [0, 64], sizes = [2, 32], strides = [1, 1]} : vector<2x96xf32> to vector<2x32xf32>
    %732 = vector.extract_strided_slice %686 {offsets = [0, 160], sizes = [2, 32], strides = [1, 1]} : vector<2x192xf32> to vector<2x32xf32>
    %733 = arith.mulf %722, %732 : vector<2x32xf32>
    %734 = arith.addf %731, %733 : vector<2x32xf32>
    %735 = math.tanh %734 : vector<2x32xf32>
    %cst_104 = arith.constant 1.000000e+00 : f32
    %736 = vector.broadcast %cst_104 : f32 to vector<2x32xf32>
    %737 = arith.subf %736, %730 : vector<2x32xf32>
    %738 = arith.mulf %737, %735 : vector<2x32xf32>
    %739 = arith.mulf %730, %688 : vector<2x32xf32>
    %740 = arith.addf %738, %739 : vector<2x32xf32>
    %741 = tpu.concatenate %714, %740 in 1 : vector<2x32xf32>, vector<2x32xf32> -> vector<2x64xf32>
    %742 = vector.extract_strided_slice %498 {offsets = [8, 0], sizes = [2, 96], strides = [1, 1]} : vector<16x192xf32> to vector<2x96xf32>
    %743 = vector.extract_strided_slice %498 {offsets = [6, 96], sizes = [2, 96], strides = [1, 1]} : vector<16x192xf32> to vector<2x96xf32>
    %cst_105 = arith.constant dense<0.000000e+00> : vector<2x192xf32>
    %744 = tpu.matmul %741, %499, %cst_105 {dimension_numbers = #tpu.dot_dimension_numbers<[1], [0], [0], [1], [0, 0, 1, 1], [], []>} : vector<2x64xf32>, vector<64x192xf32>, vector<2x192xf32> -> vector<2x192xf32>
    %745 = vector.broadcast %500 : vector<1x192xf32> to vector<2x192xf32>
    %746 = arith.addf %744, %745 : vector<2x192xf32>
    %747 = vector.extract_strided_slice %741 {offsets = [0, 0], sizes = [2, 32], strides = [1, 1]} : vector<2x64xf32> to vector<2x32xf32>
    %748 = vector.extract_strided_slice %741 {offsets = [0, 32], sizes = [2, 32], strides = [1, 1]} : vector<2x64xf32> to vector<2x32xf32>
    %749 = vector.extract_strided_slice %742 {offsets = [0, 0], sizes = [2, 32], strides = [1, 1]} : vector<2x96xf32> to vector<2x32xf32>
    %750 = vector.extract_strided_slice %746 {offsets = [0, 0], sizes = [2, 32], strides = [1, 1]} : vector<2x192xf32> to vector<2x32xf32>
    %751 = arith.addf %749, %750 : vector<2x32xf32>
    %752 = arith.negf %751 : vector<2x32xf32>
    %753 = math.exp %752 : vector<2x32xf32>
    %cst_106 = arith.constant 1.000000e+00 : f32
    %754 = vector.broadcast %cst_106 : f32 to vector<2x32xf32>
    %755 = arith.addf %754, %753 : vector<2x32xf32>
    %756 = arith.divf %754, %755 : vector<2x32xf32>
    %757 = vector.extract_strided_slice %742 {offsets = [0, 32], sizes = [2, 32], strides = [1, 1]} : vector<2x96xf32> to vector<2x32xf32>
    %758 = vector.extract_strided_slice %746 {offsets = [0, 32], sizes = [2, 32], strides = [1, 1]} : vector<2x192xf32> to vector<2x32xf32>
    %759 = arith.addf %757, %758 : vector<2x32xf32>
    %760 = arith.negf %759 : vector<2x32xf32>
    %761 = math.exp %760 : vector<2x32xf32>
    %cst_107 = arith.constant 1.000000e+00 : f32
    %762 = vector.broadcast %cst_107 : f32 to vector<2x32xf32>
    %763 = arith.addf %762, %761 : vector<2x32xf32>
    %764 = arith.divf %762, %763 : vector<2x32xf32>
    %765 = vector.extract_strided_slice %742 {offsets = [0, 64], sizes = [2, 32], strides = [1, 1]} : vector<2x96xf32> to vector<2x32xf32>
    %766 = vector.extract_strided_slice %746 {offsets = [0, 64], sizes = [2, 32], strides = [1, 1]} : vector<2x192xf32> to vector<2x32xf32>
    %767 = arith.mulf %756, %766 : vector<2x32xf32>
    %768 = arith.addf %765, %767 : vector<2x32xf32>
    %769 = math.tanh %768 : vector<2x32xf32>
    %cst_108 = arith.constant 1.000000e+00 : f32
    %770 = vector.broadcast %cst_108 : f32 to vector<2x32xf32>
    %771 = arith.subf %770, %764 : vector<2x32xf32>
    %772 = arith.mulf %771, %769 : vector<2x32xf32>
    %773 = arith.mulf %764, %747 : vector<2x32xf32>
    %774 = arith.addf %772, %773 : vector<2x32xf32>
    %775 = vector.extract_strided_slice %743 {offsets = [0, 0], sizes = [2, 32], strides = [1, 1]} : vector<2x96xf32> to vector<2x32xf32>
    %776 = vector.extract_strided_slice %746 {offsets = [0, 96], sizes = [2, 32], strides = [1, 1]} : vector<2x192xf32> to vector<2x32xf32>
    %777 = arith.addf %775, %776 : vector<2x32xf32>
    %778 = arith.negf %777 : vector<2x32xf32>
    %779 = math.exp %778 : vector<2x32xf32>
    %cst_109 = arith.constant 1.000000e+00 : f32
    %780 = vector.broadcast %cst_109 : f32 to vector<2x32xf32>
    %781 = arith.addf %780, %779 : vector<2x32xf32>
    %782 = arith.divf %780, %781 : vector<2x32xf32>
    %783 = vector.extract_strided_slice %743 {offsets = [0, 32], sizes = [2, 32], strides = [1, 1]} : vector<2x96xf32> to vector<2x32xf32>
    %784 = vector.extract_strided_slice %746 {offsets = [0, 128], sizes = [2, 32], strides = [1, 1]} : vector<2x192xf32> to vector<2x32xf32>
    %785 = arith.addf %783, %784 : vector<2x32xf32>
    %786 = arith.negf %785 : vector<2x32xf32>
    %787 = math.exp %786 : vector<2x32xf32>
    %cst_110 = arith.constant 1.000000e+00 : f32
    %788 = vector.broadcast %cst_110 : f32 to vector<2x32xf32>
    %789 = arith.addf %788, %787 : vector<2x32xf32>
    %790 = arith.divf %788, %789 : vector<2x32xf32>
    %791 = vector.extract_strided_slice %743 {offsets = [0, 64], sizes = [2, 32], strides = [1, 1]} : vector<2x96xf32> to vector<2x32xf32>
    %792 = vector.extract_strided_slice %746 {offsets = [0, 160], sizes = [2, 32], strides = [1, 1]} : vector<2x192xf32> to vector<2x32xf32>
    %793 = arith.mulf %782, %792 : vector<2x32xf32>
    %794 = arith.addf %791, %793 : vector<2x32xf32>
    %795 = math.tanh %794 : vector<2x32xf32>
    %cst_111 = arith.constant 1.000000e+00 : f32
    %796 = vector.broadcast %cst_111 : f32 to vector<2x32xf32>
    %797 = arith.subf %796, %790 : vector<2x32xf32>
    %798 = arith.mulf %797, %795 : vector<2x32xf32>
    %799 = arith.mulf %790, %748 : vector<2x32xf32>
    %800 = arith.addf %798, %799 : vector<2x32xf32>
    %801 = tpu.concatenate %774, %800 in 1 : vector<2x32xf32>, vector<2x32xf32> -> vector<2x64xf32>
    %802 = vector.extract_strided_slice %498 {offsets = [10, 0], sizes = [2, 96], strides = [1, 1]} : vector<16x192xf32> to vector<2x96xf32>
    %803 = vector.extract_strided_slice %498 {offsets = [4, 96], sizes = [2, 96], strides = [1, 1]} : vector<16x192xf32> to vector<2x96xf32>
    %cst_112 = arith.constant dense<0.000000e+00> : vector<2x192xf32>
    %804 = tpu.matmul %801, %499, %cst_112 {dimension_numbers = #tpu.dot_dimension_numbers<[1], [0], [0], [1], [0, 0, 1, 1], [], []>} : vector<2x64xf32>, vector<64x192xf32>, vector<2x192xf32> -> vector<2x192xf32>
    %805 = vector.broadcast %500 : vector<1x192xf32> to vector<2x192xf32>
    %806 = arith.addf %804, %805 : vector<2x192xf32>
    %807 = vector.extract_strided_slice %801 {offsets = [0, 0], sizes = [2, 32], strides = [1, 1]} : vector<2x64xf32> to vector<2x32xf32>
    %808 = vector.extract_strided_slice %801 {offsets = [0, 32], sizes = [2, 32], strides = [1, 1]} : vector<2x64xf32> to vector<2x32xf32>
    %809 = vector.extract_strided_slice %802 {offsets = [0, 0], sizes = [2, 32], strides = [1, 1]} : vector<2x96xf32> to vector<2x32xf32>
    %810 = vector.extract_strided_slice %806 {offsets = [0, 0], sizes = [2, 32], strides = [1, 1]} : vector<2x192xf32> to vector<2x32xf32>
    %811 = arith.addf %809, %810 : vector<2x32xf32>
    %812 = arith.negf %811 : vector<2x32xf32>
    %813 = math.exp %812 : vector<2x32xf32>
    %cst_113 = arith.constant 1.000000e+00 : f32
    %814 = vector.broadcast %cst_113 : f32 to vector<2x32xf32>
    %815 = arith.addf %814, %813 : vector<2x32xf32>
    %816 = arith.divf %814, %815 : vector<2x32xf32>
    %817 = vector.extract_strided_slice %802 {offsets = [0, 32], sizes = [2, 32], strides = [1, 1]} : vector<2x96xf32> to vector<2x32xf32>
    %818 = vector.extract_strided_slice %806 {offsets = [0, 32], sizes = [2, 32], strides = [1, 1]} : vector<2x192xf32> to vector<2x32xf32>
    %819 = arith.addf %817, %818 : vector<2x32xf32>
    %820 = arith.negf %819 : vector<2x32xf32>
    %821 = math.exp %820 : vector<2x32xf32>
    %cst_114 = arith.constant 1.000000e+00 : f32
    %822 = vector.broadcast %cst_114 : f32 to vector<2x32xf32>
    %823 = arith.addf %822, %821 : vector<2x32xf32>
    %824 = arith.divf %822, %823 : vector<2x32xf32>
    %825 = vector.extract_strided_slice %802 {offsets = [0, 64], sizes = [2, 32], strides = [1, 1]} : vector<2x96xf32> to vector<2x32xf32>
    %826 = vector.extract_strided_slice %806 {offsets = [0, 64], sizes = [2, 32], strides = [1, 1]} : vector<2x192xf32> to vector<2x32xf32>
    %827 = arith.mulf %816, %826 : vector<2x32xf32>
    %828 = arith.addf %825, %827 : vector<2x32xf32>
    %829 = math.tanh %828 : vector<2x32xf32>
    %cst_115 = arith.constant 1.000000e+00 : f32
    %830 = vector.broadcast %cst_115 : f32 to vector<2x32xf32>
    %831 = arith.subf %830, %824 : vector<2x32xf32>
    %832 = arith.mulf %831, %829 : vector<2x32xf32>
    %833 = arith.mulf %824, %807 : vector<2x32xf32>
    %834 = arith.addf %832, %833 : vector<2x32xf32>
    %835 = vector.extract_strided_slice %803 {offsets = [0, 0], sizes = [2, 32], strides = [1, 1]} : vector<2x96xf32> to vector<2x32xf32>
    %836 = vector.extract_strided_slice %806 {offsets = [0, 96], sizes = [2, 32], strides = [1, 1]} : vector<2x192xf32> to vector<2x32xf32>
    %837 = arith.addf %835, %836 : vector<2x32xf32>
    %838 = arith.negf %837 : vector<2x32xf32>
    %839 = math.exp %838 : vector<2x32xf32>
    %cst_116 = arith.constant 1.000000e+00 : f32
    %840 = vector.broadcast %cst_116 : f32 to vector<2x32xf32>
    %841 = arith.addf %840, %839 : vector<2x32xf32>
    %842 = arith.divf %840, %841 : vector<2x32xf32>
    %843 = vector.extract_strided_slice %803 {offsets = [0, 32], sizes = [2, 32], strides = [1, 1]} : vector<2x96xf32> to vector<2x32xf32>
    %844 = vector.extract_strided_slice %806 {offsets = [0, 128], sizes = [2, 32], strides = [1, 1]} : vector<2x192xf32> to vector<2x32xf32>
    %845 = arith.addf %843, %844 : vector<2x32xf32>
    %846 = arith.negf %845 : vector<2x32xf32>
    %847 = math.exp %846 : vector<2x32xf32>
    %cst_117 = arith.constant 1.000000e+00 : f32
    %848 = vector.broadcast %cst_117 : f32 to vector<2x32xf32>
    %849 = arith.addf %848, %847 : vector<2x32xf32>
    %850 = arith.divf %848, %849 : vector<2x32xf32>
    %851 = vector.extract_strided_slice %803 {offsets = [0, 64], sizes = [2, 32], strides = [1, 1]} : vector<2x96xf32> to vector<2x32xf32>
    %852 = vector.extract_strided_slice %806 {offsets = [0, 160], sizes = [2, 32], strides = [1, 1]} : vector<2x192xf32> to vector<2x32xf32>
    %853 = arith.mulf %842, %852 : vector<2x32xf32>
    %854 = arith.addf %851, %853 : vector<2x32xf32>
    %855 = math.tanh %854 : vector<2x32xf32>
    %cst_118 = arith.constant 1.000000e+00 : f32
    %856 = vector.broadcast %cst_118 : f32 to vector<2x32xf32>
    %857 = arith.subf %856, %850 : vector<2x32xf32>
    %858 = arith.mulf %857, %855 : vector<2x32xf32>
    %859 = arith.mulf %850, %808 : vector<2x32xf32>
    %860 = arith.addf %858, %859 : vector<2x32xf32>
    %861 = tpu.concatenate %834, %860 in 1 : vector<2x32xf32>, vector<2x32xf32> -> vector<2x64xf32>
    %862 = vector.extract_strided_slice %498 {offsets = [12, 0], sizes = [2, 96], strides = [1, 1]} : vector<16x192xf32> to vector<2x96xf32>
    %863 = vector.extract_strided_slice %498 {offsets = [2, 96], sizes = [2, 96], strides = [1, 1]} : vector<16x192xf32> to vector<2x96xf32>
    %cst_119 = arith.constant dense<0.000000e+00> : vector<2x192xf32>
    %864 = tpu.matmul %861, %499, %cst_119 {dimension_numbers = #tpu.dot_dimension_numbers<[1], [0], [0], [1], [0, 0, 1, 1], [], []>} : vector<2x64xf32>, vector<64x192xf32>, vector<2x192xf32> -> vector<2x192xf32>
    %865 = vector.broadcast %500 : vector<1x192xf32> to vector<2x192xf32>
    %866 = arith.addf %864, %865 : vector<2x192xf32>
    %867 = vector.extract_strided_slice %861 {offsets = [0, 0], sizes = [2, 32], strides = [1, 1]} : vector<2x64xf32> to vector<2x32xf32>
    %868 = vector.extract_strided_slice %861 {offsets = [0, 32], sizes = [2, 32], strides = [1, 1]} : vector<2x64xf32> to vector<2x32xf32>
    %869 = vector.extract_strided_slice %862 {offsets = [0, 0], sizes = [2, 32], strides = [1, 1]} : vector<2x96xf32> to vector<2x32xf32>
    %870 = vector.extract_strided_slice %866 {offsets = [0, 0], sizes = [2, 32], strides = [1, 1]} : vector<2x192xf32> to vector<2x32xf32>
    %871 = arith.addf %869, %870 : vector<2x32xf32>
    %872 = arith.negf %871 : vector<2x32xf32>
    %873 = math.exp %872 : vector<2x32xf32>
    %cst_120 = arith.constant 1.000000e+00 : f32
    %874 = vector.broadcast %cst_120 : f32 to vector<2x32xf32>
    %875 = arith.addf %874, %873 : vector<2x32xf32>
    %876 = arith.divf %874, %875 : vector<2x32xf32>
    %877 = vector.extract_strided_slice %862 {offsets = [0, 32], sizes = [2, 32], strides = [1, 1]} : vector<2x96xf32> to vector<2x32xf32>
    %878 = vector.extract_strided_slice %866 {offsets = [0, 32], sizes = [2, 32], strides = [1, 1]} : vector<2x192xf32> to vector<2x32xf32>
    %879 = arith.addf %877, %878 : vector<2x32xf32>
    %880 = arith.negf %879 : vector<2x32xf32>
    %881 = math.exp %880 : vector<2x32xf32>
    %cst_121 = arith.constant 1.000000e+00 : f32
    %882 = vector.broadcast %cst_121 : f32 to vector<2x32xf32>
    %883 = arith.addf %882, %881 : vector<2x32xf32>
    %884 = arith.divf %882, %883 : vector<2x32xf32>
    %885 = vector.extract_strided_slice %862 {offsets = [0, 64], sizes = [2, 32], strides = [1, 1]} : vector<2x96xf32> to vector<2x32xf32>
    %886 = vector.extract_strided_slice %866 {offsets = [0, 64], sizes = [2, 32], strides = [1, 1]} : vector<2x192xf32> to vector<2x32xf32>
    %887 = arith.mulf %876, %886 : vector<2x32xf32>
    %888 = arith.addf %885, %887 : vector<2x32xf32>
    %889 = math.tanh %888 : vector<2x32xf32>
    %cst_122 = arith.constant 1.000000e+00 : f32
    %890 = vector.broadcast %cst_122 : f32 to vector<2x32xf32>
    %891 = arith.subf %890, %884 : vector<2x32xf32>
    %892 = arith.mulf %891, %889 : vector<2x32xf32>
    %893 = arith.mulf %884, %867 : vector<2x32xf32>
    %894 = arith.addf %892, %893 : vector<2x32xf32>
    %895 = vector.extract_strided_slice %863 {offsets = [0, 0], sizes = [2, 32], strides = [1, 1]} : vector<2x96xf32> to vector<2x32xf32>
    %896 = vector.extract_strided_slice %866 {offsets = [0, 96], sizes = [2, 32], strides = [1, 1]} : vector<2x192xf32> to vector<2x32xf32>
    %897 = arith.addf %895, %896 : vector<2x32xf32>
    %898 = arith.negf %897 : vector<2x32xf32>
    %899 = math.exp %898 : vector<2x32xf32>
    %cst_123 = arith.constant 1.000000e+00 : f32
    %900 = vector.broadcast %cst_123 : f32 to vector<2x32xf32>
    %901 = arith.addf %900, %899 : vector<2x32xf32>
    %902 = arith.divf %900, %901 : vector<2x32xf32>
    %903 = vector.extract_strided_slice %863 {offsets = [0, 32], sizes = [2, 32], strides = [1, 1]} : vector<2x96xf32> to vector<2x32xf32>
    %904 = vector.extract_strided_slice %866 {offsets = [0, 128], sizes = [2, 32], strides = [1, 1]} : vector<2x192xf32> to vector<2x32xf32>
    %905 = arith.addf %903, %904 : vector<2x32xf32>
    %906 = arith.negf %905 : vector<2x32xf32>
    %907 = math.exp %906 : vector<2x32xf32>
    %cst_124 = arith.constant 1.000000e+00 : f32
    %908 = vector.broadcast %cst_124 : f32 to vector<2x32xf32>
    %909 = arith.addf %908, %907 : vector<2x32xf32>
    %910 = arith.divf %908, %909 : vector<2x32xf32>
    %911 = vector.extract_strided_slice %863 {offsets = [0, 64], sizes = [2, 32], strides = [1, 1]} : vector<2x96xf32> to vector<2x32xf32>
    %912 = vector.extract_strided_slice %866 {offsets = [0, 160], sizes = [2, 32], strides = [1, 1]} : vector<2x192xf32> to vector<2x32xf32>
    %913 = arith.mulf %902, %912 : vector<2x32xf32>
    %914 = arith.addf %911, %913 : vector<2x32xf32>
    %915 = math.tanh %914 : vector<2x32xf32>
    %cst_125 = arith.constant 1.000000e+00 : f32
    %916 = vector.broadcast %cst_125 : f32 to vector<2x32xf32>
    %917 = arith.subf %916, %910 : vector<2x32xf32>
    %918 = arith.mulf %917, %915 : vector<2x32xf32>
    %919 = arith.mulf %910, %868 : vector<2x32xf32>
    %920 = arith.addf %918, %919 : vector<2x32xf32>
    %921 = tpu.concatenate %894, %920 in 1 : vector<2x32xf32>, vector<2x32xf32> -> vector<2x64xf32>
    %922 = vector.extract_strided_slice %498 {offsets = [14, 0], sizes = [2, 96], strides = [1, 1]} : vector<16x192xf32> to vector<2x96xf32>
    %923 = vector.extract_strided_slice %498 {offsets = [0, 96], sizes = [2, 96], strides = [1, 1]} : vector<16x192xf32> to vector<2x96xf32>
    %cst_126 = arith.constant dense<0.000000e+00> : vector<2x192xf32>
    %924 = tpu.matmul %921, %499, %cst_126 {dimension_numbers = #tpu.dot_dimension_numbers<[1], [0], [0], [1], [0, 0, 1, 1], [], []>} : vector<2x64xf32>, vector<64x192xf32>, vector<2x192xf32> -> vector<2x192xf32>
    %925 = vector.broadcast %500 : vector<1x192xf32> to vector<2x192xf32>
    %926 = arith.addf %924, %925 : vector<2x192xf32>
    %927 = vector.extract_strided_slice %921 {offsets = [0, 0], sizes = [2, 32], strides = [1, 1]} : vector<2x64xf32> to vector<2x32xf32>
    %928 = vector.extract_strided_slice %921 {offsets = [0, 32], sizes = [2, 32], strides = [1, 1]} : vector<2x64xf32> to vector<2x32xf32>
    %929 = vector.extract_strided_slice %922 {offsets = [0, 0], sizes = [2, 32], strides = [1, 1]} : vector<2x96xf32> to vector<2x32xf32>
    %930 = vector.extract_strided_slice %926 {offsets = [0, 0], sizes = [2, 32], strides = [1, 1]} : vector<2x192xf32> to vector<2x32xf32>
    %931 = arith.addf %929, %930 : vector<2x32xf32>
    %932 = arith.negf %931 : vector<2x32xf32>
    %933 = math.exp %932 : vector<2x32xf32>
    %cst_127 = arith.constant 1.000000e+00 : f32
    %934 = vector.broadcast %cst_127 : f32 to vector<2x32xf32>
    %935 = arith.addf %934, %933 : vector<2x32xf32>
    %936 = arith.divf %934, %935 : vector<2x32xf32>
    %937 = vector.extract_strided_slice %922 {offsets = [0, 32], sizes = [2, 32], strides = [1, 1]} : vector<2x96xf32> to vector<2x32xf32>
    %938 = vector.extract_strided_slice %926 {offsets = [0, 32], sizes = [2, 32], strides = [1, 1]} : vector<2x192xf32> to vector<2x32xf32>
    %939 = arith.addf %937, %938 : vector<2x32xf32>
    %940 = arith.negf %939 : vector<2x32xf32>
    %941 = math.exp %940 : vector<2x32xf32>
    %cst_128 = arith.constant 1.000000e+00 : f32
    %942 = vector.broadcast %cst_128 : f32 to vector<2x32xf32>
    %943 = arith.addf %942, %941 : vector<2x32xf32>
    %944 = arith.divf %942, %943 : vector<2x32xf32>
    %945 = vector.extract_strided_slice %922 {offsets = [0, 64], sizes = [2, 32], strides = [1, 1]} : vector<2x96xf32> to vector<2x32xf32>
    %946 = vector.extract_strided_slice %926 {offsets = [0, 64], sizes = [2, 32], strides = [1, 1]} : vector<2x192xf32> to vector<2x32xf32>
    %947 = arith.mulf %936, %946 : vector<2x32xf32>
    %948 = arith.addf %945, %947 : vector<2x32xf32>
    %949 = math.tanh %948 : vector<2x32xf32>
    %cst_129 = arith.constant 1.000000e+00 : f32
    %950 = vector.broadcast %cst_129 : f32 to vector<2x32xf32>
    %951 = arith.subf %950, %944 : vector<2x32xf32>
    %952 = arith.mulf %951, %949 : vector<2x32xf32>
    %953 = arith.mulf %944, %927 : vector<2x32xf32>
    %954 = arith.addf %952, %953 : vector<2x32xf32>
    %955 = vector.extract_strided_slice %923 {offsets = [0, 0], sizes = [2, 32], strides = [1, 1]} : vector<2x96xf32> to vector<2x32xf32>
    %956 = vector.extract_strided_slice %926 {offsets = [0, 96], sizes = [2, 32], strides = [1, 1]} : vector<2x192xf32> to vector<2x32xf32>
    %957 = arith.addf %955, %956 : vector<2x32xf32>
    %958 = arith.negf %957 : vector<2x32xf32>
    %959 = math.exp %958 : vector<2x32xf32>
    %cst_130 = arith.constant 1.000000e+00 : f32
    %960 = vector.broadcast %cst_130 : f32 to vector<2x32xf32>
    %961 = arith.addf %960, %959 : vector<2x32xf32>
    %962 = arith.divf %960, %961 : vector<2x32xf32>
    %963 = vector.extract_strided_slice %923 {offsets = [0, 32], sizes = [2, 32], strides = [1, 1]} : vector<2x96xf32> to vector<2x32xf32>
    %964 = vector.extract_strided_slice %926 {offsets = [0, 128], sizes = [2, 32], strides = [1, 1]} : vector<2x192xf32> to vector<2x32xf32>
    %965 = arith.addf %963, %964 : vector<2x32xf32>
    %966 = arith.negf %965 : vector<2x32xf32>
    %967 = math.exp %966 : vector<2x32xf32>
    %cst_131 = arith.constant 1.000000e+00 : f32
    %968 = vector.broadcast %cst_131 : f32 to vector<2x32xf32>
    %969 = arith.addf %968, %967 : vector<2x32xf32>
    %970 = arith.divf %968, %969 : vector<2x32xf32>
    %971 = vector.extract_strided_slice %923 {offsets = [0, 64], sizes = [2, 32], strides = [1, 1]} : vector<2x96xf32> to vector<2x32xf32>
    %972 = vector.extract_strided_slice %926 {offsets = [0, 160], sizes = [2, 32], strides = [1, 1]} : vector<2x192xf32> to vector<2x32xf32>
    %973 = arith.mulf %962, %972 : vector<2x32xf32>
    %974 = arith.addf %971, %973 : vector<2x32xf32>
    %975 = math.tanh %974 : vector<2x32xf32>
    %cst_132 = arith.constant 1.000000e+00 : f32
    %976 = vector.broadcast %cst_132 : f32 to vector<2x32xf32>
    %977 = arith.subf %976, %970 : vector<2x32xf32>
    %978 = arith.mulf %977, %975 : vector<2x32xf32>
    %979 = arith.mulf %970, %928 : vector<2x32xf32>
    %980 = arith.addf %978, %979 : vector<2x32xf32>
    %981 = arith.addf %490, %954 : vector<2x32xf32>
    %982 = arith.addf %981, %980 : vector<2x32xf32>
    %cst_133 = arith.constant 2.500000e-01 : f32
    %983 = vector.broadcast %cst_133 : f32 to vector<2x32xf32>
    %984 = arith.mulf %982, %983 : vector<2x32xf32>
    %c0_134 = arith.constant 0 : index
    %c0_135 = arith.constant 0 : index
    %985 = vector.load %arg9[%c0_134, %c0_135] : memref<32x150xf32, #tpu.memory_space<vmem>>, vector<32x150xf32>
    %cst_136 = arith.constant dense<0.000000e+00> : vector<2x150xf32>
    %986 = tpu.matmul %984, %985, %cst_136 {dimension_numbers = #tpu.dot_dimension_numbers<[1], [0], [0], [1], [0, 0, 1, 1], [], []>} : vector<2x32xf32>, vector<32x150xf32>, vector<2x150xf32> -> vector<2x150xf32>
    %c0_137 = arith.constant 0 : index
    %c0_138 = arith.constant 0 : index
    %987 = vector.load %arg10[%c0_137, %c0_138] : memref<1x150xf32, #tpu.memory_space<vmem>>, vector<1x150xf32>
    %988 = vector.broadcast %987 : vector<1x150xf32> to vector<2x150xf32>
    %989 = arith.addf %986, %988 : vector<2x150xf32>
    %c0_139 = arith.constant 0 : index
    %c0_140 = arith.constant 0 : index
    %990 = vector.load %arg11[%c0_139, %c0_140] : memref<2x150xf32, #tpu.memory_space<vmem>>, vector<2x150xf32>
    tpu.vector_store %arg11[%c0_139, %c0_140], %989 {strides = array<i32>} : memref<2x150xf32, #tpu.memory_space<vmem>>, vector<2x150xf32>,
    return
  }
}

</mosaic_0001>

<bundles_post_ra>
// kernel: my_model_forward.1
= control target key start
LH: loop header
LB: loop body
LE: loop exit
PB: predicated region body
PF: predicated region fallthrough
CT: control target
= control target key end

     0   :  { %16 = vsyncpa [#allocation3], 0  ;;  %s4713_s0 = inlined_call_operand.hbm [shape: f32[16,16], index: 0, kind: input, shape index: {}]   ;;  %s4714_s1 = inlined_call_operand.hbm [shape: f32[16,192], index: 1, kind: input, shape index: {}]   ;;  %s4715_s2 = inlined_call_operand.hbm [shape: f32[64,192], index: 2, kind: input, shape index: {}]   ;;  %s4716_s3 = inlined_call_operand.vmem [shape: f32[1,192], index: 3, kind: input, shape index: {}]   ;;  %s4717_s4 = inlined_call_operand.vmem [shape: f32[1,192], index: 4, kind: input, shape index: {}]   ;;  %s4718_s5 = inlined_call_operand.hbm [shape: f32[64,192], index: 5, kind: input, shape index: {}]   ;;  %s4719_s6 = inlined_call_operand.hbm [shape: f32[64,192], index: 6, kind: input, shape index: {}]   ;;  %s4720_s7 = inlined_call_operand.vmem [shape: f32[1,192], index: 7, kind: input, shape index: {}]   ;;  %s4721_s8 = inlined_call_operand.vmem [shape: f32[1,192], index: 8, kind: input, shape index: {}]   ;;  %s4722_s9 = inlined_call_operand.hbm [shape: f32[32,150], index: 9, kind: input, shape index: {}]   ;;  %s4723_s10 = inlined_call_operand.hbm [shape: f32[1,150], index: 10, kind: input, shape index: {}]   ;;  %s4724_s11 = inlined_call_operand.hbm [shape: f32[2,150], index: 11, kind: output, shape index: {}]  }
   0x1   :  { %17 = vsyncpa [#allocation6], 0 }
   0x2   :  { %18 = vsyncpa [#allocation9], 0 }
   0x3   :  { %19 = vsyncpa [#allocation12], 0  ;;  %s38_s19 = sshll.u32 %s4714_s1, 4  ;;  %s39_s19 = int_to_ptr.hbm [resolvable:$true] %s38_s19 }
   0x4   :  { %20 = vsyncpa [#allocation4], 0  ;;  %s3615_s20 = smov [#allocation5]   ;;  %s68_s24 = sshll.u32 %s4718_s5, 4  ;;  %s69_s24 = int_to_ptr.hbm [resolvable:$true] %s68_s24 }
   0x5   :  { %s40_s21 = sshll.u32 %s3615_s20, 4  ;;  %s3616_s25 = smov 256   ;;  %s41_s21 = int_to_ptr.vmem [resolvable:$true] %s40_s21 }
   0x6   :  { %s3617_s26 = smov 16   ;;  %s3618_s27 = smov [#allocation8]  }
   0x7   :  { %46 = dma.hbm_to_vmem [thread:$0]  %s39_s19, 512, %s41_s21, [#allocation6], %s3616_s25, %s3616_s25, %s3617_s26  }
   0x8   :  { %s70_s28 = sshll.u32 %s3618_s27, 4  ;;  %s98_s30 = sshll.u32 %s4722_s9, 4  ;;  %s71_s28 = int_to_ptr.vmem [resolvable:$true] %s70_s28  ;;  %s99_s30 = int_to_ptr.hbm [resolvable:$true] %s98_s30 }
   0x9   :  { %76 = dma.hbm_to_vmem [thread:$0]  %s69_s24, 2048, %s71_s28, [#allocation9], %s3616_s25, %s3616_s25, %s3617_s26  }
   0xa   :  { %s25_s13 = sshll.u32 %s4713_s0, 4  ;;  %s3619_s14 = smov [#allocation11]   ;;  %s26_s13 = int_to_ptr.hbm [resolvable:$true] %s25_s13 }
   0xb   :  { %s100_s15 = sshll.u32 %s3619_s14, 4  ;;  %s3620_s16 = smov [#allocation2]   ;;  %s101_s15 = int_to_ptr.vmem [resolvable:$true] %s100_s15 }
   0xc   :  { %106 = dma.hbm_to_vmem [thread:$0]  %s99_s30, 1024, %s101_s15, [#allocation12], %s3616_s25, %s3616_s25, %s3617_s26  }
   0xd   :  { %s27_s9 = sshll.u32 %s3620_s16, 4  ;;  %s3621_s17 = smov 128   ;;  %s28_s9 = int_to_ptr.vmem [resolvable:$true] %s27_s9 }
   0xe   :  { %s3622_s18 = smov 8   ;;  %s51_s21 = sshll.u32 %s4715_s2, 4  ;;  %s52_s21 = int_to_ptr.hbm [resolvable:$true] %s51_s21 }
   0xf   :  { %33 = dma.hbm_to_vmem [thread:$0]  %s26_s13, 256, %s28_s9, [#allocation3], %s3621_s17, %s3621_s17, %s3622_s18  }
  0x10   :  { %s3623_s0 = smov [#allocation7]   ;;  %s81_s27 = sshll.u32 %s4719_s6, 4  ;;  %s82_s27 = int_to_ptr.hbm [resolvable:$true] %s81_s27 }
  0x11   :  { %s53_s22 = sshll.u32 %s3623_s0, 4  ;;  %s3624_s28 = smov [#allocation10]   ;;  %s54_s22 = int_to_ptr.vmem [resolvable:$true] %s53_s22 }
  0x12   :  { %59 = dma.hbm_to_vmem [thread:$0]  %s52_s21, 2048, %s54_s22, [#allocation6], %s3616_s25, %s3616_s25, %s3617_s26  }
  0x13   :  { %s83_s29 = sshll.u32 %s3624_s28, 4  ;;  %s112_s5 = sshll.u32 %s4723_s10, 4  ;;  %s84_s29 = int_to_ptr.vmem [resolvable:$true] %s83_s29  ;;  %s113_s5 = int_to_ptr.hbm [resolvable:$true] %s112_s5 }
  0x14   :  { %89 = dma.hbm_to_vmem [thread:$0]  %s82_s27, 2048, %s84_s29, [#allocation9], %s3616_s25, %s3616_s25, %s3617_s26  }
  0x15   :  { %s3625_s2 = smov [#allocation13]  }
  0x16   :  { %s114_s12 = sshll.u32 %s3625_s2, 4  ;;  %s115_s12 = int_to_ptr.vmem [resolvable:$true] %s114_s12 }
  0x17   :  { %117 = dma.hbm_to_vmem [thread:$0]  %s113_s5, 32, %s115_s12, [#allocation12]  }
  0x18   :  { %3605 = dma.done.wait [#allocation3], 256  }
  0x19   :  { %3606 = vsyncadd [#allocation3], 4294967040 }
  0x1a   :  { %3607 = dma.done.wait [#allocation6], 2560  }
  0x1b   :  { %3608 = vsyncadd [#allocation6], 4294964736 }
  0x1c   :  { %3609 = dma.done.wait [#allocation9], 4096  }
  0x1d   :  { %3610 = vsyncadd [#allocation9], 4294963200 }
  0x1e   :  { %3611 = dma.done.wait [#allocation12], 1056  }
  0x1f   :  { %3612 = vsyncadd [#allocation12], 4294966240  ;;  %v3727_v0 = vld [vmem:[#allocation7 + $0x70] sm:$0xff]  ;;  %v3729_v1 = vld [vmem:[#allocation7 + $0x78] sm:$0xff]  ;;  %vm158_vm0 = vcmask 130048   ;;  %v3626_v22 = vmov 0.0  }
  0x20   :  { %v3731_v2 = vld [vmem:[#allocation7 + $0x60] sm:$0xff]  ;;  %245 = vmatpush.msra.mxu2 %v3727_v0  ;;  %265 = vmatpush.msra.mxu3 %v3729_v1  ;;  %v3735_v3 = vld [vmem:[#allocation7 + $0x68] sm:$0xff]  ;;  %v3737_v4 = vld [vmem:[#allocation7 + $0x50] sm:$0xff]  ;;  %s3629_s13 = smov 32   ;;  %vm388_vm13 = vcmask 261120   ;;  %vm233_vm14 = vcmask 523264  }
  0x21   :  { %v3739_v5 = vld [vmem:[#allocation7 + $0x58] sm:$0xff]  ;;  %v3743_v6 = vld [vmem:[#allocation7 + $0x40] sm:$0xff]  ;;  %v3745_v7 = vld [vmem:[#allocation7 + $0x48] sm:$0xff]  ;;  %s3029_s19 = sshll.u32 %s4724_s11, 4  ;;  %s3030_s19 = int_to_ptr.hbm [resolvable:$true] %s3029_s19 }
  0x22   :  { %246 = vmatpush.msra.mxu2 %v3731_v2  ;;  %266 = vmatpush.msra.mxu3 %v3735_v3  ;;  %v150_v8 = vld [vmem:[#allocation5 + $0x10] sm:$0xff]  ;;  %v151_v9 = vld [vmem:[#allocation5 + $0x18] sm:$0xff]  ;;  %v148_v10 = vld [vmem:[#allocation5] sm:$0xff] }
  0x23   :  { %v149_v11 = vld [vmem:[#allocation5 + $0x8] sm:$0xff]  ;;  %v3749_v12 = vld [vmem:[#allocation7 + $0x30] sm:$0xff]  ;;  %v3751_v13 = vld [vmem:[#allocation7 + $0x38] sm:$0xff]  ;;  %179 = vmatpush.msra.mxu0 %v150_v8  ;;  %202 = vmatpush.msra.mxu1 %v151_v9 }
  0x24   :  { %247 = vmatpush.msra.mxu2 %v3737_v4  ;;  %267 = vmatpush.msra.mxu3 %v3739_v5  ;;  %v146_v14 = vld [vmem:[#allocation2] sm:$0xff]  ;;  %v3755_v15 = vld [vmem:[#allocation7 + $0x20] sm:$0xff]  ;;  %v3757_v16 = vld [vmem:[#allocation7 + $0x28] sm:$0xff] }
  0x25   :  { %180 = vmatpush.msra.mxu0 %v148_v10  ;;  %203 = vmatpush.msra.mxu1 %v149_v11  ;;  %v3761_v17 = vld [vmem:[#allocation7 + $0x10] sm:$0xff]  ;;  %v3763_v18 = vld [vmem:[#allocation7 + $0x18] sm:$0xff]  ;;  %v3769_v19 = vld [vmem:[#allocation7] sm:$0xff] }
  0x26   :  { %248 = vmatpush.msra.mxu2 %v3743_v6  ;;  %268 = vmatpush.msra.mxu3 %v3745_v7  ;;  %v3771_v20 = vld [vmem:[#allocation7 + $0x8] sm:$0xff]  ;;  %v147_v21 = vld [vmem:[#allocation2 + $0x8] sm:$0xff]  ;;  %v3848_v23 = vld [vmem:[%s4716_s3] sm:$0x3]  ;;  %s3627_s3 = smov 64  }
  0x27   :  { %3042 = vmatmul.msk.f32.vlgmr.msra.gmra.mxu0 %vm158_vm0, %v146_v14  ;;  %3044 = vmatmul.msk.f32.vlgmr.msra.gmra.mxu1 %vm158_vm0, %v146_v14  ;;  %v155_v24 = vperm.slane %v3848_v23, 1  ;;  %v227_v27 = vld [vmem:[%s4717_s4] sm:$0x3]  ;;  %v154_v37 = vperm.slane %v3848_v23, 0  ;;  %s3628_s4 = smov 96  }
  0x28   :  { %249 = vmatpush.msra.mxu2 %v3749_v12  ;;  %269 = vmatpush.msra.mxu3 %v3751_v13  ;;  %v3858_v28 = vperm.slane %v227_v27, 1  ;;  %v3867_v32 = vperm.slane %v227_v27, 0 }
  0x29   :  { %421 = vmatpush.msrb.mxu1 %v3729_v1  ;;  %401 = vmatpush.msrb.mxu0 %v3727_v0 }
  0x2a   :  { %250 = vmatpush.msra.mxu2 %v3755_v15  ;;  %270 = vmatpush.msra.mxu3 %v3757_v16 }
  0x2b   :  { %422 = vmatpush.msrb.mxu1 %v3735_v3  ;;  %402 = vmatpush.msrb.mxu0 %v3731_v2 }
  0x2c   :  { %251 = vmatpush.msra.mxu2 %v3761_v17  ;;  %271 = vmatpush.msra.mxu3 %v3763_v18 }
  0x2d   :  { %423 = vmatpush.msrb.mxu1 %v3739_v5  ;;  %403 = vmatpush.msrb.mxu0 %v3737_v4 }
  0x2e   :  { %252 = vmatpush.msra.mxu2 %v3769_v19  ;;  %272 = vmatpush.msra.mxu3 %v3771_v20 }
  0x2f   :  { %253 = vmatmul.f32.vlgmr.msra.gmra.mxu2 %v3626_v22  ;;  %273 = vmatmul.f32.vlgmr.msra.gmra.mxu3 %v3626_v22 }
  0x30   :  { %3043 = vmatmul.msk.f32.gmra.mxu0 %vm158_vm0, %v147_v21  ;;  %3045 = vmatmul.msk.f32.gmra.mxu1 %vm158_vm0, %v147_v21 }
  0x31   :  { %424 = vmatpush.msrb.mxu1 %v3745_v7  ;;  %404 = vmatpush.msrb.mxu0 %v3743_v6 }
  0x32   :  { %567 = vmatpush.msrb.mxu2 %v3727_v0  ;;  %587 = vmatpush.msrb.mxu3 %v3729_v1 }
  0x33   :  { %425 = vmatpush.msrb.mxu1 %v3751_v13  ;;  %405 = vmatpush.msrb.mxu0 %v3749_v12 }
  0x34   :  { %568 = vmatpush.msrb.mxu2 %v3731_v2  ;;  %588 = vmatpush.msrb.mxu3 %v3735_v3 }
  0x35   :  { %426 = vmatpush.msrb.mxu1 %v3757_v16  ;;  %406 = vmatpush.msrb.mxu0 %v3755_v15 }
  0x36   :  { %569 = vmatpush.msrb.mxu2 %v3737_v4  ;;  %589 = vmatpush.msrb.mxu3 %v3739_v5 }
  0x37   :  { %427 = vmatpush.msrb.mxu1 %v3763_v18  ;;  %407 = vmatpush.msrb.mxu0 %v3761_v17 }
  0x38   :  { %570 = vmatpush.msrb.mxu2 %v3743_v6  ;;  %590 = vmatpush.msrb.mxu3 %v3745_v7 }
  0x39   :  { %428 = vmatpush.msrb.mxu1 %v3771_v20  ;;  %408 = vmatpush.msrb.mxu0 %v3769_v19 }
  0x3a   :  { %571 = vmatpush.msrb.mxu2 %v3749_v12  ;;  %591 = vmatpush.msrb.mxu3 %v3751_v13 }
  0x3b   :  { %732 = vmatpush.msra.mxu0 %v3727_v0  ;;  %752 = vmatpush.msra.mxu1 %v3729_v1 }
  0x3c   :  { %572 = vmatpush.msrb.mxu2 %v3755_v15  ;;  %592 = vmatpush.msrb.mxu3 %v3757_v16 }
  0x3d   :  { %733 = vmatpush.msra.mxu0 %v3731_v2  ;;  %753 = vmatpush.msra.mxu1 %v3735_v3 }
  0x3e   :  { %573 = vmatpush.msrb.mxu2 %v3761_v17  ;;  %593 = vmatpush.msrb.mxu3 %v3763_v18 }
  0x3f   :  { %734 = vmatpush.msra.mxu0 %v3737_v4  ;;  %754 = vmatpush.msra.mxu1 %v3739_v5 }
  0x40   :  { %574 = vmatpush.msrb.mxu2 %v3769_v19  ;;  %594 = vmatpush.msrb.mxu3 %v3771_v20 }
  0x41   :  { %735 = vmatpush.msra.mxu0 %v3743_v6  ;;  %755 = vmatpush.msra.mxu1 %v3745_v7 }
  0x42   :  { %893 = vmatpush.msra.mxu2 %v3727_v0  ;;  %913 = vmatpush.msra.mxu3 %v3729_v1 }
  0x43   :  { %736 = vmatpush.msra.mxu0 %v3749_v12  ;;  %756 = vmatpush.msra.mxu1 %v3751_v13 }
  0x44   :  { %894 = vmatpush.msra.mxu2 %v3731_v2  ;;  %914 = vmatpush.msra.mxu3 %v3735_v3 }
  0x45   :  { %737 = vmatpush.msra.mxu0 %v3755_v15  ;;  %757 = vmatpush.msra.mxu1 %v3757_v16 }
  0x46   :  { %895 = vmatpush.msra.mxu2 %v3737_v4  ;;  %915 = vmatpush.msra.mxu3 %v3739_v5 }
  0x47   :  { %738 = vmatpush.msra.mxu0 %v3761_v17  ;;  %758 = vmatpush.msra.mxu1 %v3763_v18 }
  0x48   :  { %896 = vmatpush.msra.mxu2 %v3743_v6  ;;  %916 = vmatpush.msra.mxu3 %v3745_v7 }
  0x49   :  { %739 = vmatpush.msra.mxu0 %v3769_v19  ;;  %759 = vmatpush.msra.mxu1 %v3771_v20 }
  0x4a   :  { %897 = vmatpush.msra.mxu2 %v3749_v12  ;;  %917 = vmatpush.msra.mxu3 %v3751_v13 }
  0x4c   :  { %898 = vmatpush.msra.mxu2 %v3755_v15  ;;  %918 = vmatpush.msra.mxu3 %v3757_v16 }
  0x4e   :  { %899 = vmatpush.msra.mxu2 %v3761_v17  ;;  %919 = vmatpush.msra.mxu3 %v3763_v18 }
  0x50   :  { %900 = vmatpush.msra.mxu2 %v3769_v19  ;;  %920 = vmatpush.msra.mxu3 %v3771_v20 }
  0xa4   :  { %v205_v25 = vpop.f32.mrf.mxu1  ;;  %v182_v35 = vpop.f32.mrf.mxu0 }
  0xa5   :  { %v3853_v26 = vadd.f32 %v205_v25, %v155_v24  ;;  %v3875_v41 = vadd.f32 %v182_v35, %v154_v37 }
  0xad   :  { %v185_v36 = vpop.f32.mrf.mxu0 }
  0xae   :  { %v3872_v39 = vadd.f32 %v185_v36, %v154_v37 }
  0xb2   :  { %v274_v29 = vpop.f32.mrf.mxu3  ;;  %v254_v33 = vpop.f32.mrf.mxu2 }
  0xb3   :  { %v3861_v30 = vadd.f32 %v274_v29, %v3858_v28  ;;  %v255_v34 = vadd.f32 %v254_v33, %v3867_v32  ;;  %v208_v33 = vpop.f32.mrf.mxu1 }
  0xb5   :  { %v339_v31 = vrot.slane %v3861_v30, 2  ;;  %v316_v38 = vrot.slane %v255_v34, 2  ;;  %v277_v43 = vadd.f32 %v255_v34, %v3875_v41 }
  0xb7   :  { %361 = vrot.lane.b32.xlu0 %v339_v31, %s3627_s3  ;;  %v318_v40 = vadd.f32 %v316_v38, %v3872_v39  ;;  %v3046_v44 = vmul.f32 -1.442695, %v277_v43 }
  0xb9   :  { %v3047_v42 = vmul.f32 -1.442695, %v318_v40 }
  0xbb   :  { %3144 = vpow2.f32 %v3047_v42 }
  0xbc   :  { %3146 = vpow2.f32 %v3046_v44 }
  0xbf   :  { %298 = vrot.lane.b32.xlu0 %v255_v34, %s3627_s3  ;;  %v3882_v34 = vadd.f32 %v208_v33, %v155_v24 }
  0xc1   :  { %v3145_v45 = vpop.eup %3144  ;;  %v341_v23 = vadd.f32 %v339_v31, %v3882_v34 }
  0xc2   :  { %v322_v46 = vadd.f32 1.0, %v3145_v45  ;;  %v3147_v47 = vpop.eup %3146 }
  0xc3   :  { %v281_v48 = vadd.f32 1.0, %v3147_v47  ;;  %v3048_v24 = vmul.f32 -1.442695, %v341_v23 }
  0xc4   :  { %3148 = vrcp.f32 %v322_v46  ;;  %vm328_vm1 = vweird.f32 %v322_v46  ;;  %v334_v57 = vand.u32 2147483648, %v322_v46  ;;  %v332_v58 = vand.u32 2147483647, %v322_v46 }
  0xc5   :  { %3150 = vrcp.f32 %v281_v48  ;;  %vm287_vm5 = vweird.f32 %v281_v48  ;;  %v293_v10 = vand.u32 2147483648, %v281_v48  ;;  %v291_v11 = vand.u32 2147483647, %v281_v48 }
  0xc6   :  { %v335_v61 = vor.u32 1.1754944e-38, %v334_v57  ;;  %vm333_vm4 = vcmp.eq.f32.partialorder %v332_v58, 8.507059e+37 }
  0xc7   :  { %v294_v21 = vor.u32 1.1754944e-38, %v293_v10  ;;  %vm292_vm8 = vcmp.eq.f32.partialorder %v291_v11, 8.507059e+37 }
  0xca   :  { %v3149_v49 = vpop.eup %3148 }
  0xcb   :  { %v324_v50 = vmul.f32 %v3149_v49, %v322_v46  ;;  %v3151_v52 = vpop.eup %3150  ;;  %vm329_vm2 = vweird.f32 %v3149_v49 }
  0xcc   :  { %v283_v54 = vmul.f32 %v3151_v52, %v281_v48  ;;  %vm330_vm3 = vmor %vm328_vm1, %vm329_vm2  ;;  %vm288_vm6 = vweird.f32 %v3151_v52 }
  0xcd   :  { %v325_v51 = vsub.f32 1.0, %v324_v50  ;;  %vm289_vm7 = vmor %vm287_vm5, %vm288_vm6 }
  0xce   :  { %v284_v56 = vsub.f32 1.0, %v283_v54 }
  0xcf   :  { %v326_v53 = vmul.f32 %v3149_v49, %v325_v51 }
  0xd0   :  { %v285_v60 = vmul.f32 %v3151_v52, %v284_v56 }
  0xd1   :  { %v327_v55 = vadd.f32 %v3149_v49, %v326_v53 }
  0xd2   :  { %v286_v9 = vadd.f32 %v3151_v52, %v285_v60 }
  0xd3   :  { %v331_v59 = vsel %vm330_vm3, %v3149_v49, %v327_v55 }
  0xd4   :  { %v336_v63 = vsel %vm333_vm4, %v335_v61, %v331_v59  ;;  %v290_v14 = vsel %vm289_vm7, %v3151_v52, %v286_v9 }
  0xd5   :  { %v295_v27 = vsel %vm292_vm8, %v294_v21, %v290_v14 }
  0xd6   :  { %v308_v59 = vsub.f32 1.0, %v295_v27  ;;  %v314_v61 = vmul.f32 0.0, %v295_v27 }
 0x129   :  { %v362_v62 = vpop.permute.xlu0 %361 }
 0x12a   :  { %v364_v8 = vmul.f32 %v362_v62, %v336_v63 }
 0x12c   :  { %366 = vrot.lane.b32.xlu1 %v364_v8, %s3627_s3 }
 0x131   :  { %v299_v25 = vpop.permute.xlu0 %298 }
 0x132   :  { %v301_v29 = vmul.f32 %v299_v25, %v295_v27 }
 0x134   :  { %303 = vrot.lane.b32.xlu1 %v301_v29, %s3627_s3 }
 0x19e   :  { %v367_v35 = vpop.permute.xlu1 %366 }
 0x19f   :  { %v369_v36 = vadd.f32 %v367_v35, %v3882_v34 }
 0x1a1   :  { %3152 = vtanh.f32 %v369_v36 }
 0x1a6   :  { %v304_v37 = vpop.permute.xlu1 %303 }
 0x1a7   :  { %v3153_v38 = vpop.eup %3152  ;;  %v306_v40 = vadd.f32 %v304_v37, %v3875_v41 }
 0x1a8   :  { %373 = vrot.lane.b32.xlu2 %v3153_v38, %s3628_s4 }
 0x1a9   :  { %3154 = vtanh.f32 %v306_v40 }
 0x1aa   :  { %3156 = vpow2.f32 %v3048_v24 }
 0x1af   :  { %v3155_v42 = vpop.eup %3154 }
 0x1b0   :  { %310 = vrot.lane.b32.xlu2 %v3155_v42, %s3628_s4  ;;  %v3157_v43 = vpop.eup %3156 }
 0x1b1   :  { %v345_v44 = vadd.f32 1.0, %v3157_v43 }
 0x1b3   :  { %3158 = vrcp.f32 %v345_v44  ;;  %v357_v50 = vand.u32 2147483648, %v345_v44  ;;  %vm351_vm10 = vweird.f32 %v345_v44  ;;  %v355_v51 = vand.u32 2147483647, %v345_v44 }
 0x1b5   :  { %v358_v53 = vor.u32 1.1754944e-38, %v357_v50  ;;  %vm356_vm12 = vcmp.eq.f32.partialorder %v355_v51, 8.507059e+37 }
 0x1b9   :  { %v3159_v45 = vpop.eup %3158 }
 0x1ba   :  { %v347_v46 = vmul.f32 %v3159_v45, %v345_v44  ;;  %vm352_vm9 = vweird.f32 %v3159_v45 }
 0x1bb   :  { %vm353_vm11 = vmor %vm351_vm10, %vm352_vm9 }
 0x1bc   :  { %v348_v47 = vsub.f32 1.0, %v347_v46 }
 0x1be   :  { %v349_v48 = vmul.f32 %v3159_v45, %v348_v47 }
 0x1c0   :  { %v350_v49 = vadd.f32 %v3159_v45, %v349_v48 }
 0x1c2   :  { %v354_v52 = vsel %vm353_vm11, %v3159_v45, %v350_v49 }
 0x1c3   :  { %v359_v30 = vsel %vm356_vm12, %v358_v53, %v354_v52 }
 0x1c4   :  { %v371_v31 = vsub.f32 1.0, %v359_v30  ;;  %v377_v55 = vmul.f32 0.0, %v359_v30 }
 0x202   :  { %v374_v54 = vpop.permute.xlu2 %373 }
 0x203   :  { %v376_v56 = vmul.f32 %v374_v54, %v371_v31 }
 0x205   :  { %v3891_v57 = vadd.f32 %v377_v55, %v376_v56 }
 0x207   :  { %v384_v58 = vrot.slane %v3891_v57, 6 }
 0x209   :  { %385 = vrot.lane.b32.xlu1 %v384_v58, %s3629_s13 }
 0x20a   :  { %v311_v60 = vpop.permute.xlu2 %310 }
 0x20b   :  { %v313_v62 = vmul.f32 %v311_v60, %v308_v59 }
 0x20d   :  { %v3895_v63 = vadd.f32 %v314_v61, %v313_v62 }
 0x20f   :  { %380 = vrot.lane.b32.xlu0 %v3895_v63, %s3628_s4 }
 0x27b   :  { %v386_v8 = vpop.permute.xlu1 %385 }
 0x281   :  { %v381_v9 = vpop.permute.xlu0 %380 }
 0x282   :  { %v3900_v10 = vsel %vm388_vm13, %v381_v9, %v386_v8 }
 0x283   :  { %3049 = vmatmul.msk.f32.vlgmr.msrb.gmra.mxu0 %vm233_vm14, %v3900_v10  ;;  %3050 = vmatmul.msk.f32.vlgmr.msrb.gmra.mxu1 %vm233_vm14, %v3900_v10  ;;  %v539_v55 = vrot.slane %v3900_v10, 4 }
 0x284   :  { %1054 = vmatpush.msrb.mxu0 %v3727_v0  ;;  %1074 = vmatpush.msrb.mxu1 %v3729_v1 }
 0x286   :  { %1055 = vmatpush.msrb.mxu0 %v3731_v2  ;;  %1075 = vmatpush.msrb.mxu1 %v3735_v3 }
 0x288   :  { %1056 = vmatpush.msrb.mxu0 %v3737_v4  ;;  %1076 = vmatpush.msrb.mxu1 %v3739_v5 }
 0x28a   :  { %1057 = vmatpush.msrb.mxu0 %v3743_v6  ;;  %1077 = vmatpush.msrb.mxu1 %v3745_v7 }
 0x28c   :  { %1058 = vmatpush.msrb.mxu0 %v3749_v12  ;;  %1078 = vmatpush.msrb.mxu1 %v3751_v13 }
 0x28e   :  { %1059 = vmatpush.msrb.mxu0 %v3755_v15  ;;  %1079 = vmatpush.msrb.mxu1 %v3757_v16 }
 0x290   :  { %1060 = vmatpush.msrb.mxu0 %v3761_v17  ;;  %1080 = vmatpush.msrb.mxu1 %v3763_v18 }
 0x292   :  { %1061 = vmatpush.msrb.mxu0 %v3769_v19  ;;  %1081 = vmatpush.msrb.mxu1 %v3771_v20 }
 0x300   :  { %v410_v11 = vpop.f32.mrf.mxu0  ;;  %v430_v14 = vpop.f32.mrf.mxu1 }
 0x301   :  { %v411_v21 = vadd.f32 %v410_v11, %v3867_v32  ;;  %v3924_v25 = vadd.f32 %v430_v14, %v3858_v28 }
 0x303   :  { %v434_v27 = vrot.slane %v411_v21, 6  ;;  %v501_v29 = vrot.slane %v3924_v25, 4  ;;  %v478_v33 = vrot.slane %v411_v21, 4 }
 0x305   :  { %523 = vrot.lane.b32.xlu2 %v501_v29, %s3627_s3  ;;  %456 = vrot.lane.b32.xlu0 %v434_v27, %s3627_s3  ;;  %v480_v35 = vadd.f32 %v478_v33, %v3872_v39  ;;  %v436_v40 = vadd.f32 %v434_v27, %v3875_v41 }
 0x307   :  { %v3052_v36 = vmul.f32 -1.442695, %v480_v35  ;;  %v3051_v23 = vmul.f32 -1.442695, %v436_v40  ;;  %v503_v40 = vadd.f32 %v501_v29, %v3882_v34 }
 0x309   :  { %3160 = vpow2.f32 %v3052_v36 }
 0x30f   :  { %v3161_v37 = vpop.eup %3160 }
 0x310   :  { %v484_v38 = vadd.f32 1.0, %v3161_v37 }
 0x312   :  { %3162 = vrcp.f32 %v484_v38  ;;  %v496_v48 = vand.u32 2147483648, %v484_v38  ;;  %vm490_vm0 = vweird.f32 %v484_v38  ;;  %v494_v49 = vand.u32 2147483647, %v484_v38 }
 0x313   :  { %3164 = vpow2.f32 %v3051_v23 }
 0x314   :  { %v497_v51 = vor.u32 1.1754944e-38, %v496_v48  ;;  %vm495_vm2 = vcmp.eq.f32.partialorder %v494_v49, 8.507059e+37 }
 0x318   :  { %v3163_v42 = vpop.eup %3162 }
 0x319   :  { %v486_v24 = vmul.f32 %v3163_v42, %v484_v38  ;;  %v3165_v44 = vpop.eup %3164  ;;  %vm491_vm15 = vweird.f32 %v3163_v42  ;;  %v472_v38 = vrot.slane %v3900_v10, 6 }
 0x31a   :  { %v440_v46 = vadd.f32 1.0, %v3165_v44  ;;  %vm492_vm1 = vmor %vm490_vm0, %vm491_vm15 }
 0x31b   :  { %v487_v43 = vsub.f32 1.0, %v486_v24 }
 0x31c   :  { %3166 = vrcp.f32 %v440_v46  ;;  %v452_v60 = vand.u32 2147483648, %v440_v46  ;;  %vm446_vm4 = vweird.f32 %v440_v46  ;;  %v450_v61 = vand.u32 2147483647, %v440_v46 }
 0x31d   :  { %v488_v45 = vmul.f32 %v3163_v42, %v487_v43 }
 0x31e   :  { %v453_v8 = vor.u32 1.1754944e-38, %v452_v60  ;;  %vm451_vm6 = vcmp.eq.f32.partialorder %v450_v61, 8.507059e+37 }
 0x31f   :  { %v489_v47 = vadd.f32 %v3163_v42, %v488_v45 }
 0x321   :  { %v493_v50 = vsel %vm492_vm1, %v3163_v42, %v489_v47  ;;  %v3053_v42 = vmul.f32 -1.442695, %v503_v40 }
 0x322   :  { %v498_v53 = vsel %vm495_vm2, %v497_v51, %v493_v50  ;;  %v3167_v31 = vpop.eup %3166 }
 0x323   :  { %v442_v54 = vmul.f32 %v3167_v31, %v440_v46  ;;  %vm447_vm3 = vweird.f32 %v3167_v31 }
 0x324   :  { %vm448_vm5 = vmor %vm446_vm4, %vm447_vm3 }
 0x325   :  { %v443_v56 = vsub.f32 1.0, %v442_v54 }
 0x327   :  { %v444_v58 = vmul.f32 %v3167_v31, %v443_v56 }
 0x329   :  { %v445_v59 = vadd.f32 %v3167_v31, %v444_v58 }
 0x32b   :  { %v449_v62 = vsel %vm448_vm5, %v3167_v31, %v445_v59 }
 0x32c   :  { %v454_v11 = vsel %vm451_vm6, %v453_v8, %v449_v62 }
 0x32d   :  { %v466_v56 = vsub.f32 1.0, %v454_v11 }
 0x35f   :  { %v524_v52 = vpop.permute.xlu2 %523 }
 0x360   :  { %v526_v30 = vmul.f32 %v524_v52, %v498_v53 }
 0x362   :  { %528 = vrot.lane.b32.xlu1 %v526_v30, %s3627_s3 }
 0x36a   :  { %540 = vrot.lane.b32.xlu1 %v539_v55, %s3628_s4 }
 0x377   :  { %v457_v9 = vpop.permute.xlu0 %456 }
 0x378   :  { %v459_v14 = vmul.f32 %v457_v9, %v454_v11 }
 0x37a   :  { %461 = vrot.lane.b32.xlu2 %v459_v14, %s3627_s3 }
 0x3d4   :  { %v529_v21 = vpop.permute.xlu1 %528  ;;  %v462_v27 = vpop.permute.xlu2 %461 }
 0x3d5   :  { %v531_v33 = vadd.f32 %v529_v21, %v3882_v34  ;;  %v464_v35 = vadd.f32 %v462_v27, %v3875_v41 }
 0x3d7   :  { %3168 = vtanh.f32 %v531_v33 }
 0x3d8   :  { %3170 = vtanh.f32 %v464_v35 }
 0x3d9   :  { %3172 = vpow2.f32 %v3053_v42 }
 0x3dc   :  { %v541_v29 = vpop.permute.xlu1 %540 }
 0x3dd   :  { %v3169_v36 = vpop.eup %3168 }
 0x3de   :  { %v3171_v37 = vpop.eup %3170  ;;  %535 = vrot.lane.b32.xlu0 %v3169_v36, %s3628_s4 }
 0x3df   :  { %468 = vrot.lane.b32.xlu2 %v3171_v37, %s3628_s4  ;;  %v3173_v23 = vpop.eup %3172 }
 0x3e0   :  { %v507_v24 = vadd.f32 1.0, %v3173_v23 }
 0x3e2   :  { %3174 = vrcp.f32 %v507_v24  ;;  %v519_v48 = vand.u32 2147483648, %v507_v24  ;;  %vm513_vm8 = vweird.f32 %v507_v24  ;;  %v517_v10 = vand.u32 2147483647, %v507_v24 }
 0x3e4   :  { %v520_v50 = vor.u32 1.1754944e-38, %v519_v48  ;;  %vm518_vm10 = vcmp.eq.f32.partialorder %v517_v10, 8.507059e+37 }
 0x3e6   :  { %473 = vrot.lane.b32.xlu0 %v472_v38, %s3629_s13 }
 0x3e8   :  { %v3175_v43 = vpop.eup %3174 }
 0x3e9   :  { %v509_v44 = vmul.f32 %v3175_v43, %v507_v24  ;;  %vm514_vm7 = vweird.f32 %v3175_v43 }
 0x3ea   :  { %vm515_vm9 = vmor %vm513_vm8, %vm514_vm7 }
 0x3eb   :  { %v510_v45 = vsub.f32 1.0, %v509_v44 }
 0x3ed   :  { %v511_v46 = vmul.f32 %v3175_v43, %v510_v45 }
 0x3ef   :  { %v512_v47 = vadd.f32 %v3175_v43, %v511_v46 }
 0x3f1   :  { %v516_v49 = vsel %vm515_vm9, %v3175_v43, %v512_v47  ;;  %vm1531_vm9 = vcmask 1041408  }
 0x3f2   :  { %v521_v25 = vsel %vm518_vm10, %v520_v50, %v516_v49  ;;  %vm1533_vm10 = vcmask 1043456  }
 0x3f3   :  { %v533_v51 = vsub.f32 1.0, %v521_v25  ;;  %v543_v53 = vmul.f32 %v541_v29, %v521_v25 }
 0x439   :  { %v469_v55 = vpop.permute.xlu2 %468 }
 0x43a   :  { %v471_v59 = vmul.f32 %v469_v55, %v466_v56 }
 0x450   :  { %v536_v52 = vpop.permute.xlu0 %535 }
 0x451   :  { %v538_v30 = vmul.f32 %v536_v52, %v533_v51 }
 0x453   :  { %v3946_v31 = vadd.f32 %v543_v53, %v538_v30 }
 0x455   :  { %v550_v54 = vrot.slane %v3946_v31, 2 }
 0x457   :  { %551 = vrot.lane.b32.xlu2 %v550_v54, %s3629_s13 }
 0x458   :  { %v474_v58 = vpop.permute.xlu0 %473 }
 0x459   :  { %v476_v60 = vmul.f32 %v474_v58, %v454_v11 }
 0x45b   :  { %v3950_v61 = vadd.f32 %v476_v60, %v471_v59 }
 0x45d   :  { %546 = vrot.lane.b32.xlu1 %v3950_v61, %s3628_s4 }
 0x4b1   :  { %v552_v62 = vpop.permute.xlu2 %551 }
 0x4cf   :  { %v547_v8 = vpop.permute.xlu1 %546 }
 0x4d0   :  { %v3955_v9 = vsel %vm388_vm13, %v547_v8, %v552_v62 }
 0x4d1   :  { %v556_v14 = vrot.slane %v3955_v9, 2 }
 0x4d3   :  { %3054 = vmatmul.msk.f32.vlgmr.msrb.gmra.mxu2 %vm233_vm14, %v556_v14  ;;  %3055 = vmatmul.msk.f32.vlgmr.msrb.gmra.mxu3 %vm233_vm14, %v556_v14 }
 0x4d4   :  { %1220 = vmatpush.msrb.mxu2 %v3727_v0  ;;  %1240 = vmatpush.msrb.mxu3 %v3729_v1 }
 0x4d6   :  { %1221 = vmatpush.msrb.mxu2 %v3731_v2  ;;  %1241 = vmatpush.msrb.mxu3 %v3735_v3 }
 0x4d8   :  { %1222 = vmatpush.msrb.mxu2 %v3737_v4  ;;  %1242 = vmatpush.msrb.mxu3 %v3739_v5 }
 0x4da   :  { %1223 = vmatpush.msrb.mxu2 %v3743_v6  ;;  %1243 = vmatpush.msrb.mxu3 %v3745_v7 }
 0x4dc   :  { %1224 = vmatpush.msrb.mxu2 %v3749_v12  ;;  %1244 = vmatpush.msrb.mxu3 %v3751_v13 }
 0x4de   :  { %1225 = vmatpush.msrb.mxu2 %v3755_v15  ;;  %1245 = vmatpush.msrb.mxu3 %v3757_v16 }
 0x4e0   :  { %1226 = vmatpush.msrb.mxu2 %v3761_v17  ;;  %1246 = vmatpush.msrb.mxu3 %v3763_v18 }
 0x4e2   :  { %1227 = vmatpush.msrb.mxu2 %v3769_v19  ;;  %1247 = vmatpush.msrb.mxu3 %v3771_v20 }
 0x556   :  { %v576_v11 = vpop.f32.mrf.mxu2  ;;  %v596_v21 = vpop.f32.mrf.mxu3 }
 0x557   :  { %v577_v27 = vadd.f32 %v576_v11, %v3867_v32  ;;  %v3978_v33 = vadd.f32 %v596_v21, %v3858_v28 }
 0x559   :  { %v600_v35 = vrot.slane %v577_v27, 4  ;;  %v667_v36 = vrot.slane %v3978_v33, 6  ;;  %v644_v37 = vrot.slane %v577_v27, 6 }
 0x55b   :  { %689 = vrot.lane.b32.xlu0 %v667_v36, %s3627_s3  ;;  %622 = vrot.lane.b32.xlu1 %v600_v35, %s3627_s3  ;;  %v602_v38 = vadd.f32 %v600_v35, %v3875_v41  ;;  %v646_v40 = vadd.f32 %v644_v37, %v3872_v39 }
 0x55d   :  { %v3056_v42 = vmul.f32 -1.442695, %v602_v38  ;;  %v3057_v23 = vmul.f32 -1.442695, %v646_v40  ;;  %v638_v40 = vrot.slane %v3955_v9, 6 }
 0x55f   :  { %3176 = vpow2.f32 %v3056_v42 }
 0x560   :  { %3178 = vpow2.f32 %v3057_v23 }
 0x565   :  { %v3177_v24 = vpop.eup %3176 }
 0x566   :  { %v3179_v43 = vpop.eup %3178  ;;  %v606_v44 = vadd.f32 1.0, %v3177_v24 }
 0x567   :  { %v650_v45 = vadd.f32 1.0, %v3179_v43  ;;  %v669_v43 = vadd.f32 %v667_v36, %v3882_v34 }
 0x568   :  { %3180 = vrcp.f32 %v606_v44  ;;  %vm612_vm15 = vweird.f32 %v606_v44  ;;  %v618_v30 = vand.u32 2147483648, %v606_v44  ;;  %v616_v55 = vand.u32 2147483647, %v606_v44 }
 0x569   :  { %3182 = vrcp.f32 %v650_v45  ;;  %v662_v53 = vand.u32 2147483648, %v650_v45  ;;  %vm656_vm0 = vweird.f32 %v650_v45  ;;  %v660_v54 = vand.u32 2147483647, %v650_v45 }
 0x56a   :  { %v619_v60 = vor.u32 1.1754944e-38, %v618_v30  ;;  %vm617_vm4 = vcmp.eq.f32.partialorder %v616_v55, 8.507059e+37 }
 0x56b   :  { %v663_v59 = vor.u32 1.1754944e-38, %v662_v53  ;;  %vm661_vm3 = vcmp.eq.f32.partialorder %v660_v54, 8.507059e+37 }
 0x56e   :  { %v3181_v46 = vpop.eup %3180 }
 0x56f   :  { %v3183_v47 = vpop.eup %3182  ;;  %v608_v10 = vmul.f32 %v3181_v46, %v606_v44  ;;  %vm613_vm11 = vweird.f32 %v3181_v46  ;;  %v3058_v44 = vmul.f32 -1.442695, %v669_v43 }
 0x570   :  { %v652_v48 = vmul.f32 %v3183_v47, %v650_v45  ;;  %vm657_vm12 = vweird.f32 %v3183_v47  ;;  %vm614_vm1 = vmor %vm612_vm15, %vm613_vm11 }
 0x571   :  { %v609_v50 = vsub.f32 1.0, %v608_v10  ;;  %vm658_vm2 = vmor %vm656_vm0, %vm657_vm12 }
 0x572   :  { %v653_v49 = vsub.f32 1.0, %v652_v48 }
 0x573   :  { %v610_v29 = vmul.f32 %v3181_v46, %v609_v50 }
 0x574   :  { %v654_v25 = vmul.f32 %v3183_v47, %v653_v49 }
 0x575   :  { %v611_v52 = vadd.f32 %v3181_v46, %v610_v29 }
 0x576   :  { %v655_v51 = vadd.f32 %v3183_v47, %v654_v25 }
 0x577   :  { %v615_v58 = vsel %vm614_vm1, %v3181_v46, %v611_v52 }
 0x578   :  { %v659_v56 = vsel %vm658_vm2, %v3183_v47, %v655_v51  ;;  %v620_v11 = vsel %vm617_vm4, %v619_v60, %v615_v58 }
 0x579   :  { %v664_v8 = vsel %vm661_vm3, %v663_v59, %v659_v56  ;;  %v632_v59 = vsub.f32 1.0, %v620_v11 }
 0x5cd   :  { %v690_v62 = vpop.permute.xlu0 %689  ;;  %v623_v14 = vpop.permute.xlu1 %622 }
 0x5ce   :  { %v692_v21 = vmul.f32 %v690_v62, %v664_v8  ;;  %v625_v27 = vmul.f32 %v623_v14, %v620_v11 }
 0x5d0   :  { %694 = vrot.lane.b32.xlu2 %v692_v21, %s3627_s3  ;;  %627 = vrot.lane.b32.xlu0 %v625_v27, %s3627_s3  ;;  %v1532_v21 = vsel %vm1531_vm9, %v3895_v63, %v3950_v61 }
 0x5d8   :  { %705 = vrot.lane.b32.xlu2 %v3955_v9, %s3628_s4 }
 0x62a   :  { %v695_v35 = vpop.permute.xlu2 %694 }
 0x62b   :  { %v697_v37 = vadd.f32 %v695_v35, %v3882_v34 }
 0x62d   :  { %3184 = vtanh.f32 %v697_v37 }
 0x632   :  { %v706_v36 = vpop.permute.xlu2 %705 }
 0x633   :  { %v3185_v38 = vpop.eup %3184 }
 0x634   :  { %701 = vrot.lane.b32.xlu1 %v3185_v38, %s3628_s4 }
 0x63c   :  { %639 = vrot.lane.b32.xlu1 %v638_v40, %s3629_s13 }
 0x642   :  { %v628_v42 = vpop.permute.xlu0 %627 }
 0x643   :  { %v630_v23 = vadd.f32 %v628_v42, %v3875_v41 }
 0x645   :  { %3186 = vtanh.f32 %v630_v23 }
 0x646   :  { %3188 = vpow2.f32 %v3058_v44 }
 0x64b   :  { %v3187_v24 = vpop.eup %3186 }
 0x64c   :  { %634 = vrot.lane.b32.xlu0 %v3187_v24, %s3628_s4  ;;  %v3189_v45 = vpop.eup %3188 }
 0x64d   :  { %v673_v46 = vadd.f32 1.0, %v3189_v45 }
 0x64f   :  { %3190 = vrcp.f32 %v673_v46  ;;  %v685_v50 = vand.u32 2147483648, %v673_v46  ;;  %vm679_vm6 = vweird.f32 %v673_v46  ;;  %v683_v25 = vand.u32 2147483647, %v673_v46 }
 0x651   :  { %v686_v51 = vor.u32 1.1754944e-38, %v685_v50  ;;  %vm684_vm8 = vcmp.eq.f32.partialorder %v683_v25, 8.507059e+37 }
 0x655   :  { %v3191_v47 = vpop.eup %3190 }
 0x656   :  { %v675_v9 = vmul.f32 %v3191_v47, %v673_v46  ;;  %vm680_vm5 = vweird.f32 %v3191_v47 }
 0x657   :  { %vm681_vm7 = vmor %vm679_vm6, %vm680_vm5 }
 0x658   :  { %v676_v48 = vsub.f32 1.0, %v675_v9 }
 0x65a   :  { %v677_v10 = vmul.f32 %v3191_v47, %v676_v48 }
 0x65c   :  { %v678_v49 = vadd.f32 %v3191_v47, %v677_v10 }
 0x65e   :  { %v682_v29 = vsel %vm681_vm7, %v3191_v47, %v678_v49 }
 0x65f   :  { %v687_v33 = vsel %vm684_vm8, %v686_v51, %v682_v29 }
 0x660   :  { %v699_v52 = vsub.f32 1.0, %v687_v33  ;;  %v708_v30 = vmul.f32 %v706_v36, %v687_v33 }
 0x6a6   :  { %v702_v53 = vpop.permute.xlu1 %701 }
 0x6a7   :  { %v704_v54 = vmul.f32 %v702_v53, %v699_v52 }
 0x6a9   :  { %v4000_v55 = vadd.f32 %v708_v30, %v704_v54 }
 0x6ab   :  { %v715_v56 = vrot.slane %v4000_v55, 6 }
 0x6ad   :  { %716 = vrot.lane.b32.xlu0 %v715_v56, %s3629_s13 }
 0x6ae   :  { %v640_v58 = vpop.permute.xlu1 %639 }
 0x6af   :  { %v642_v62 = vmul.f32 %v640_v58, %v620_v11 }
 0x6be   :  { %v635_v60 = vpop.permute.xlu0 %634 }
 0x6bf   :  { %v637_v8 = vmul.f32 %v635_v60, %v632_v59 }
 0x6c1   :  { %v643_v14 = vadd.f32 %v642_v62, %v637_v8 }
 0x6c3   :  { %711 = vrot.lane.b32.xlu2 %v643_v14, %s3628_s4  ;;  %v4009_v27 = vsel %vm1533_vm10, %v1532_v21, %v643_v14 }
 0x71d   :  { %v712_v35 = vpop.permute.xlu2 %711 }
 0x71f   :  { %v717_v37 = vpop.permute.xlu0 %716 }
 0x720   :  { %v4012_v38 = vsel %vm388_vm13, %v712_v35, %v717_v37 }
 0x721   :  { %v4015_v11 = vrot.slane %v4012_v38, 4  ;;  %v803_v59 = vrot.slane %v4012_v38, 6 }
 0x723   :  { %3059 = vmatmul.msk.f32.vlgmr.msra.gmra.mxu0 %vm233_vm14, %v4015_v11  ;;  %3060 = vmatmul.msk.f32.vlgmr.msra.gmra.mxu1 %vm233_vm14, %v4015_v11 }
 0x724   :  { %1385 = vmatpush.msra.mxu0 %v3727_v0  ;;  %1405 = vmatpush.msra.mxu1 %v3729_v1 }
 0x726   :  { %1386 = vmatpush.msra.mxu0 %v3731_v2  ;;  %1406 = vmatpush.msra.mxu1 %v3735_v3 }
 0x728   :  { %1387 = vmatpush.msra.mxu0 %v3737_v4  ;;  %1407 = vmatpush.msra.mxu1 %v3739_v5 }
 0x72a   :  { %1388 = vmatpush.msra.mxu0 %v3743_v6  ;;  %1408 = vmatpush.msra.mxu1 %v3745_v7 }
 0x72c   :  { %1389 = vmatpush.msra.mxu0 %v3749_v12  ;;  %1409 = vmatpush.msra.mxu1 %v3751_v13 }
 0x72e   :  { %1390 = vmatpush.msra.mxu0 %v3755_v15  ;;  %1410 = vmatpush.msra.mxu1 %v3757_v16 }
 0x730   :  { %1391 = vmatpush.msra.mxu0 %v3761_v17  ;;  %1411 = vmatpush.msra.mxu1 %v3763_v18 }
 0x732   :  { %1392 = vmatpush.msra.mxu0 %v3769_v19  ;;  %1412 = vmatpush.msra.mxu1 %v3771_v20 }
 0x7a0   :  { %v741_v0 = vpop.f32.mrf.mxu0  ;;  %v761_v1 = vpop.f32.mrf.mxu1 }
 0x7a1   :  { %v742_v2 = vadd.f32 %v741_v0, %v3867_v32  ;;  %v4039_v3 = vadd.f32 %v761_v1, %v3858_v28 }
 0x7a3   :  { %v765_v4 = vrot.slane %v742_v2, 2  ;;  %850 = vrot.lane.b32.xlu1 %v4039_v3, %s3627_s3  ;;  %v809_v13 = vadd.f32 %v742_v2, %v3872_v39  ;;  %v829_v60 = vadd.f32 %v4039_v3, %v3882_v34 }
 0x7a5   :  { %787 = vrot.lane.b32.xlu2 %v765_v4, %s3627_s3  ;;  %v767_v5 = vadd.f32 %v765_v4, %v3875_v41  ;;  %v3062_v15 = vmul.f32 -1.442695, %v809_v13  ;;  %v3063_v62 = vmul.f32 -1.442695, %v829_v60 }
 0x7a7   :  { %v3061_v6 = vmul.f32 -1.442695, %v767_v5 }
 0x7a9   :  { %3192 = vpow2.f32 %v3061_v6 }
 0x7af   :  { %v3193_v7 = vpop.eup %3192 }
 0x7b0   :  { %v771_v12 = vadd.f32 1.0, %v3193_v7 }
 0x7b2   :  { %3194 = vrcp.f32 %v771_v12  ;;  %v783_v40 = vand.u32 2147483648, %v771_v12  ;;  %vm777_vm12 = vweird.f32 %v771_v12  ;;  %v781_v42 = vand.u32 2147483647, %v771_v12 }
 0x7b3   :  { %3196 = vpow2.f32 %v3062_v15 }
 0x7b4   :  { %v784_v24 = vor.u32 1.1754944e-38, %v783_v40  ;;  %vm782_vm0 = vcmp.eq.f32.partialorder %v781_v42, 8.507059e+37 }
 0x7b8   :  { %v3195_v16 = vpop.eup %3194 }
 0x7b9   :  { %v773_v17 = vmul.f32 %v3195_v16, %v771_v12  ;;  %v3197_v19 = vpop.eup %3196  ;;  %vm778_vm11 = vweird.f32 %v3195_v16 }
 0x7ba   :  { %v813_v63 = vadd.f32 1.0, %v3197_v19  ;;  %vm779_vm15 = vmor %vm777_vm12, %vm778_vm11  ;;  %vm1535_vm11 = vcmask 1045504  }
 0x7bb   :  { %v774_v18 = vsub.f32 1.0, %v773_v17 }
 0x7bc   :  { %3198 = vrcp.f32 %v813_v63  ;;  %v825_v49 = vand.u32 2147483648, %v813_v63  ;;  %vm819_vm2 = vweird.f32 %v813_v63  ;;  %v823_v50 = vand.u32 2147483647, %v813_v63 }
 0x7bd   :  { %v775_v20 = vmul.f32 %v3195_v16, %v774_v18 }
 0x7be   :  { %v826_v29 = vor.u32 1.1754944e-38, %v825_v49  ;;  %vm824_vm4 = vcmp.eq.f32.partialorder %v823_v50, 8.507059e+37 }
 0x7bf   :  { %v776_v61 = vadd.f32 %v3195_v16, %v775_v20 }
 0x7c1   :  { %v780_v23 = vsel %vm779_vm15, %v3195_v16, %v776_v61 }
 0x7c2   :  { %v3199_v43 = vpop.eup %3198  ;;  %v4046_v45 = vsel %vm782_vm0, %v784_v24, %v780_v23 }
 0x7c3   :  { %v815_v47 = vmul.f32 %v3199_v43, %v813_v63  ;;  %vm820_vm1 = vweird.f32 %v3199_v43  ;;  %v797_v17 = vsub.f32 1.0, %v4046_v45 }
 0x7c4   :  { %vm821_vm3 = vmor %vm819_vm2, %vm820_vm1 }
 0x7c5   :  { %v816_v9 = vsub.f32 1.0, %v815_v47 }
 0x7c7   :  { %v817_v48 = vmul.f32 %v3199_v43, %v816_v9 }
 0x7c9   :  { %v818_v10 = vadd.f32 %v3199_v43, %v817_v48 }
 0x7cb   :  { %v822_v25 = vsel %vm821_vm3, %v3199_v43, %v818_v10 }
 0x7cc   :  { %v827_v33 = vsel %vm824_vm4, %v826_v29, %v822_v25 }
 0x7ff   :  { %v788_v44 = vpop.permute.xlu2 %787 }
 0x800   :  { %v790_v46 = vmul.f32 %v788_v44, %v4046_v45 }
 0x802   :  { %792 = vrot.lane.b32.xlu1 %v790_v46, %s3627_s3 }
 0x815   :  { %v851_v51 = vpop.permute.xlu1 %850 }
 0x816   :  { %v853_v36 = vmul.f32 %v851_v51, %v827_v33 }
 0x818   :  { %855 = vrot.lane.b32.xlu0 %v853_v36, %s3627_s3 }
 0x820   :  { %866 = vrot.lane.b32.xlu0 %v4015_v11, %s3628_s4 }
 0x874   :  { %v793_v52 = vpop.permute.xlu1 %792 }
 0x875   :  { %v795_v53 = vadd.f32 %v793_v52, %v3875_v41 }
 0x877   :  { %3200 = vtanh.f32 %v795_v53 }
 0x87d   :  { %v3201_v30 = vpop.eup %3200 }
 0x87e   :  { %799 = vrot.lane.b32.xlu1 %v3201_v30, %s3628_s4 }
 0x88a   :  { %v856_v54 = vpop.permute.xlu0 %855 }
 0x88b   :  { %v858_v56 = vadd.f32 %v856_v54, %v3882_v34 }
 0x88d   :  { %3202 = vtanh.f32 %v858_v56 }
 0x88e   :  { %3204 = vpow2.f32 %v3063_v62 }
 0x892   :  { %v867_v34 = vpop.permute.xlu0 %866 }
 0x893   :  { %v3203_v58 = vpop.eup %3202 }
 0x894   :  { %862 = vrot.lane.b32.xlu2 %v3203_v58, %s3628_s4  ;;  %v3205_v8 = vpop.eup %3204 }
 0x895   :  { %v833_v14 = vadd.f32 1.0, %v3205_v8 }
 0x897   :  { %3206 = vrcp.f32 %v833_v14  ;;  %v845_v1 = vand.u32 2147483648, %v833_v14  ;;  %vm839_vm6 = vweird.f32 %v833_v14  ;;  %v843_v2 = vand.u32 2147483647, %v833_v14 }
 0x899   :  { %v846_v4 = vor.u32 1.1754944e-38, %v845_v1  ;;  %vm844_vm8 = vcmp.eq.f32.partialorder %v843_v2, 8.507059e+37 }
 0x89c   :  { %804 = vrot.lane.b32.xlu2 %v803_v59, %s3629_s13 }
 0x89d   :  { %v3207_v21 = vpop.eup %3206 }
 0x89e   :  { %v835_v35 = vmul.f32 %v3207_v21, %v833_v14  ;;  %vm840_vm5 = vweird.f32 %v3207_v21 }
 0x89f   :  { %vm841_vm7 = vmor %vm839_vm6, %vm840_vm5 }
 0x8a0   :  { %v836_v37 = vsub.f32 1.0, %v835_v35 }
 0x8a2   :  { %v837_v11 = vmul.f32 %v3207_v21, %v836_v37 }
 0x8a4   :  { %v838_v0 = vadd.f32 %v3207_v21, %v837_v11 }
 0x8a6   :  { %v842_v38 = vsel %vm841_vm7, %v3207_v21, %v838_v0 }
 0x8a7   :  { %v847_v5 = vsel %vm844_vm8, %v846_v4, %v842_v38 }
 0x8a8   :  { %v860_v3 = vsub.f32 1.0, %v847_v5  ;;  %v869_v7 = vmul.f32 %v867_v34, %v847_v5 }
 0x8ee   :  { %v863_v6 = vpop.permute.xlu2 %862 }
 0x8ef   :  { %v865_v12 = vmul.f32 %v863_v6, %v860_v3 }
 0x8f0   :  { %v800_v16 = vpop.permute.xlu1 %799 }
 0x8f1   :  { %v4061_v13 = vadd.f32 %v869_v7, %v865_v12  ;;  %v802_v19 = vmul.f32 %v800_v16, %v797_v17 }
 0x8f3   :  { %v876_v15 = vrot.slane %v4061_v13, 2 }
 0x8f5   :  { %877 = vrot.lane.b32.xlu1 %v876_v15, %s3629_s13 }
 0x8f6   :  { %v805_v18 = vpop.permute.xlu2 %804 }
 0x8f7   :  { %v807_v20 = vmul.f32 %v805_v18, %v4046_v45 }
 0x8f9   :  { %v808_v63 = vadd.f32 %v807_v20, %v802_v19 }
 0x8fb   :  { %872 = vrot.lane.b32.xlu0 %v808_v63, %s3628_s4  ;;  %v4070_v61 = vsel %vm1535_vm11, %v4009_v27, %v808_v63 }
 0x967   :  { %v878_v40 = vpop.permute.xlu1 %877 }
 0x96d   :  { %v873_v42 = vpop.permute.xlu0 %872 }
 0x96e   :  { %v880_v23 = vsel %vm388_vm13, %v873_v42, %v878_v40 }
 0x96f   :  { %v4073_v24 = vrot.slane %v880_v23, 6 }
 0x971   :  { %3064 = vmatmul.msk.f32.vlgmr.msra.gmra.mxu2 %vm233_vm14, %v4073_v24  ;;  %3065 = vmatmul.msk.f32.vlgmr.msra.gmra.mxu3 %vm233_vm14, %v4073_v24 }
 0x9f4   :  { %v902_v43 = vpop.f32.mrf.mxu2  ;;  %v922_v44 = vpop.f32.mrf.mxu3 }
 0x9f5   :  { %v903_v45 = vadd.f32 %v902_v43, %v3867_v32  ;;  %v4081_v46 = vadd.f32 %v922_v44, %v3858_v28 }
 0x9f7   :  { %v990_v27 = vrot.slane %v4081_v46, 2  ;;  %946 = vrot.lane.b32.xlu0 %v903_v45, %s3627_s3  ;;  %v967_v47 = vrot.slane %v903_v45, 2  ;;  %v925_v50 = vadd.f32 %v903_v45, %v3872_v39 }
 0x9f9   :  { %1012 = vrot.lane.b32.xlu2 %v990_v27, %s3627_s3  ;;  %v969_v9 = vadd.f32 %v967_v47, %v3875_v41  ;;  %v3066_v25 = vmul.f32 -1.442695, %v925_v50  ;;  %v992_v17 = vadd.f32 %v990_v27, %v3853_v26 }
 0x9fb   :  { %v3067_v48 = vmul.f32 -1.442695, %v969_v9  ;;  %v3068_v18 = vmul.f32 -1.442695, %v992_v17 }
 0x9fd   :  { %3208 = vpow2.f32 %v3067_v48 }
 0xa03   :  { %v3209_v10 = vpop.eup %3208 }
 0xa04   :  { %v973_v49 = vadd.f32 1.0, %v3209_v10 }
 0xa06   :  { %3210 = vrcp.f32 %v973_v49  ;;  %v985_v54 = vand.u32 2147483648, %v973_v49  ;;  %vm979_vm15 = vweird.f32 %v973_v49  ;;  %v983_v56 = vand.u32 2147483647, %v973_v49 }
 0xa07   :  { %3212 = vpow2.f32 %v3066_v25 }
 0xa08   :  { %v986_v59 = vor.u32 1.1754944e-38, %v985_v54  ;;  %vm984_vm1 = vcmp.eq.f32.partialorder %v983_v56, 8.507059e+37 }
 0xa0c   :  { %v3211_v29 = vpop.eup %3210 }
 0xa0d   :  { %v975_v51 = vmul.f32 %v3211_v29, %v973_v49  ;;  %v3213_v36 = vpop.eup %3212  ;;  %vm980_vm12 = vweird.f32 %v3211_v29 }
 0xa0e   :  { %v929_v53 = vadd.f32 1.0, %v3213_v36  ;;  %vm981_vm0 = vmor %vm979_vm15, %vm980_vm12 }
 0xa0f   :  { %v976_v33 = vsub.f32 1.0, %v975_v51 }
 0xa10   :  { %3214 = vrcp.f32 %v929_v53  ;;  %v941_v0 = vand.u32 2147483648, %v929_v53  ;;  %vm935_vm3 = vweird.f32 %v929_v53  ;;  %v939_v1 = vand.u32 2147483647, %v929_v53 }
 0xa11   :  { %v977_v52 = vmul.f32 %v3211_v29, %v976_v33 }
 0xa12   :  { %v942_v38 = vor.u32 1.1754944e-38, %v941_v0  ;;  %vm940_vm5 = vcmp.eq.f32.partialorder %v939_v1, 8.507059e+37 }
 0xa13   :  { %v978_v30 = vadd.f32 %v3211_v29, %v977_v52 }
 0xa15   :  { %v982_v58 = vsel %vm981_vm0, %v3211_v29, %v978_v30 }
 0xa16   :  { %v3215_v60 = vpop.eup %3214  ;;  %v987_v8 = vsel %vm984_vm1, %v986_v59, %v982_v58 }
 0xa17   :  { %v931_v21 = vmul.f32 %v3215_v60, %v929_v53  ;;  %vm936_vm2 = vweird.f32 %v3215_v60 }
 0xa18   :  { %vm937_vm4 = vmor %vm935_vm3, %vm936_vm2 }
 0xa19   :  { %v932_v35 = vsub.f32 1.0, %v931_v21 }
 0xa1b   :  { %v933_v37 = vmul.f32 %v3215_v60, %v932_v35 }
 0xa1d   :  { %v934_v11 = vadd.f32 %v3215_v60, %v933_v37 }
 0xa1f   :  { %v938_v2 = vsel %vm937_vm4, %v3215_v60, %v934_v11 }
 0xa20   :  { %v943_v5 = vsel %vm940_vm5, %v942_v38, %v938_v2 }
 0xa21   :  { %v956_v51 = vsub.f32 1.0, %v943_v5 }
 0xa53   :  { %v1013_v62 = vpop.permute.xlu2 %1012 }
 0xa54   :  { %v1015_v14 = vmul.f32 %v1013_v62, %v987_v8 }
 0xa56   :  { %1017 = vrot.lane.b32.xlu1 %v1015_v14, %s3627_s3 }
 0xa5e   :  { %1028 = vrot.lane.b32.xlu1 %v880_v23, %s3628_s4 }
 0xa69   :  { %v947_v4 = vpop.permute.xlu0 %946 }
 0xa6a   :  { %v949_v34 = vmul.f32 %v947_v4, %v943_v5 }
 0xa6c   :  { %951 = vrot.lane.b32.xlu2 %v949_v34, %s3627_s3 }
 0xac6   :  { %v952_v3 = vpop.permute.xlu2 %951 }
 0xac7   :  { %v954_v6 = vadd.f32 %v952_v3, %v3872_v39 }
 0xac8   :  { %v1018_v7 = vpop.permute.xlu1 %1017 }
 0xac9   :  { %3216 = vtanh.f32 %v954_v6  ;;  %v1020_v12 = vadd.f32 %v1018_v7, %v3853_v26 }
 0xacb   :  { %3218 = vtanh.f32 %v1020_v12 }
 0xacc   :  { %3220 = vpow2.f32 %v3068_v18 }
 0xacf   :  { %v3217_v15 = vpop.eup %3216 }
 0xad0   :  { %958 = vrot.lane.b32.xlu2 %v3217_v15, %s3628_s4  ;;  %v1029_v27 = vpop.permute.xlu1 %1028 }
 0xad1   :  { %v3219_v16 = vpop.eup %3218 }
 0xad2   :  { %1024 = vrot.lane.b32.xlu0 %v3219_v16, %s3628_s4  ;;  %v3221_v19 = vpop.eup %3220 }
 0xad3   :  { %v996_v20 = vadd.f32 1.0, %v3221_v19 }
 0xad5   :  { %3222 = vrcp.f32 %v996_v20  ;;  %v1008_v44 = vand.u32 2147483648, %v996_v20  ;;  %vm1002_vm7 = vweird.f32 %v996_v20  ;;  %v1006_v45 = vand.u32 2147483647, %v996_v20 }
 0xad7   :  { %v1009_v47 = vor.u32 1.1754944e-38, %v1008_v44  ;;  %vm1007_vm12 = vcmp.eq.f32.partialorder %v1006_v45, 8.507059e+37 }
 0xada   :  { %962 = vrot.lane.b32.xlu0 %v4073_v24, %s3629_s13 }
 0xadb   :  { %v3223_v63 = vpop.eup %3222 }
 0xadc   :  { %v998_v40 = vmul.f32 %v3223_v63, %v996_v20  ;;  %vm1003_vm6 = vweird.f32 %v3223_v63 }
 0xadd   :  { %vm1004_vm8 = vmor %vm1002_vm7, %vm1003_vm6 }
 0xade   :  { %v999_v42 = vsub.f32 1.0, %v998_v40 }
 0xae0   :  { %v1000_v23 = vmul.f32 %v3223_v63, %v999_v42 }
 0xae2   :  { %v1001_v43 = vadd.f32 %v3223_v63, %v1000_v23 }
 0xae4   :  { %v1005_v46 = vsel %vm1004_vm8, %v3223_v63, %v1001_v43 }
 0xae5   :  { %v1010_v24 = vsel %vm1007_vm12, %v1009_v47, %v1005_v46 }
 0xae6   :  { %v1022_v9 = vsub.f32 1.0, %v1010_v24  ;;  %v1031_v10 = vmul.f32 %v1029_v27, %v1010_v24 }
 0xb2a   :  { %v959_v29 = vpop.permute.xlu2 %958 }
 0xb2b   :  { %v961_v36 = vmul.f32 %v959_v29, %v956_v51 }
 0xb44   :  { %v1025_v48 = vpop.permute.xlu0 %1024 }
 0xb45   :  { %v1027_v49 = vmul.f32 %v1025_v48, %v1022_v9 }
 0xb47   :  { %v4098_v50 = vadd.f32 %v1031_v10, %v1027_v49 }
 0xb49   :  { %v1038_v25 = vrot.slane %v4098_v50, 6 }
 0xb4b   :  { %1039 = vrot.lane.b32.xlu2 %v1038_v25, %s3629_s13 }
 0xb4c   :  { %v963_v33 = vpop.permute.xlu0 %962 }
 0xb4d   :  { %v965_v52 = vmul.f32 %v963_v33, %v943_v5 }
 0xb4f   :  { %v4102_v53 = vadd.f32 %v965_v52, %v961_v36 }
 0xb51   :  { %1034 = vrot.lane.b32.xlu1 %v4102_v53, %s3628_s4 }
 0xba5   :  { %v1040_v30 = vpop.permute.xlu2 %1039 }
 0xbc3   :  { %v1035_v54 = vpop.permute.xlu1 %1034 }
 0xbc4   :  { %v4107_v56 = vsel %vm388_vm13, %v1035_v54, %v1040_v30 }
 0xbc5   :  { %3069 = vmatmul.msk.f32.vlgmr.msrb.gmra.mxu0 %vm233_vm14, %v4107_v56  ;;  %3070 = vmatmul.msk.f32.vlgmr.msrb.gmra.mxu1 %vm233_vm14, %v4107_v56  ;;  %v1192_v48 = vrot.slane %v4107_v56, 4  ;;  %v1125_v29 = vrot.slane %v4107_v56, 6 }
 0xc42   :  { %v1063_v58 = vpop.f32.mrf.mxu0  ;;  %v1083_v59 = vpop.f32.mrf.mxu1 }
 0xc43   :  { %v1064_v60 = vadd.f32 %v1063_v58, %v3867_v32  ;;  %v4115_v62 = vadd.f32 %v1083_v59, %v3858_v28 }
 0xc45   :  { %v1087_v8 = vrot.slane %v1064_v60, 6  ;;  %v1154_v14 = vrot.slane %v4115_v62, 4  ;;  %v1131_v21 = vrot.slane %v1064_v60, 4 }
 0xc47   :  { %1176 = vrot.lane.b32.xlu0 %v1154_v14, %s3627_s3  ;;  %1109 = vrot.lane.b32.xlu1 %v1087_v8, %s3627_s3  ;;  %v1089_v35 = vadd.f32 %v1087_v8, %v3872_v39  ;;  %v1133_v37 = vadd.f32 %v1131_v21, %v3875_v41  ;;  %v1156_v52 = vadd.f32 %v1154_v14, %v3853_v26 }
 0xc49   :  { %v3071_v11 = vmul.f32 -1.442695, %v1089_v35  ;;  %v3072_v0 = vmul.f32 -1.442695, %v1133_v37  ;;  %v3073_v30 = vmul.f32 -1.442695, %v1156_v52 }
 0xc4b   :  { %3224 = vpow2.f32 %v3071_v11 }
 0xc4c   :  { %3226 = vpow2.f32 %v3072_v0 }
 0xc51   :  { %v3225_v1 = vpop.eup %3224 }
 0xc52   :  { %v3227_v2 = vpop.eup %3226  ;;  %v1093_v38 = vadd.f32 1.0, %v3225_v1 }
 0xc53   :  { %v1137_v4 = vadd.f32 1.0, %v3227_v2 }
 0xc54   :  { %3228 = vrcp.f32 %v1093_v38  ;;  %vm1099_vm1 = vweird.f32 %v1093_v38  ;;  %v1105_v20 = vand.u32 2147483648, %v1093_v38  ;;  %v1103_v40 = vand.u32 2147483647, %v1093_v38 }
 0xc55   :  { %3230 = vrcp.f32 %v1137_v4  ;;  %v1149_v19 = vand.u32 2147483648, %v1137_v4  ;;  %vm1143_vm2 = vweird.f32 %v1137_v4  ;;  %v1147_v63 = vand.u32 2147483647, %v1137_v4 }
 0xc56   :  { %v1106_v44 = vor.u32 1.1754944e-38, %v1105_v20  ;;  %vm1104_vm6 = vcmp.eq.f32.partialorder %v1103_v40, 8.507059e+37 }
 0xc57   :  { %v1150_v43 = vor.u32 1.1754944e-38, %v1149_v19  ;;  %vm1148_vm5 = vcmp.eq.f32.partialorder %v1147_v63, 8.507059e+37 }
 0xc5a   :  { %v3229_v5 = vpop.eup %3228 }
 0xc5b   :  { %v3231_v34 = vpop.eup %3230  ;;  %v1095_v6 = vmul.f32 %v3229_v5, %v1093_v38  ;;  %vm1100_vm15 = vweird.f32 %v3229_v5 }
 0xc5c   :  { %v1139_v3 = vmul.f32 %v3231_v34, %v1137_v4  ;;  %vm1144_vm0 = vweird.f32 %v3231_v34  ;;  %vm1101_vm3 = vmor %vm1099_vm1, %vm1100_vm15 }
 0xc5d   :  { %v1096_v12 = vsub.f32 1.0, %v1095_v6  ;;  %vm1145_vm4 = vmor %vm1143_vm2, %vm1144_vm0 }
 0xc5e   :  { %v1140_v7 = vsub.f32 1.0, %v1139_v3 }
 0xc5f   :  { %v1097_v16 = vmul.f32 %v3229_v5, %v1096_v12 }
 0xc60   :  { %v1141_v15 = vmul.f32 %v3231_v34, %v1140_v7 }
 0xc61   :  { %v1098_v18 = vadd.f32 %v3229_v5, %v1097_v16 }
 0xc62   :  { %v1142_v17 = vadd.f32 %v3231_v34, %v1141_v15 }
 0xc63   :  { %v1102_v23 = vsel %vm1101_vm3, %v3229_v5, %v1098_v18 }
 0xc64   :  { %v1146_v42 = vsel %vm1145_vm4, %v3231_v34, %v1142_v17  ;;  %v1107_v24 = vsel %vm1104_vm6, %v1106_v44, %v1102_v23 }
 0xc65   :  { %v1151_v46 = vsel %vm1148_vm5, %v1150_v43, %v1146_v42  ;;  %v1119_v6 = vsub.f32 1.0, %v1107_v24 }
 0xcb9   :  { %v1177_v45 = vpop.permute.xlu0 %1176  ;;  %v1110_v47 = vpop.permute.xlu1 %1109 }
 0xcba   :  { %v1179_v27 = vmul.f32 %v1177_v45, %v1151_v46  ;;  %v1112_v9 = vmul.f32 %v1110_v47, %v1107_v24 }
 0xcbc   :  { %1181 = vrot.lane.b32.xlu2 %v1179_v27, %s3627_s3  ;;  %1114 = vrot.lane.b32.xlu0 %v1112_v9, %s3627_s3 }
 0xcc4   :  { %1193 = vrot.lane.b32.xlu2 %v1192_v48, %s3628_s4 }
 0xd16   :  { %v1182_v10 = vpop.permute.xlu2 %1181 }
 0xd17   :  { %v1184_v49 = vadd.f32 %v1182_v10, %v3853_v26 }
 0xd19   :  { %3232 = vtanh.f32 %v1184_v49 }
 0xd1e   :  { %v1194_v14 = vpop.permute.xlu2 %1193 }
 0xd1f   :  { %v3233_v25 = vpop.eup %3232 }
 0xd20   :  { %1188 = vrot.lane.b32.xlu1 %v3233_v25, %s3628_s4 }
 0xd28   :  { %1126 = vrot.lane.b32.xlu1 %v1125_v29, %s3629_s13 }
 0xd2e   :  { %v1115_v51 = vpop.permute.xlu0 %1114 }
 0xd2f   :  { %v1117_v33 = vadd.f32 %v1115_v51, %v3872_v39 }
 0xd31   :  { %3234 = vtanh.f32 %v1117_v33 }
 0xd32   :  { %3236 = vpow2.f32 %v3073_v30 }
 0xd37   :  { %v3235_v36 = vpop.eup %3234 }
 0xd38   :  { %1121 = vrot.lane.b32.xlu0 %v3235_v36, %s3628_s4  ;;  %v3237_v54 = vpop.eup %3236 }
 0xd39   :  { %v1160_v58 = vadd.f32 1.0, %v3237_v54 }
 0xd3b   :  { %3238 = vrcp.f32 %v1160_v58  ;;  %v1172_v35 = vand.u32 2147483648, %v1160_v58  ;;  %vm1166_vm8 = vweird.f32 %v1160_v58  ;;  %v1170_v37 = vand.u32 2147483647, %v1160_v58 }
 0xd3d   :  { %v1173_v0 = vor.u32 1.1754944e-38, %v1172_v35  ;;  %vm1171_vm15 = vcmp.eq.f32.partialorder %v1170_v37, 8.507059e+37 }
 0xd41   :  { %v3239_v59 = vpop.eup %3238 }
 0xd42   :  { %v1162_v56 = vmul.f32 %v3239_v59, %v1160_v58  ;;  %vm1167_vm7 = vweird.f32 %v3239_v59 }
 0xd43   :  { %vm1168_vm12 = vmor %vm1166_vm8, %vm1167_vm7 }
 0xd44   :  { %v1163_v60 = vsub.f32 1.0, %v1162_v56 }
 0xd46   :  { %v1164_v8 = vmul.f32 %v3239_v59, %v1163_v60 }
 0xd48   :  { %v1165_v21 = vadd.f32 %v3239_v59, %v1164_v8 }
 0xd4a   :  { %v1169_v11 = vsel %vm1168_vm12, %v3239_v59, %v1165_v21 }
 0xd4b   :  { %v1174_v62 = vsel %vm1171_vm15, %v1173_v0, %v1169_v11 }
 0xd4c   :  { %v1186_v1 = vsub.f32 1.0, %v1174_v62  ;;  %v1196_v38 = vmul.f32 %v1194_v14, %v1174_v62 }
 0xd92   :  { %v1189_v2 = vpop.permute.xlu1 %1188 }
 0xd93   :  { %v1191_v4 = vmul.f32 %v1189_v2, %v1186_v1 }
 0xd95   :  { %v4137_v5 = vadd.f32 %v1196_v38, %v1191_v4 }
 0xd97   :  { %v1203_v34 = vrot.slane %v4137_v5, 2 }
 0xd99   :  { %1204 = vrot.lane.b32.xlu0 %v1203_v34, %s3629_s13 }
 0xd9a   :  { %v1127_v3 = vpop.permute.xlu1 %1126 }
 0xd9b   :  { %v1129_v12 = vmul.f32 %v1127_v3, %v1107_v24 }
 0xdaa   :  { %v1122_v7 = vpop.permute.xlu0 %1121 }
 0xdab   :  { %v1124_v15 = vmul.f32 %v1122_v7, %v1119_v6 }
 0xdad   :  { %v4141_v16 = vadd.f32 %v1129_v12, %v1124_v15 }
 0xdaf   :  { %1199 = vrot.lane.b32.xlu2 %v4141_v16, %s3628_s4 }
 0xe09   :  { %v1200_v17 = vpop.permute.xlu2 %1199 }
 0xe0b   :  { %v1205_v18 = vpop.permute.xlu0 %1204 }
 0xe0c   :  { %v4146_v19 = vsel %vm388_vm13, %v1200_v17, %v1205_v18 }
 0xe0d   :  { %v1209_v20 = vrot.slane %v4146_v19, 2  ;;  %v1291_v17 = vrot.slane %v4146_v19, 6 }
 0xe0f   :  { %3074 = vmatmul.msk.f32.vlgmr.msrb.gmra.mxu2 %vm233_vm14, %v1209_v20  ;;  %3075 = vmatmul.msk.f32.vlgmr.msrb.gmra.mxu3 %vm233_vm14, %v1209_v20 }
 0xe92   :  { %v1229_v63 = vpop.f32.mrf.mxu2  ;;  %v1249_v40 = vpop.f32.mrf.mxu3 }
 0xe93   :  { %v1230_v42 = vadd.f32 %v1229_v63, %v3867_v32  ;;  %v4153_v23 = vadd.f32 %v1249_v40, %v3858_v28 }
 0xe95   :  { %v1253_v43 = vrot.slane %v1230_v42, 4  ;;  %v1320_v44 = vrot.slane %v4153_v23, 6  ;;  %v1297_v27 = vrot.slane %v1230_v42, 6 }
 0xe97   :  { %1342 = vrot.lane.b32.xlu1 %v1320_v44, %s3627_s3  ;;  %1275 = vrot.lane.b32.xlu2 %v1253_v43, %s3627_s3  ;;  %v1255_v45 = vadd.f32 %v1253_v43, %v3872_v39  ;;  %v1299_v9 = vadd.f32 %v1297_v27, %v3875_v41  ;;  %v1322_v18 = vadd.f32 %v1320_v44, %v3853_v26 }
 0xe99   :  { %v3076_v46 = vmul.f32 -1.442695, %v1255_v45  ;;  %v3077_v10 = vmul.f32 -1.442695, %v1299_v9  ;;  %v3078_v20 = vmul.f32 -1.442695, %v1322_v18 }
 0xe9b   :  { %3240 = vpow2.f32 %v3076_v46 }
 0xea1   :  { %v3241_v47 = vpop.eup %3240 }
 0xea2   :  { %v1259_v24 = vadd.f32 1.0, %v3241_v47 }
 0xea4   :  { %3242 = vrcp.f32 %v1259_v24  ;;  %v1271_v52 = vand.u32 2147483648, %v1259_v24  ;;  %vm1265_vm1 = vweird.f32 %v1259_v24  ;;  %v1269_v30 = vand.u32 2147483647, %v1259_v24 }
 0xea5   :  { %3244 = vpow2.f32 %v3077_v10 }
 0xea6   :  { %v1272_v58 = vor.u32 1.1754944e-38, %v1271_v52  ;;  %vm1270_vm3 = vcmp.eq.f32.partialorder %v1269_v30, 8.507059e+37 }
 0xeaa   :  { %v3243_v48 = vpop.eup %3242 }
 0xeab   :  { %v1261_v49 = vmul.f32 %v3243_v48, %v1259_v24  ;;  %v3245_v29 = vpop.eup %3244  ;;  %vm1266_vm0 = vweird.f32 %v3243_v48 }
 0xeac   :  { %v1303_v33 = vadd.f32 1.0, %v3245_v29  ;;  %vm1267_vm2 = vmor %vm1265_vm1, %vm1266_vm0 }
 0xead   :  { %v1262_v25 = vsub.f32 1.0, %v1261_v49 }
 0xeae   :  { %3246 = vrcp.f32 %v1303_v33  ;;  %v1315_v0 = vand.u32 2147483648, %v1303_v33  ;;  %vm1309_vm5 = vweird.f32 %v1303_v33  ;;  %v1313_v62 = vand.u32 2147483647, %v1303_v33 }
 0xeaf   :  { %v1263_v51 = vmul.f32 %v3243_v48, %v1262_v25 }
 0xeb0   :  { %v1316_v1 = vor.u32 1.1754944e-38, %v1315_v0  ;;  %vm1314_vm7 = vcmp.eq.f32.partialorder %v1313_v62, 8.507059e+37 }
 0xeb1   :  { %v1264_v36 = vadd.f32 %v3243_v48, %v1263_v51 }
 0xeb3   :  { %v1268_v54 = vsel %vm1267_vm2, %v3243_v48, %v1264_v36 }
 0xeb4   :  { %v4162_v56 = vsel %vm1270_vm3, %v1272_v58, %v1268_v54  ;;  %v3247_v8 = vpop.eup %3246 }
 0xeb5   :  { %v1305_v21 = vmul.f32 %v3247_v8, %v1303_v33  ;;  %vm1310_vm4 = vweird.f32 %v3247_v8  ;;  %v1285_v36 = vsub.f32 1.0, %v4162_v56 }
 0xeb6   :  { %vm1311_vm6 = vmor %vm1309_vm5, %vm1310_vm4 }
 0xeb7   :  { %v1306_v35 = vsub.f32 1.0, %v1305_v21 }
 0xeb9   :  { %v1307_v37 = vmul.f32 %v3247_v8, %v1306_v35 }
 0xebb   :  { %v1308_v11 = vadd.f32 %v3247_v8, %v1307_v37 }
 0xebd   :  { %v1312_v14 = vsel %vm1311_vm6, %v3247_v8, %v1308_v11 }
 0xebe   :  { %v1317_v38 = vsel %vm1314_vm7, %v1316_v1, %v1312_v14 }
 0xef1   :  { %v1276_v59 = vpop.permute.xlu2 %1275 }
 0xef2   :  { %v1278_v60 = vmul.f32 %v1276_v59, %v4162_v56  ;;  %v1537_v59 = vsel %vm1531_vm9, %v4102_v53, %v4141_v16 }
 0xef4   :  { %1280 = vrot.lane.b32.xlu1 %v1278_v60, %s3627_s3 }
 0xf09   :  { %v1343_v2 = vpop.permute.xlu1 %1342 }
 0xf0a   :  { %v1345_v4 = vmul.f32 %v1343_v2, %v1317_v38 }
 0xf0c   :  { %1347 = vrot.lane.b32.xlu0 %v1345_v4, %s3627_s3 }
 0xf14   :  { %1358 = vrot.lane.b32.xlu0 %v4146_v19, %s3628_s4 }
 0xf66   :  { %v1281_v34 = vpop.permute.xlu1 %1280 }
 0xf67   :  { %v1283_v3 = vadd.f32 %v1281_v34, %v3872_v39 }
 0xf69   :  { %3248 = vtanh.f32 %v1283_v3 }
 0xf6f   :  { %v3249_v6 = vpop.eup %3248 }
 0xf70   :  { %1287 = vrot.lane.b32.xlu1 %v3249_v6, %s3628_s4 }
 0xf7e   :  { %v1348_v7 = vpop.permute.xlu0 %1347 }
 0xf7f   :  { %v1350_v12 = vadd.f32 %v1348_v7, %v3853_v26 }
 0xf81   :  { %3250 = vtanh.f32 %v1350_v12 }
 0xf82   :  { %3252 = vpow2.f32 %v3078_v20 }
 0xf86   :  { %v1359_v44 = vpop.permute.xlu0 %1358 }
 0xf87   :  { %v3251_v15 = vpop.eup %3250 }
 0xf88   :  { %1354 = vrot.lane.b32.xlu2 %v3251_v15, %s3628_s4  ;;  %v3253_v63 = vpop.eup %3252 }
 0xf89   :  { %v1326_v40 = vadd.f32 1.0, %v3253_v63 }
 0xf8b   :  { %3254 = vrcp.f32 %v1326_v40  ;;  %v1338_v24 = vand.u32 2147483648, %v1326_v40  ;;  %vm1332_vm12 = vweird.f32 %v1326_v40  ;;  %v1336_v19 = vand.u32 2147483647, %v1326_v40 }
 0xf8d   :  { %v1339_v9 = vor.u32 1.1754944e-38, %v1338_v24  ;;  %vm1337_vm0 = vcmp.eq.f32.partialorder %v1336_v19, 8.507059e+37  ;;  %v1543_v19 = vsel %vm1531_vm9, %v4061_v13, %v4000_v55 }
 0xf90   :  { %1292 = vrot.lane.b32.xlu2 %v1291_v17, %s3629_s13 }
 0xf91   :  { %v3255_v42 = vpop.eup %3254 }
 0xf92   :  { %v1328_v43 = vmul.f32 %v3255_v42, %v1326_v40  ;;  %vm1333_vm8 = vweird.f32 %v3255_v42 }
 0xf93   :  { %vm1334_vm15 = vmor %vm1332_vm12, %vm1333_vm8 }
 0xf94   :  { %v1329_v45 = vsub.f32 1.0, %v1328_v43 }
 0xf96   :  { %v1330_v46 = vmul.f32 %v3255_v42, %v1329_v45 }
 0xf98   :  { %v1331_v47 = vadd.f32 %v3255_v42, %v1330_v46 }
 0xf9a   :  { %v1335_v27 = vsel %vm1334_vm15, %v3255_v42, %v1331_v47 }
 0xf9b   :  { %v1340_v23 = vsel %vm1337_vm0, %v1339_v9, %v1335_v27 }
 0xf9c   :  { %v1352_v48 = vsub.f32 1.0, %v1340_v23  ;;  %v1361_v49 = vmul.f32 %v1359_v44, %v1340_v23  ;;  %v1544_v23 = vsel %vm1533_vm10, %v1543_v19, %v3946_v31  ;;  %v1566_v19 = vld [vmem:[#allocation8 + $0x10] sm:$0xff] }
 0xfe2   :  { %v1355_v10 = vpop.permute.xlu2 %1354  ;;  %v1288_v33 = vpop.permute.xlu1 %1287 }
 0xfe3   :  { %v1357_v25 = vmul.f32 %v1355_v10, %v1352_v48  ;;  %v1290_v30 = vmul.f32 %v1288_v33, %v1285_v36 }
 0xfe5   :  { %v4178_v29 = vadd.f32 %v1361_v49, %v1357_v25 }
 0xfe7   :  { %v1368_v51 = vrot.slane %v4178_v29, 6 }
 0xfe9   :  { %1369 = vrot.lane.b32.xlu1 %v1368_v51, %s3629_s13 }
 0xfea   :  { %v1293_v52 = vpop.permute.xlu2 %1292 }
 0xfeb   :  { %v1295_v54 = vmul.f32 %v1293_v52, %v4162_v56 }
 0xfed   :  { %v1296_v58 = vadd.f32 %v1295_v54, %v1290_v30 }
 0xfef   :  { %1364 = vrot.lane.b32.xlu0 %v1296_v58, %s3628_s4  ;;  %v4189_v60 = vsel %vm1533_vm10, %v1537_v59, %v1296_v58  ;;  %v4235_v58 = vld [vmem:[#allocation10 + $0x60] sm:$0xff] }
0x105b   :  { %v1370_v8 = vpop.permute.xlu1 %1369 }
0x1061   :  { %v1365_v21 = vpop.permute.xlu0 %1364 }
0x1062   :  { %v4192_v35 = vsel %vm388_vm13, %v1365_v21, %v1370_v8  ;;  %v4243_v8 = vld [vmem:[#allocation10 + $0x50] sm:$0xff]  ;;  %v4245_v21 = vld [vmem:[#allocation10 + $0x40] sm:$0xff] }
0x1063   :  { %v1374_v37 = vrot.slane %v4192_v35, 4 }
0x1065   :  { %3079 = vmatmul.msk.f32.vlgmr.msra.gmra.mxu0 %vm233_vm14, %v1374_v37  ;;  %3080 = vmatmul.msk.f32.vlgmr.msra.gmra.mxu1 %vm233_vm14, %v1374_v37 }
0x10e2   :  { %v1394_v56 = vpop.f32.mrf.mxu0  ;;  %v1414_v11 = vpop.f32.mrf.mxu1 }
0x10e3   :  { %v1395_v53 = vadd.f32 %v1394_v56, %v3867_v32  ;;  %v4199_v16 = vadd.f32 %v1414_v11, %v3858_v28  ;;  %v4251_v56 = vld [vmem:[#allocation10 + $0x20] sm:$0xff]  ;;  %v4253_v11 = vld [vmem:[#allocation10 + $0x78] sm:$0xff] }
0x10e4   :  { %1688 = vmatpush.msrb.mxu1 %v4253_v11 }
0x10e5   :  { %v1418_v0 = vrot.slane %v1395_v53, 2  ;;  %1503 = vrot.lane.b32.xlu2 %v4199_v16, %s3627_s3  ;;  %v1462_v62 = vadd.f32 %v1395_v53, %v3875_v41  ;;  %v1482_v36 = vadd.f32 %v4199_v16, %v3853_v26  ;;  %v4255_v53 = vld [vmem:[#allocation10 + $0x68] sm:$0xff] }
0x10e6   :  { %1689 = vmatpush.msrb.mxu1 %v4255_v53 }
0x10e7   :  { %1440 = vrot.lane.b32.xlu0 %v1418_v0, %s3627_s3  ;;  %v3082_v14 = vmul.f32 -1.442695, %v1462_v62  ;;  %v1420_v38 = vadd.f32 %v1418_v0, %v3872_v39  ;;  %v3083_v52 = vmul.f32 -1.442695, %v1482_v36  ;;  %v4260_v0 = vld [vmem:[#allocation10 + $0x10] sm:$0xff]  ;;  %v4262_v62 = vld [vmem:[#allocation10 + $0x58] sm:$0xff] }
0x10e8   :  { %1690 = vmatpush.msrb.mxu1 %v4262_v62 }
0x10e9   :  { %3256 = vpow2.f32 %v3082_v14  ;;  %v3081_v32 = vmul.f32 -1.442695, %v1420_v38  ;;  %v1578_v14 = vld [vmem:[#allocation8 + $0x70] sm:$0xff]  ;;  %v1577_v38 = vld [vmem:[#allocation8 + $0x68] sm:$0xff] }
0x10ea   :  { %1600 = vmatpush.msra.mxu2 %v1578_v14 }
0x10ef   :  { %v3257_v1 = vpop.eup %3256 }
0x10f0   :  { %v1466_v2 = vadd.f32 1.0, %v3257_v1  ;;  %v1579_v1 = vld [vmem:[#allocation8 + $0x78] sm:$0xff] }
0x10f1   :  { %1623 = vmatpush.msra.mxu3 %v1579_v1 }
0x10f2   :  { %3258 = vrcp.f32 %v1466_v2  ;;  %v1478_v15 = vand.u32 2147483648, %v1466_v2  ;;  %vm1472_vm2 = vweird.f32 %v1466_v2  ;;  %v1476_v41 = vand.u32 2147483647, %v1466_v2 }
0x10f3   :  { %3260 = vpow2.f32 %v3081_v32  ;;  %v4268_v32 = vld [vmem:[#allocation10 + $0x48] sm:$0xff]  ;;  %1624 = vmatpush.msra.mxu3 %v1577_v38 }
0x10f4   :  { %v1479_v18 = vor.u32 1.1754944e-38, %v1478_v15  ;;  %vm1477_vm4 = vcmp.eq.f32.partialorder %v1476_v41, 8.507059e+37  ;;  %1691 = vmatpush.msrb.mxu1 %v4268_v32  ;;  %v4282_v41 = vld [vmem:[#allocation10 + $0x28] sm:$0xff] }
0x10f8   :  { %v3259_v4 = vpop.eup %3258 }
0x10f9   :  { %v1468_v34 = vmul.f32 %v3259_v4, %v1466_v2  ;;  %v3261_v6 = vpop.eup %3260  ;;  %vm1473_vm1 = vweird.f32 %v3259_v4  ;;  %v1576_v2 = vld [vmem:[#allocation8 + $0x60] sm:$0xff] }
0x10fa   :  { %v1424_v12 = vadd.f32 1.0, %v3261_v6  ;;  %vm1474_vm3 = vmor %vm1472_vm2, %vm1473_vm1  ;;  %1601 = vmatpush.msra.mxu2 %v1576_v2  ;;  %v1575_v6 = vld [vmem:[#allocation8 + $0x58] sm:$0xff] }
0x10fb   :  { %v1469_v28 = vsub.f32 1.0, %v1468_v34  ;;  %v1574_v34 = vld [vmem:[#allocation8 + $0x50] sm:$0xff]  ;;  %1625 = vmatpush.msra.mxu3 %v1575_v6 }
0x10fc   :  { %3262 = vrcp.f32 %v1424_v12  ;;  %v1436_v24 = vand.u32 2147483648, %v1424_v12  ;;  %vm1430_vm6 = vweird.f32 %v1424_v12  ;;  %v1434_v27 = vand.u32 2147483647, %v1424_v12  ;;  %1602 = vmatpush.msra.mxu2 %v1574_v34 }
0x10fd   :  { %v1470_v3 = vmul.f32 %v3259_v4, %v1469_v28 }
0x10fe   :  { %v1437_v44 = vor.u32 1.1754944e-38, %v1436_v24  ;;  %vm1435_vm8 = vcmp.eq.f32.partialorder %v1434_v27, 8.507059e+37  ;;  %v1567_v27 = vld [vmem:[#allocation8 + $0x18] sm:$0xff] }
0x10ff   :  { %v1471_v7 = vadd.f32 %v3259_v4, %v1470_v3  ;;  %v4274_v3 = vld [vmem:[#allocation10 + $0x38] sm:$0xff] }
0x1100   :  { %1692 = vmatpush.msrb.mxu1 %v4274_v3 }
0x1101   :  { %v1475_v17 = vsel %vm1474_vm3, %v3259_v4, %v1471_v7  ;;  %v4266_v4 = vld [vmem:[#allocation10] sm:$0xff] }
0x1102   :  { %v1480_v63 = vsel %vm1477_vm4, %v1479_v18, %v1475_v17  ;;  %v3263_v42 = vpop.eup %3262  ;;  %v1573_v17 = vld [vmem:[#allocation8 + $0x48] sm:$0xff]  ;;  %1693 = vmatpush.msrb.mxu1 %v4282_v41 }
0x1103   :  { %v1426_v43 = vmul.f32 %v3263_v42, %v1424_v12  ;;  %vm1431_vm5 = vweird.f32 %v3263_v42  ;;  %v1572_v12 = vld [vmem:[#allocation8 + $0x40] sm:$0xff]  ;;  %1626 = vmatpush.msra.mxu3 %v1573_v17 }
0x1104   :  { %vm1432_vm7 = vmor %vm1430_vm6, %vm1431_vm5  ;;  %1603 = vmatpush.msra.mxu2 %v1572_v12 }
0x1105   :  { %v1427_v45 = vsub.f32 1.0, %v1426_v43 }
0x1107   :  { %v1428_v46 = vmul.f32 %v3263_v42, %v1427_v45  ;;  %v1568_v45 = vld [vmem:[#allocation8 + $0x20] sm:$0xff] }
0x1109   :  { %v1429_v47 = vadd.f32 %v3263_v42, %v1428_v46  ;;  %v4298_v46 = vld [vmem:[#allocation10 + $0x8] sm:$0xff] }
0x110b   :  { %v1433_v9 = vsel %vm1432_vm7, %v3263_v42, %v1429_v47  ;;  %v1571_v42 = vld [vmem:[#allocation8 + $0x38] sm:$0xff]  ;;  %v1569_v47 = vld [vmem:[#allocation8 + $0x28] sm:$0xff] }
0x110c   :  { %v4215_v10 = vsel %vm1435_vm8, %v1437_v44, %v1433_v9  ;;  %1627 = vmatpush.msra.mxu3 %v1571_v42 }
0x110e   :  { %1628 = vmatpush.msra.mxu3 %v1569_v47 }
0x1110   :  { %1629 = vmatpush.msra.mxu3 %v1567_v27 }
0x113f   :  { %v1504_v20 = vpop.permute.xlu2 %1503 }
0x1140   :  { %v1506_v40 = vmul.f32 %v1504_v20, %v1480_v63  ;;  %v1570_v20 = vld [vmem:[#allocation8 + $0x30] sm:$0xff] }
0x1141   :  { %1604 = vmatpush.msra.mxu2 %v1570_v20 }
0x1142   :  { %1508 = vrot.lane.b32.xlu1 %v1506_v40, %s3627_s3  ;;  %v4294_v40 = vld [vmem:[#allocation10 + $0x18] sm:$0xff] }
0x1143   :  { %1694 = vmatpush.msrb.mxu1 %v4294_v40  ;;  %1605 = vmatpush.msra.mxu2 %v1568_v45 }
0x1145   :  { %1695 = vmatpush.msrb.mxu1 %v4298_v46  ;;  %1606 = vmatpush.msra.mxu2 %v1566_v19 }
0x1146   :  { %1696 = vmatmul.f32.vlgmr.msrb.gmra.mxu1 %v3626_v22 }
0x1147   :  { %2009 = vmatpush.msra.mxu1 %v4253_v11 }
0x1149   :  { %2010 = vmatpush.msra.mxu1 %v4255_v53 }
0x114a   :  { %1519 = vrot.lane.b32.xlu1 %v1374_v37, %s3628_s4  ;;  %v4248_v37 = vld [vmem:[#allocation10 + $0x30] sm:$0xff] }
0x114b   :  { %2011 = vmatpush.msra.mxu1 %v4262_v62 }
0x114d   :  { %2012 = vmatpush.msra.mxu1 %v4268_v32 }
0x114f   :  { %2013 = vmatpush.msra.mxu1 %v4274_v3 }
0x1151   :  { %2014 = vmatpush.msra.mxu1 %v4282_v41 }
0x1152   :  { %1548 = vrot.lane.b32.xlu1 %v4070_v61, %s3628_s4  ;;  %v1545_v61 = vsel %vm1535_vm11, %v1544_v23, %v3891_v57  ;;  %v1456_v57 = vrot.slane %v4192_v35, 6 }
0x1153   :  { %2015 = vmatpush.msra.mxu1 %v4294_v40 }
0x1155   :  { %2016 = vmatpush.msra.mxu1 %v4298_v46 }
0x1157   :  { %2335 = vmatpush.msrb.mxu1 %v4253_v11 }
0x1159   :  { %v1441_v48 = vpop.permute.xlu0 %1440  ;;  %2336 = vmatpush.msrb.mxu1 %v4255_v53 }
0x115a   :  { %v1443_v49 = vmul.f32 %v1441_v48, %v4215_v10  ;;  %1558 = vrot.lane.b32.xlu1 %v1545_v61, %s3629_s13 }
0x115b   :  { %2337 = vmatpush.msrb.mxu1 %v4262_v62 }
0x115c   :  { %1445 = vrot.lane.b32.xlu2 %v1443_v49, %s3627_s3 }
0x115d   :  { %2338 = vmatpush.msrb.mxu1 %v4268_v32 }
0x115f   :  { %2339 = vmatpush.msrb.mxu1 %v4274_v3 }
0x1161   :  { %2340 = vmatpush.msrb.mxu1 %v4282_v41 }
0x1163   :  { %2341 = vmatpush.msrb.mxu1 %v4294_v40 }
0x1165   :  { %2342 = vmatpush.msrb.mxu1 %v4298_v46 }
0x11b4   :  { %v1509_v55 = vpop.permute.xlu1 %1508 }
0x11b5   :  { %v1511_v13 = vadd.f32 %v1509_v55, %v3853_v26 }
0x11b6   :  { %v1446_v25 = vpop.permute.xlu2 %1445 }
0x11b7   :  { %3264 = vtanh.f32 %v1511_v13  ;;  %v1448_v31 = vadd.f32 %v1446_v25, %v3872_v39  ;;  %v4233_v39 = vld [vmem:[#allocation10 + $0x70] sm:$0xff]  ;;  %v1450_v25 = vsub.f32 1.0, %v4215_v10 }
0x11b8   :  { %1668 = vmatpush.msrb.mxu0 %v4233_v39 }
0x11b9   :  { %3266 = vtanh.f32 %v1448_v31 }
0x11ba   :  { %3268 = vpow2.f32 %v3083_v52  ;;  %1669 = vmatpush.msrb.mxu0 %v4235_v58 }
0x11bc   :  { %1670 = vmatpush.msrb.mxu0 %v4243_v8  ;;  %v1520_v9 = vpop.permute.xlu1 %1519 }
0x11bd   :  { %v3265_v51 = vpop.eup %3264 }
0x11be   :  { %1515 = vrot.lane.b32.xlu0 %v3265_v51, %s3628_s4  ;;  %1671 = vmatpush.msrb.mxu0 %v4245_v21 }
0x11bf   :  { %v3267_v33 = vpop.eup %3266 }
0x11c0   :  { %1452 = vrot.lane.b32.xlu2 %v3267_v33, %s3628_s4  ;;  %v3269_v30 = vpop.eup %3268  ;;  %1672 = vmatpush.msrb.mxu0 %v4248_v37 }
0x11c1   :  { %v4230_v54 = vadd.f32 1.0, %v3269_v30  ;;  %v1654_v30 = vld [vmem:[%s4721_s8] sm:$0x3] }
0x11c2   :  { %1673 = vmatpush.msrb.mxu0 %v4251_v56 }
0x11c3   :  { %3270 = vrcp.f32 %v4230_v54  ;;  %v1498_v7 = vand.u32 2147483648, %v4230_v54  ;;  %vm1492_vm15 = vweird.f32 %v4230_v54  ;;  %v1496_v15 = vand.u32 2147483647, %v4230_v54 }
0x11c4   :  { %1674 = vmatpush.msrb.mxu0 %v4260_v0 }
0x11c5   :  { %v1499_v43 = vor.u32 1.1754944e-38, %v1498_v7  ;;  %vm1497_vm1 = vcmp.eq.f32.partialorder %v1496_v15, 8.507059e+37 }
0x11c6   :  { %1457 = vrot.lane.b32.xlu0 %v1456_v57, %s3629_s13  ;;  %1675 = vmatpush.msrb.mxu0 %v4266_v4  ;;  %v1549_v57 = vpop.permute.xlu1 %1548 }
0x11c7   :  { %1676 = vmatmul.f32.vlgmr.msrb.gmra.mxu0 %v3626_v22 }
0x11c8   :  { %1989 = vmatpush.msra.mxu0 %v4233_v39 }
0x11c9   :  { %v4237_v59 = vpop.eup %3270 }
0x11ca   :  { %v1488_v26 = vmul.f32 %v4237_v59, %v4230_v54  ;;  %vm1493_vm12 = vweird.f32 %v4237_v59  ;;  %1990 = vmatpush.msra.mxu0 %v4235_v58  ;;  %v4386_v54 = vperm.slane %v1654_v30, 0 }
0x11cb   :  { %vm4286_vm0 = vmor %vm1492_vm15, %vm1493_vm12 }
0x11cc   :  { %v1489_v35 = vsub.f32 1.0, %v1488_v26  ;;  %1991 = vmatpush.msra.mxu0 %v4243_v8 }
0x11ce   :  { %v1490_v16 = vmul.f32 %v4237_v59, %v1489_v35  ;;  %1992 = vmatpush.msra.mxu0 %v4245_v21  ;;  %v4394_v35 = vperm.slane %v1654_v30, 1  ;;  %v1559_v2 = vpop.permute.xlu1 %1558 }
0x11d0   :  { %v1491_v28 = vadd.f32 %v4237_v59, %v1490_v16  ;;  %1993 = vmatpush.msra.mxu0 %v4248_v37  ;;  %v1697_v16 = vpop.f32.mrf.mxu1 }
0x11d1   :  { %v4397_v14 = vadd.f32 %v1697_v16, %v4394_v35 }
0x11d2   :  { %v1495_v63 = vsel %vm4286_vm0, %v4237_v59, %v1491_v28  ;;  %1994 = vmatpush.msra.mxu0 %v4251_v56  ;;  %v4409_v28 = vld [vmem:[%s4720_s7] sm:$0x3]  ;;  %s3630_s7 = smov [#allocation14]  }
0x11d3   :  { %v1500_v24 = vsel %vm1497_vm1, %v1499_v43, %v1495_v63  ;;  %v1762_v1 = vrot.slane %v4397_v14, 2  ;;  %v1582_v6 = vperm.slane %v4409_v28, 0  ;;  %v1583_v7 = vperm.slane %v4409_v28, 1  ;;  %s3027_s9 = sshll.u32 %s3630_s7, 4  ;;  %s3028_s9 = int_to_ptr.vmem [resolvable:$true] %s3027_s9 }
0x11d4   :  { %v1513_v23 = vsub.f32 1.0, %v1500_v24  ;;  %v1522_v48 = vmul.f32 %v1520_v9, %v1500_v24  ;;  %1995 = vmatpush.msra.mxu0 %v4260_v0 }
0x11d6   :  { %1996 = vmatpush.msra.mxu0 %v4266_v4 }
0x11d8   :  { %2315 = vmatpush.msrb.mxu0 %v4233_v39 }
0x11da   :  { %2316 = vmatpush.msrb.mxu0 %v4235_v58 }
0x11dc   :  { %2317 = vmatpush.msrb.mxu0 %v4243_v8 }
0x11de   :  { %2318 = vmatpush.msrb.mxu0 %v4245_v21 }
0x11e0   :  { %2319 = vmatpush.msrb.mxu0 %v4248_v37 }
0x11e2   :  { %2320 = vmatpush.msrb.mxu0 %v4251_v56 }
0x11e4   :  { %2321 = vmatpush.msrb.mxu0 %v4260_v0 }
0x11e6   :  { %2322 = vmatpush.msrb.mxu0 %v4266_v4 }
0x121a   :  { %v1453_v55 = vpop.permute.xlu2 %1452 }
0x1230   :  { %v1516_v44 = vpop.permute.xlu0 %1515 }
0x1231   :  { %v1518_v61 = vmul.f32 %v1516_v44, %v1513_v23 }
0x1233   :  { %v4308_v49 = vadd.f32 %v1522_v48, %v1518_v61 }
0x1235   :  { %v1540_v22 = vsel %vm1531_vm9, %v4308_v49, %v4178_v29  ;;  %v1455_v29 = vmul.f32 %v1453_v55, %v1450_v25 }
0x1236   :  { %v1541_v13 = vsel %vm1533_vm10, %v1540_v22, %v4137_v5 }
0x1237   :  { %v1542_v31 = vsel %vm1535_vm11, %v1541_v13, %v4098_v50 }
0x1238   :  { %v1458_v51 = vpop.permute.xlu0 %1457  ;;  %1556 = vrot.lane.b32.xlu2 %v1542_v31, %s3629_s13 }
0x1239   :  { %v1460_v33 = vmul.f32 %v1458_v51, %v4215_v10  ;;  %v1565_v10 = vld [vmem:[#allocation8 + $0x8] sm:$0xff] }
0x123a   :  { %1630 = vmatpush.msra.mxu3 %v1565_v10 }
0x123b   :  { %v4329_v5 = vadd.f32 %v1460_v33, %v1455_v29 }
0x123c   :  { %1843 = vmatpush.msrb.mxu3 %v4253_v11 }
0x123d   :  { %v1539_v50 = vsel %vm1535_vm11, %v4189_v60, %v4329_v5  ;;  %v1564_v60 = vld [vmem:[#allocation8] sm:$0xff] }
0x123e   :  { %1550 = vrot.lane.b32.xlu0 %v1539_v50, %s3628_s4  ;;  %1607 = vmatpush.msra.mxu2 %v1564_v60 }
0x123f   :  { %1844 = vmatpush.msrb.mxu3 %v4255_v53 }
0x1240   :  { %1823 = vmatpush.msrb.mxu2 %v4233_v39  ;;  %1784 = vrot.lane.b32.xlu2 %v1762_v1, %s3627_s3 }
0x1241   :  { %1845 = vmatpush.msrb.mxu3 %v4262_v62 }
0x1242   :  { %1824 = vmatpush.msrb.mxu2 %v4235_v58 }
0x1243   :  { %1846 = vmatpush.msrb.mxu3 %v4268_v32 }
0x1244   :  { %1825 = vmatpush.msrb.mxu2 %v4243_v8  ;;  %v1677_v59 = vpop.f32.mrf.mxu0 }
0x1245   :  { %1847 = vmatpush.msrb.mxu3 %v4274_v3  ;;  %v1678_v26 = vadd.f32 %v1677_v59, %v4386_v54 }
0x1246   :  { %1826 = vmatpush.msrb.mxu2 %v4245_v21 }
0x1247   :  { %1848 = vmatpush.msrb.mxu3 %v4282_v41  ;;  %1721 = vrot.lane.b32.xlu0 %v1678_v26, %s3627_s3  ;;  %v1739_v22 = vrot.slane %v1678_v26, 2 }
0x1248   :  { %1827 = vmatpush.msrb.mxu2 %v4248_v37 }
0x1249   :  { %1849 = vmatpush.msrb.mxu3 %v4294_v40 }
0x124a   :  { %1828 = vmatpush.msrb.mxu2 %v4251_v56 }
0x124b   :  { %1850 = vmatpush.msrb.mxu3 %v4298_v46 }
0x124c   :  { %1829 = vmatpush.msrb.mxu2 %v4260_v0 }
0x124e   :  { %1830 = vmatpush.msrb.mxu2 %v4266_v4 }
0x1292   :  { %v1557_v36 = vpop.permute.xlu2 %1556 }
0x1293   :  { %v1562_v52 = vsel %vm388_vm13, %v1549_v57, %v1557_v36 }
0x1294   :  { %3084 = vmatmul.msk.f32.vlgmr.msra.gmra.mxu2 %vm233_vm14, %v1562_v52  ;;  %3086 = vmatmul.msk.f32.vlgmr.msra.gmra.mxu3 %vm233_vm14, %v1562_v52 }
0x1295   :  { %2154 = vmatpush.msra.mxu2 %v4233_v39  ;;  %2174 = vmatpush.msra.mxu3 %v4253_v11 }
0x1297   :  { %2155 = vmatpush.msra.mxu2 %v4235_v58  ;;  %2175 = vmatpush.msra.mxu3 %v4255_v53 }
0x1299   :  { %2156 = vmatpush.msra.mxu2 %v4243_v8  ;;  %2176 = vmatpush.msra.mxu3 %v4262_v62 }
0x129a   :  { %v1785_v16 = vpop.permute.xlu2 %1784 }
0x129b   :  { %2157 = vmatpush.msra.mxu2 %v4245_v21  ;;  %2177 = vmatpush.msra.mxu3 %v4268_v32 }
0x129d   :  { %2158 = vmatpush.msra.mxu2 %v4248_v37  ;;  %2178 = vmatpush.msra.mxu3 %v4274_v3 }
0x129f   :  { %2159 = vmatpush.msra.mxu2 %v4251_v56  ;;  %2179 = vmatpush.msra.mxu3 %v4282_v41 }
0x12a1   :  { %2160 = vmatpush.msra.mxu2 %v4260_v0  ;;  %2180 = vmatpush.msra.mxu3 %v4294_v40 }
0x12a3   :  { %2161 = vmatpush.msra.mxu2 %v4266_v4  ;;  %2181 = vmatpush.msra.mxu3 %v4298_v46 }
0x12b0   :  { %v1551_v38 = vpop.permute.xlu0 %1550 }
0x12b1   :  { %v1563_v34 = vsel %vm388_vm13, %v1551_v38, %v1559_v2 }
0x12b2   :  { %3085 = vmatmul.msk.f32.gmra.mxu2 %vm233_vm14, %v1563_v34  ;;  %3087 = vmatmul.msk.f32.gmra.mxu3 %vm233_vm14, %v1563_v34 }
0x12b9   :  { %v1722_v48 = vpop.permute.xlu0 %1721 }
0x1317   :  { %v1609_v12 = vpop.f32.mrf.mxu2  ;;  %v1632_v15 = vpop.f32.mrf.mxu3 }
0x1318   :  { %v4413_v17 = vadd.f32 %v1609_v12, %v1582_v6  ;;  %v4415_v18 = vadd.f32 %v1632_v15, %v1583_v7 }
0x131a   :  { %v1700_v20 = vadd.f32 %v1678_v26, %v4413_v17 }
0x131c   :  { %v3088_v63 = vmul.f32 -1.442695, %v1700_v20 }
0x131e   :  { %3272 = vpow2.f32 %v3088_v63 }
0x1324   :  { %v3273_v42 = vpop.eup %3272 }
0x1325   :  { %v1704_v43 = vadd.f32 1.0, %v3273_v42 }
0x1327   :  { %3274 = vrcp.f32 %v1704_v43  ;;  %v1716_v19 = vand.u32 2147483648, %v1704_v43  ;;  %v1714_v9 = vand.u32 2147483647, %v1704_v43  ;;  %vm1710_vm11 = vweird.f32 %v1704_v43 }
0x1329   :  { %v1717_v61 = vor.u32 1.1754944e-38, %v1716_v19  ;;  %vm1715_vm3 = vcmp.eq.f32.partialorder %v1714_v9, 8.507059e+37 }
0x132d   :  { %v3275_v45 = vpop.eup %3274 }
0x132e   :  { %v1706_v47 = vmul.f32 %v3275_v45, %v1704_v43  ;;  %vm1711_vm10 = vweird.f32 %v3275_v45 }
0x132f   :  { %vm1712_vm2 = vmor %vm1710_vm11, %vm1711_vm10 }
0x1330   :  { %v1707_v24 = vsub.f32 1.0, %v1706_v47 }
0x1332   :  { %v1708_v27 = vmul.f32 %v3275_v45, %v1707_v24 }
0x1334   :  { %v1709_v23 = vadd.f32 %v3275_v45, %v1708_v27 }
0x1335   :  { %v1612_v44 = vpop.f32.mrf.mxu2  ;;  %v1635_v15 = vpop.f32.mrf.mxu3 }
0x1336   :  { %v4418_v55 = vadd.f32 %v1612_v44, %v1582_v6  ;;  %v1713_v13 = vsel %vm1712_vm2, %v3275_v45, %v1709_v23  ;;  %v4425_v20 = vadd.f32 %v1635_v15, %v1583_v7 }
0x1337   :  { %v1718_v25 = vsel %vm1715_vm3, %v1717_v61, %v1713_v13 }
0x1338   :  { %v1724_v31 = vmul.f32 %v1722_v48, %v1718_v25  ;;  %v1741_v51 = vadd.f32 %v1739_v22, %v4418_v55  ;;  %v1731_v45 = vsub.f32 1.0, %v1718_v25  ;;  %v1737_v24 = vmul.f32 0.0, %v1718_v25 }
0x1339   :  { %v1764_v27 = vadd.f32 %v1762_v1, %v4425_v20 }
0x133a   :  { %1726 = vrot.lane.b32.xlu2 %v1724_v31, %s3627_s3  ;;  %v3089_v29 = vmul.f32 -1.442695, %v1741_v51 }
0x133b   :  { %v3090_v7 = vmul.f32 -1.442695, %v1764_v27 }
0x133c   :  { %3276 = vpow2.f32 %v3089_v29 }
0x1342   :  { %v3277_v33 = vpop.eup %3276 }
0x1343   :  { %v1745_v50 = vadd.f32 1.0, %v3277_v33 }
0x1345   :  { %3278 = vrcp.f32 %v1745_v50  ;;  %v1757_v36 = vand.u32 2147483648, %v1745_v50  ;;  %v1755_v30 = vand.u32 2147483647, %v1745_v50  ;;  %vm1751_vm5 = vweird.f32 %v1745_v50 }
0x1347   :  { %v1758_v26 = vor.u32 1.1754944e-38, %v1757_v36  ;;  %vm1756_vm7 = vcmp.eq.f32.partialorder %v1755_v30, 8.507059e+37 }
0x134b   :  { %v3279_v60 = vpop.eup %3278 }
0x134c   :  { %v1747_v10 = vmul.f32 %v3279_v60, %v1745_v50  ;;  %vm1752_vm4 = vweird.f32 %v3279_v60 }
0x134d   :  { %vm1753_vm6 = vmor %vm1751_vm5, %vm1752_vm4 }
0x134e   :  { %v1748_v57 = vsub.f32 1.0, %v1747_v10 }
0x1350   :  { %v1749_v52 = vmul.f32 %v3279_v60, %v1748_v57 }
0x1352   :  { %v1750_v59 = vadd.f32 %v3279_v60, %v1749_v52 }
0x1354   :  { %v1754_v2 = vsel %vm1753_vm6, %v3279_v60, %v1750_v59 }
0x1355   :  { %v1759_v38 = vsel %vm1756_vm7, %v1758_v26, %v1754_v2 }
0x1356   :  { %v1787_v34 = vmul.f32 %v1785_v16, %v1759_v38 }
0x1358   :  { %1789 = vrot.lane.b32.xlu1 %v1787_v34, %s3627_s3 }
0x1394   :  { %v1727_v28 = vpop.permute.xlu2 %1726 }
0x1395   :  { %v1729_v6 = vadd.f32 %v1727_v28, %v4413_v17 }
0x1397   :  { %3280 = vtanh.f32 %v1729_v6 }
0x139d   :  { %v3281_v12 = vpop.eup %3280 }
0x139e   :  { %1733 = vrot.lane.b32.xlu1 %v3281_v12, %s3628_s4 }
0x13ca   :  { %v1790_v63 = vpop.permute.xlu1 %1789 }
0x13cb   :  { %v1792_v42 = vadd.f32 %v1790_v63, %v4425_v20 }
0x13cd   :  { %3282 = vtanh.f32 %v1792_v42 }
0x13ce   :  { %3284 = vpow2.f32 %v3090_v7 }
0x13d3   :  { %v3283_v43 = vpop.eup %3282 }
0x13d4   :  { %1796 = vrot.lane.b32.xlu0 %v3283_v43, %s3628_s4  ;;  %v3285_v23 = vpop.eup %3284 }
0x13d5   :  { %v1768_v44 = vadd.f32 1.0, %v3285_v23 }
0x13d7   :  { %3286 = vrcp.f32 %v1768_v44  ;;  %v1780_v25 = vand.u32 2147483648, %v1768_v44  ;;  %vm1774_vm12 = vweird.f32 %v1768_v44  ;;  %v1778_v51 = vand.u32 2147483647, %v1768_v44 }
0x13d9   :  { %v1781_v1 = vor.u32 1.1754944e-38, %v1780_v25  ;;  %vm1779_vm0 = vcmp.eq.f32.partialorder %v1778_v51, 8.507059e+37 }
0x13dd   :  { %v3287_v48 = vpop.eup %3286 }
0x13de   :  { %v1770_v61 = vmul.f32 %v3287_v48, %v1768_v44  ;;  %vm1775_vm8 = vweird.f32 %v3287_v48 }
0x13df   :  { %vm1776_vm15 = vmor %vm1774_vm12, %vm1775_vm8 }
0x13e0   :  { %v1771_v22 = vsub.f32 1.0, %v1770_v61 }
0x13e2   :  { %v1772_v13 = vmul.f32 %v3287_v48, %v1771_v22 }
0x13e4   :  { %v1773_v31 = vadd.f32 %v3287_v48, %v1772_v13 }
0x13e6   :  { %v1777_v14 = vsel %vm1776_vm15, %v3287_v48, %v1773_v31 }
0x13e7   :  { %v1782_v29 = vsel %vm1779_vm0, %v1781_v1, %v1777_v14 }
0x13e8   :  { %v1794_v33 = vsub.f32 1.0, %v1782_v29  ;;  %v1800_v60 = vmul.f32 0.0, %v1782_v29 }
0x1410   :  { %v1734_v47 = vpop.permute.xlu1 %1733 }
0x1411   :  { %v1736_v19 = vmul.f32 %v1734_v47, %v1731_v45 }
0x1413   :  { %v1738_v9 = vadd.f32 %v1737_v24, %v1736_v19 }
0x1415   :  { %1803 = vrot.lane.b32.xlu2 %v1738_v9, %s3628_s4 }
0x1446   :  { %v1797_v50 = vpop.permute.xlu0 %1796 }
0x1447   :  { %v1799_v10 = vmul.f32 %v1797_v50, %v1794_v33 }
0x1449   :  { %v1801_v57 = vadd.f32 %v1800_v60, %v1799_v10 }
0x144b   :  { %v1807_v36 = vrot.slane %v1801_v57, 6 }
0x144d   :  { %1808 = vrot.lane.b32.xlu0 %v1807_v36, %s3629_s13 }
0x146f   :  { %v1804_v52 = vpop.permute.xlu2 %1803 }
0x14bf   :  { %v1809_v30 = vpop.permute.xlu0 %1808 }
0x14c0   :  { %v4435_v59 = vsel %vm388_vm13, %v1804_v52, %v1809_v30 }
0x14c1   :  { %3091 = vmatmul.msk.f32.vlgmr.msrb.gmra.mxu2 %vm233_vm14, %v4435_v59  ;;  %3092 = vmatmul.msk.f32.vlgmr.msrb.gmra.mxu3 %vm233_vm14, %v4435_v59 }
0x14c2   :  { %2476 = vmatpush.msrb.mxu2 %v4233_v39  ;;  %2496 = vmatpush.msrb.mxu3 %v4253_v11 }
0x14c4   :  { %2477 = vmatpush.msrb.mxu2 %v4235_v58  ;;  %2497 = vmatpush.msrb.mxu3 %v4255_v53 }
0x14c6   :  { %2478 = vmatpush.msrb.mxu2 %v4243_v8  ;;  %2498 = vmatpush.msrb.mxu3 %v4262_v62 }
0x14c8   :  { %2479 = vmatpush.msrb.mxu2 %v4245_v21  ;;  %2499 = vmatpush.msrb.mxu3 %v4268_v32 }
0x14ca   :  { %2480 = vmatpush.msrb.mxu2 %v4248_v37  ;;  %2500 = vmatpush.msrb.mxu3 %v4274_v3 }
0x14cc   :  { %2481 = vmatpush.msrb.mxu2 %v4251_v56  ;;  %2501 = vmatpush.msrb.mxu3 %v4282_v41 }
0x14ce   :  { %2482 = vmatpush.msrb.mxu2 %v4260_v0  ;;  %2502 = vmatpush.msrb.mxu3 %v4294_v40 }
0x14d0   :  { %2483 = vmatpush.msrb.mxu2 %v4266_v4  ;;  %2503 = vmatpush.msrb.mxu3 %v4298_v46 }
0x1544   :  { %v1832_v26 = vpop.f32.mrf.mxu2  ;;  %v1852_v16 = vpop.f32.mrf.mxu3 }
0x1545   :  { %v1833_v2 = vadd.f32 %v1832_v26, %v4386_v54  ;;  %v4459_v38 = vadd.f32 %v1852_v16, %v4394_v35  ;;  %v1961_v26 = vrot.slane %v4435_v59, 4 }
0x1547   :  { %v1856_v34 = vrot.slane %v1833_v2, 6  ;;  %v1923_v28 = vrot.slane %v4459_v38, 4  ;;  %v1900_v42 = vrot.slane %v1833_v2, 4 }
0x1549   :  { %1945 = vrot.lane.b32.xlu1 %v1923_v28, %s3627_s3  ;;  %1878 = vrot.lane.b32.xlu2 %v1856_v34, %s3627_s3  ;;  %v1858_v6 = vadd.f32 %v1856_v34, %v4413_v17  ;;  %v1902_v43 = vadd.f32 %v1900_v42, %v4418_v55  ;;  %v1925_v42 = vadd.f32 %v1923_v28, %v4425_v20 }
0x154b   :  { %v3093_v12 = vmul.f32 -1.442695, %v1858_v6  ;;  %v3094_v47 = vmul.f32 -1.442695, %v1902_v43  ;;  %v3095_v43 = vmul.f32 -1.442695, %v1925_v42 }
0x154d   :  { %3288 = vpow2.f32 %v3093_v12 }
0x1553   :  { %v3289_v15 = vpop.eup %3288 }
0x1554   :  { %v1862_v63 = vadd.f32 1.0, %v3289_v15 }
0x1556   :  { %3290 = vrcp.f32 %v1862_v63  ;;  %v1874_v44 = vand.u32 2147483648, %v1862_v63  ;;  %vm1868_vm10 = vweird.f32 %v1862_v63  ;;  %v1872_v48 = vand.u32 2147483647, %v1862_v63 }
0x1557   :  { %3292 = vpow2.f32 %v3094_v47 }
0x1558   :  { %v1875_v22 = vor.u32 1.1754944e-38, %v1874_v44  ;;  %vm1873_vm2 = vcmp.eq.f32.partialorder %v1872_v48, 8.507059e+37 }
0x155c   :  { %v3291_v45 = vpop.eup %3290 }
0x155d   :  { %v1864_v24 = vmul.f32 %v3291_v45, %v1862_v63  ;;  %v3293_v27 = vpop.eup %3292  ;;  %vm1869_vm1 = vweird.f32 %v3291_v45  ;;  %v1894_v63 = vrot.slane %v4435_v59, 6 }
0x155e   :  { %v1906_v7 = vadd.f32 1.0, %v3293_v27  ;;  %vm1870_vm11 = vmor %vm1868_vm10, %vm1869_vm1 }
0x155f   :  { %v1865_v19 = vsub.f32 1.0, %v1864_v24 }
0x1560   :  { %3294 = vrcp.f32 %v1906_v7  ;;  %v1918_v50 = vand.u32 2147483648, %v1906_v7  ;;  %vm1912_vm4 = vweird.f32 %v1906_v7  ;;  %v1916_v60 = vand.u32 2147483647, %v1906_v7 }
0x1561   :  { %v1866_v9 = vmul.f32 %v3291_v45, %v1865_v19 }
0x1562   :  { %v1919_v57 = vor.u32 1.1754944e-38, %v1918_v50  ;;  %vm1917_vm6 = vcmp.eq.f32.partialorder %v1916_v60, 8.507059e+37 }
0x1563   :  { %v1867_v23 = vadd.f32 %v3291_v45, %v1866_v9 }
0x1565   :  { %v1871_v61 = vsel %vm1870_vm11, %v3291_v45, %v1867_v23 }
0x1566   :  { %v4468_v31 = vsel %vm1873_vm2, %v1875_v22, %v1871_v61  ;;  %v3295_v51 = vpop.eup %3294 }
0x1567   :  { %v1908_v14 = vmul.f32 %v3295_v51, %v1906_v7  ;;  %vm1913_vm3 = vweird.f32 %v3295_v51 }
0x1568   :  { %vm1914_vm5 = vmor %vm1912_vm4, %vm1913_vm3 }
0x1569   :  { %v1909_v1 = vsub.f32 1.0, %v1908_v14 }
0x156b   :  { %v1910_v29 = vmul.f32 %v3295_v51, %v1909_v1 }
0x156d   :  { %v1911_v33 = vadd.f32 %v3295_v51, %v1910_v29  ;;  %v1888_v29 = vsub.f32 1.0, %v4468_v31 }
0x156f   :  { %v1915_v10 = vsel %vm1914_vm5, %v3295_v51, %v1911_v33 }
0x1570   :  { %v1920_v52 = vsel %vm1917_vm6, %v1919_v57, %v1915_v10 }
0x15a3   :  { %v1879_v13 = vpop.permute.xlu2 %1878 }
0x15a4   :  { %v1881_v25 = vmul.f32 %v1879_v13, %v4468_v31 }
0x15a6   :  { %1883 = vrot.lane.b32.xlu1 %v1881_v25, %s3627_s3 }
0x15bb   :  { %v1946_v36 = vpop.permute.xlu1 %1945 }
0x15bc   :  { %v1948_v30 = vmul.f32 %v1946_v36, %v1920_v52 }
0x15be   :  { %1950 = vrot.lane.b32.xlu0 %v1948_v30, %s3627_s3 }
0x15c6   :  { %1962 = vrot.lane.b32.xlu0 %v1961_v26, %s3628_s4 }
0x1618   :  { %v1884_v16 = vpop.permute.xlu1 %1883 }
0x1619   :  { %v1886_v2 = vadd.f32 %v1884_v16, %v4413_v17 }
0x161b   :  { %3296 = vtanh.f32 %v1886_v2 }
0x1621   :  { %v3297_v34 = vpop.eup %3296 }
0x1622   :  { %1890 = vrot.lane.b32.xlu1 %v3297_v34, %s3628_s4 }
0x1630   :  { %v1951_v6 = vpop.permute.xlu0 %1950 }
0x1631   :  { %v1953_v12 = vadd.f32 %v1951_v6, %v4425_v20 }
0x1633   :  { %3298 = vtanh.f32 %v1953_v12 }
0x1634   :  { %3300 = vpow2.f32 %v3095_v43 }
0x1638   :  { %v1963_v28 = vpop.permute.xlu0 %1962 }
0x1639   :  { %v3299_v15 = vpop.eup %3298 }
0x163a   :  { %1957 = vrot.lane.b32.xlu2 %v3299_v15, %s3628_s4  ;;  %v3301_v45 = vpop.eup %3300 }
0x163b   :  { %v1929_v47 = vadd.f32 1.0, %v3301_v45 }
0x163d   :  { %3302 = vrcp.f32 %v1929_v47  ;;  %v1941_v23 = vand.u32 2147483648, %v1929_v47  ;;  %vm1935_vm8 = vweird.f32 %v1929_v47  ;;  %v1939_v59 = vand.u32 2147483647, %v1929_v47 }
0x163f   :  { %v1942_v48 = vor.u32 1.1754944e-38, %v1941_v23  ;;  %vm1940_vm15 = vcmp.eq.f32.partialorder %v1939_v59, 8.507059e+37 }
0x1642   :  { %1895 = vrot.lane.b32.xlu2 %v1894_v63, %s3629_s13 }
0x1643   :  { %v3303_v24 = vpop.eup %3302 }
0x1644   :  { %v1931_v19 = vmul.f32 %v3303_v24, %v1929_v47  ;;  %vm1936_vm7 = vweird.f32 %v3303_v24 }
0x1645   :  { %vm1937_vm12 = vmor %vm1935_vm8, %vm1936_vm7 }
0x1646   :  { %v1932_v27 = vsub.f32 1.0, %v1931_v19 }
0x1648   :  { %v1933_v9 = vmul.f32 %v3303_v24, %v1932_v27 }
0x164a   :  { %v1934_v7 = vadd.f32 %v3303_v24, %v1933_v9 }
0x164c   :  { %v1938_v44 = vsel %vm1937_vm12, %v3303_v24, %v1934_v7 }
0x164d   :  { %v1943_v38 = vsel %vm1940_vm15, %v1942_v48, %v1938_v44 }
0x164e   :  { %v1955_v61 = vsub.f32 1.0, %v1943_v38  ;;  %v1965_v13 = vmul.f32 %v1963_v28, %v1943_v38 }
0x1694   :  { %v1958_v22 = vpop.permute.xlu2 %1957  ;;  %v1891_v1 = vpop.permute.xlu1 %1890 }
0x1695   :  { %v1960_v25 = vmul.f32 %v1958_v22, %v1955_v61  ;;  %v1893_v50 = vmul.f32 %v1891_v1, %v1888_v29 }
0x1697   :  { %v1966_v51 = vadd.f32 %v1965_v13, %v1960_v25 }
0x1699   :  { %v1972_v14 = vrot.slane %v1966_v51, 2 }
0x169b   :  { %1973 = vrot.lane.b32.xlu1 %v1972_v14, %s3629_s13 }
0x169c   :  { %v1896_v33 = vpop.permute.xlu2 %1895 }
0x169d   :  { %v1898_v60 = vmul.f32 %v1896_v33, %v4468_v31 }
0x169f   :  { %v1899_v10 = vadd.f32 %v1898_v60, %v1893_v50 }
0x16a1   :  { %1968 = vrot.lane.b32.xlu0 %v1899_v10, %s3628_s4 }
0x170d   :  { %v1974_v57 = vpop.permute.xlu1 %1973 }
0x1713   :  { %v1969_v36 = vpop.permute.xlu0 %1968 }
0x1714   :  { %v4489_v52 = vsel %vm388_vm13, %v1969_v36, %v1974_v57 }
0x1715   :  { %v1978_v30 = vrot.slane %v4489_v52, 2  ;;  %v2060_v33 = vrot.slane %v4489_v52, 6 }
0x1717   :  { %3096 = vmatmul.msk.f32.vlgmr.msra.gmra.mxu0 %vm233_vm14, %v1978_v30  ;;  %3097 = vmatmul.msk.f32.vlgmr.msra.gmra.mxu1 %vm233_vm14, %v1978_v30 }
0x1718   :  { %2642 = vmatpush.msra.mxu0 %v4233_v39  ;;  %2662 = vmatpush.msra.mxu1 %v4253_v11 }
0x171a   :  { %2643 = vmatpush.msra.mxu0 %v4235_v58  ;;  %2663 = vmatpush.msra.mxu1 %v4255_v53 }
0x171c   :  { %2644 = vmatpush.msra.mxu0 %v4243_v8  ;;  %2664 = vmatpush.msra.mxu1 %v4262_v62 }
0x171e   :  { %2645 = vmatpush.msra.mxu0 %v4245_v21  ;;  %2665 = vmatpush.msra.mxu1 %v4268_v32 }
0x1720   :  { %2646 = vmatpush.msra.mxu0 %v4248_v37  ;;  %2666 = vmatpush.msra.mxu1 %v4274_v3 }
0x1722   :  { %2647 = vmatpush.msra.mxu0 %v4251_v56  ;;  %2667 = vmatpush.msra.mxu1 %v4282_v41 }
0x1724   :  { %2648 = vmatpush.msra.mxu0 %v4260_v0  ;;  %2668 = vmatpush.msra.mxu1 %v4294_v40 }
0x1726   :  { %2649 = vmatpush.msra.mxu0 %v4266_v4  ;;  %2669 = vmatpush.msra.mxu1 %v4298_v46 }
0x1794   :  { %v1998_v39 = vpop.f32.mrf.mxu0  ;;  %v2018_v58 = vpop.f32.mrf.mxu1 }
0x1795   :  { %v1999_v8 = vadd.f32 %v1998_v39, %v4386_v54  ;;  %v4512_v21 = vadd.f32 %v2018_v58, %v4394_v35 }
0x1797   :  { %v2022_v37 = vrot.slane %v1999_v8, 4  ;;  %v2089_v56 = vrot.slane %v4512_v21, 6  ;;  %v2066_v11 = vrot.slane %v1999_v8, 6 }
0x1799   :  { %2111 = vrot.lane.b32.xlu2 %v2089_v56, %s3627_s3  ;;  %2044 = vrot.lane.b32.xlu0 %v2022_v37, %s3627_s3  ;;  %v2068_v53 = vadd.f32 %v2066_v11, %v4418_v55  ;;  %v2024_v32 = vadd.f32 %v2022_v37, %v4413_v17  ;;  %v2091_v50 = vadd.f32 %v2089_v56, %v4425_v20 }
0x179b   :  { %v3099_v0 = vmul.f32 -1.442695, %v2068_v53  ;;  %v3098_v31 = vmul.f32 -1.442695, %v2024_v32  ;;  %v3100_v60 = vmul.f32 -1.442695, %v2091_v50 }
0x179d   :  { %3304 = vpow2.f32 %v3099_v0 }
0x17a3   :  { %v3305_v62 = vpop.eup %3304 }
0x17a4   :  { %v2072_v4 = vadd.f32 1.0, %v3305_v62 }
0x17a6   :  { %3306 = vrcp.f32 %v2072_v4  ;;  %v2084_v15 = vand.u32 2147483648, %v2072_v4  ;;  %vm2078_vm1 = vweird.f32 %v2072_v4  ;;  %v2082_v63 = vand.u32 2147483647, %v2072_v4 }
0x17a7   :  { %3308 = vpow2.f32 %v3098_v31 }
0x17a8   :  { %v2085_v43 = vor.u32 1.1754944e-38, %v2084_v15  ;;  %vm2083_vm11 = vcmp.eq.f32.partialorder %v2082_v63, 8.507059e+37 }
0x17ac   :  { %v3307_v3 = vpop.eup %3306 }
0x17ad   :  { %v2074_v26 = vmul.f32 %v3307_v3, %v2072_v4  ;;  %v3309_v2 = vpop.eup %3308  ;;  %vm2079_vm0 = vweird.f32 %v3307_v3 }
0x17ae   :  { %v2028_v6 = vadd.f32 1.0, %v3309_v2  ;;  %vm2080_vm10 = vmor %vm2078_vm1, %vm2079_vm0 }
0x17af   :  { %v2075_v16 = vsub.f32 1.0, %v2074_v26 }
0x17b0   :  { %3310 = vrcp.f32 %v2028_v6  ;;  %v2040_v59 = vand.u32 2147483648, %v2028_v6  ;;  %vm2034_vm3 = vweird.f32 %v2028_v6  ;;  %v2038_v44 = vand.u32 2147483647, %v2028_v6 }
0x17b1   :  { %v2076_v34 = vmul.f32 %v3307_v3, %v2075_v16 }
0x17b2   :  { %v2041_v38 = vor.u32 1.1754944e-38, %v2040_v59  ;;  %vm2039_vm5 = vcmp.eq.f32.partialorder %v2038_v44, 8.507059e+37  ;;  %v3408_v59 = vld [vmem:[#allocation10 + $0x30] sm:$0xff]  ;;  %v3409_v44 = vld [vmem:[#allocation10 + $0x38] sm:$0xff] }
0x17b3   :  { %v2077_v12 = vadd.f32 %v3307_v3, %v2076_v34 }
0x17b5   :  { %v2081_v42 = vsel %vm2080_vm10, %v3307_v3, %v2077_v12 }
0x17b6   :  { %v2086_v47 = vsel %vm2083_vm11, %v2085_v43, %v2081_v42  ;;  %v3311_v19 = vpop.eup %3310 }
0x17b7   :  { %v2030_v27 = vmul.f32 %v3311_v19, %v2028_v6  ;;  %vm2035_vm2 = vweird.f32 %v3311_v19 }
0x17b8   :  { %vm2036_vm4 = vmor %vm2034_vm3, %vm2035_vm2 }
0x17b9   :  { %v2031_v9 = vsub.f32 1.0, %v2030_v27  ;;  %v3404_v27 = vld [vmem:[#allocation10 + $0x50] sm:$0xff] }
0x17bb   :  { %v2032_v7 = vmul.f32 %v3311_v19, %v2031_v9  ;;  %v3405_v9 = vld [vmem:[#allocation10 + $0x58] sm:$0xff] }
0x17bd   :  { %v2033_v23 = vadd.f32 %v3311_v19, %v2032_v7  ;;  %v3406_v7 = vld [vmem:[#allocation10 + $0x40] sm:$0xff] }
0x17bf   :  { %v2037_v48 = vsel %vm2036_vm4, %v3311_v19, %v2033_v23  ;;  %v3403_v19 = vld [vmem:[#allocation10 + $0x68] sm:$0xff] }
0x17c0   :  { %v2042_v61 = vsel %vm2039_vm5, %v2041_v38, %v2037_v48  ;;  %v3407_v23 = vld [vmem:[#allocation10 + $0x48] sm:$0xff]  ;;  %v3410_v48 = vld [vmem:[#allocation10 + $0x20] sm:$0xff]  ;;  %v3411_v38 = vld [vmem:[#allocation10 + $0x10] sm:$0xff] }
0x17c1   :  { %v2054_v16 = vsub.f32 1.0, %v2042_v61 }
0x17f3   :  { %v2112_v45 = vpop.permute.xlu2 %2111 }
0x17f4   :  { %v2114_v24 = vmul.f32 %v2112_v45, %v2086_v47  ;;  %v3400_v45 = vld [vmem:[#allocation10 + $0x70] sm:$0xff]  ;;  %v3401_v47 = vld [vmem:[#allocation10 + $0x78] sm:$0xff] }
0x17f6   :  { %2116 = vrot.lane.b32.xlu1 %v2114_v24, %s3627_s3  ;;  %v3402_v24 = vld [vmem:[#allocation10 + $0x60] sm:$0xff] }
0x17fe   :  { %2127 = vrot.lane.b32.xlu1 %v4489_v52, %s3628_s4 }
0x180b   :  { %v2045_v28 = vpop.permute.xlu0 %2044 }
0x180c   :  { %v2047_v22 = vmul.f32 %v2045_v28, %v2042_v61  ;;  %v3412_v28 = vld [vmem:[#allocation10] sm:$0xff] }
0x180e   :  { %2049 = vrot.lane.b32.xlu2 %v2047_v22, %s3627_s3 }
0x1868   :  { %v2117_v13 = vpop.permute.xlu1 %2116  ;;  %v2050_v25 = vpop.permute.xlu2 %2049 }
0x1869   :  { %v2119_v51 = vadd.f32 %v2117_v13, %v4425_v20  ;;  %v2052_v14 = vadd.f32 %v2050_v25, %v4413_v17 }
0x186b   :  { %3312 = vtanh.f32 %v2119_v51 }
0x186c   :  { %3314 = vtanh.f32 %v2052_v14 }
0x186d   :  { %3316 = vpow2.f32 %v3100_v60 }
0x1870   :  { %v2128_v56 = vpop.permute.xlu1 %2127 }
0x1871   :  { %v3313_v1 = vpop.eup %3312 }
0x1872   :  { %v3315_v29 = vpop.eup %3314  ;;  %2123 = vrot.lane.b32.xlu0 %v3313_v1, %s3628_s4 }
0x1873   :  { %2056 = vrot.lane.b32.xlu2 %v3315_v29, %s3628_s4  ;;  %v3317_v10 = vpop.eup %3316 }
0x1874   :  { %v2095_v57 = vadd.f32 1.0, %v3317_v10 }
0x1876   :  { %3318 = vrcp.f32 %v2095_v57  ;;  %v2107_v37 = vand.u32 2147483648, %v2095_v57  ;;  %vm2101_vm7 = vweird.f32 %v2095_v57  ;;  %v2105_v52 = vand.u32 2147483647, %v2095_v57 }
0x1878   :  { %v2108_v53 = vor.u32 1.1754944e-38, %v2107_v37  ;;  %vm2106_vm12 = vcmp.eq.f32.partialorder %v2105_v52, 8.507059e+37 }
0x187a   :  { %2061 = vrot.lane.b32.xlu0 %v2060_v33, %s3629_s13 }
0x187c   :  { %v3319_v36 = vpop.eup %3318 }
0x187d   :  { %v2097_v30 = vmul.f32 %v3319_v36, %v2095_v57  ;;  %vm2102_vm6 = vweird.f32 %v3319_v36 }
0x187e   :  { %vm2103_vm8 = vmor %vm2101_vm7, %vm2102_vm6 }
0x187f   :  { %v2098_v39 = vsub.f32 1.0, %v2097_v30 }
0x1881   :  { %v2099_v58 = vmul.f32 %v3319_v36, %v2098_v39 }
0x1883   :  { %v2100_v8 = vadd.f32 %v3319_v36, %v2099_v58 }
0x1885   :  { %v2104_v11 = vsel %vm2103_vm8, %v3319_v36, %v2100_v8 }
0x1886   :  { %v2109_v21 = vsel %vm2106_vm12, %v2108_v53, %v2104_v11 }
0x1887   :  { %v2121_v0 = vsub.f32 1.0, %v2109_v21  ;;  %v2130_v4 = vmul.f32 %v2128_v56, %v2109_v21 }
0x18cd   :  { %v2057_v26 = vpop.permute.xlu2 %2056 }
0x18ce   :  { %v2059_v34 = vmul.f32 %v2057_v26, %v2054_v16 }
0x18e4   :  { %v2124_v62 = vpop.permute.xlu0 %2123 }
0x18e5   :  { %v2126_v32 = vmul.f32 %v2124_v62, %v2121_v0 }
0x18e7   :  { %v2131_v3 = vadd.f32 %v2130_v4, %v2126_v32 }
0x18e9   :  { %v2137_v31 = vrot.slane %v2131_v3, 6 }
0x18eb   :  { %2138 = vrot.lane.b32.xlu2 %v2137_v31, %s3629_s13 }
0x18ec   :  { %v2062_v2 = vpop.permute.xlu0 %2061 }
0x18ed   :  { %v2064_v6 = vmul.f32 %v2062_v2, %v2042_v61 }
0x18ef   :  { %v2065_v12 = vadd.f32 %v2064_v6, %v2059_v34 }
0x18f1   :  { %2133 = vrot.lane.b32.xlu1 %v2065_v12, %s3628_s4 }
0x1945   :  { %v2139_v15 = vpop.permute.xlu2 %2138 }
0x1963   :  { %v2134_v63 = vpop.permute.xlu1 %2133 }
0x1964   :  { %v4537_v42 = vsel %vm388_vm13, %v2134_v63, %v2139_v15 }
0x1965   :  { %v4540_v43 = vrot.slane %v4537_v42, 4  ;;  %v2225_v63 = vrot.slane %v4537_v42, 6 }
0x1967   :  { %3101 = vmatmul.msk.f32.vlgmr.msra.gmra.mxu2 %vm233_vm14, %v4540_v43  ;;  %3102 = vmatmul.msk.f32.vlgmr.msra.gmra.mxu3 %vm233_vm14, %v4540_v43 }
0x1968   :  { %2807 = vmatpush.msra.mxu2 %v3400_v45  ;;  %2827 = vmatpush.msra.mxu3 %v3401_v47 }
0x196a   :  { %2808 = vmatpush.msra.mxu2 %v3402_v24  ;;  %2828 = vmatpush.msra.mxu3 %v3403_v19 }
0x196c   :  { %2809 = vmatpush.msra.mxu2 %v3404_v27  ;;  %2829 = vmatpush.msra.mxu3 %v3405_v9 }
0x196e   :  { %2810 = vmatpush.msra.mxu2 %v3406_v7  ;;  %2830 = vmatpush.msra.mxu3 %v3407_v23 }
0x1970   :  { %2811 = vmatpush.msra.mxu2 %v3408_v59  ;;  %2831 = vmatpush.msra.mxu3 %v3409_v44 }
0x1972   :  { %2812 = vmatpush.msra.mxu2 %v3410_v48  ;;  %2832 = vmatpush.msra.mxu3 %v4282_v41 }
0x1974   :  { %2813 = vmatpush.msra.mxu2 %v3411_v38  ;;  %2833 = vmatpush.msra.mxu3 %v4294_v40 }
0x1976   :  { %2814 = vmatpush.msra.mxu2 %v3412_v28  ;;  %2834 = vmatpush.msra.mxu3 %v4298_v46 }
0x19ea   :  { %v2163_v61 = vpop.f32.mrf.mxu2  ;;  %v2183_v22 = vpop.f32.mrf.mxu3 }
0x19eb   :  { %v2164_v13 = vadd.f32 %v2163_v61, %v4386_v54  ;;  %v4551_v25 = vadd.f32 %v2183_v22, %v4394_v35 }
0x19ed   :  { %v2187_v51 = vrot.slane %v2164_v13, 2  ;;  %2272 = vrot.lane.b32.xlu0 %v4551_v25, %s3627_s3  ;;  %v2231_v41 = vadd.f32 %v2164_v13, %v4418_v55 }
0x19ef   :  { %2209 = vrot.lane.b32.xlu1 %v2187_v51, %s3627_s3  ;;  %v2189_v40 = vadd.f32 %v2187_v51, %v4413_v17  ;;  %v3104_v14 = vmul.f32 -1.442695, %v2231_v41 }
0x19f1   :  { %v3103_v1 = vmul.f32 -1.442695, %v2189_v40  ;;  %3320 = vpow2.f32 %v3104_v14 }
0x19f3   :  { %3322 = vpow2.f32 %v3103_v1 }
0x19f7   :  { %v3321_v46 = vpop.eup %3320 }
0x19f8   :  { %v2235_v33 = vadd.f32 1.0, %v3321_v46 }
0x19f9   :  { %v3323_v29 = vpop.eup %3322 }
0x19fa   :  { %v2193_v50 = vadd.f32 1.0, %v3323_v29  ;;  %3324 = vrcp.f32 %v2235_v33  ;;  %v2247_v52 = vand.u32 2147483648, %v2235_v33  ;;  %vm2241_vm0 = vweird.f32 %v2235_v33 }
0x19fb   :  { %v2245_v11 = vand.u32 2147483647, %v2235_v33 }
0x19fc   :  { %3326 = vrcp.f32 %v2193_v50  ;;  %v2205_v21 = vand.u32 2147483648, %v2193_v50  ;;  %vm2199_vm11 = vweird.f32 %v2193_v50  ;;  %v2203_v0 = vand.u32 2147483647, %v2193_v50 }
0x19fd   :  { %v2248_v62 = vor.u32 1.1754944e-38, %v2247_v52  ;;  %vm2246_vm3 = vcmp.eq.f32.partialorder %v2245_v11, 8.507059e+37 }
0x19fe   :  { %v2206_v31 = vor.u32 1.1754944e-38, %v2205_v21  ;;  %vm2204_vm4 = vcmp.eq.f32.partialorder %v2203_v0, 8.507059e+37 }
0x1a00   :  { %v3325_v60 = vpop.eup %3324 }
0x1a01   :  { %v2237_v57 = vmul.f32 %v3325_v60, %v2235_v33  ;;  %vm2242_vm15 = vweird.f32 %v3325_v60 }
0x1a02   :  { %v3327_v10 = vpop.eup %3326  ;;  %vm2243_vm10 = vmor %vm2241_vm0, %vm2242_vm15 }
0x1a03   :  { %v2195_v36 = vmul.f32 %v3327_v10, %v2193_v50  ;;  %v2238_v30 = vsub.f32 1.0, %v2237_v57  ;;  %vm2200_vm1 = vweird.f32 %v3327_v10 }
0x1a04   :  { %vm2201_vm2 = vmor %vm2199_vm11, %vm2200_vm1 }
0x1a05   :  { %v2196_v39 = vsub.f32 1.0, %v2195_v36  ;;  %v2239_v58 = vmul.f32 %v3325_v60, %v2238_v30 }
0x1a07   :  { %v2197_v8 = vmul.f32 %v3327_v10, %v2196_v39  ;;  %v2240_v37 = vadd.f32 %v3325_v60, %v2239_v58 }
0x1a09   :  { %v2198_v53 = vadd.f32 %v3327_v10, %v2197_v8  ;;  %v2244_v56 = vsel %vm2243_vm10, %v3325_v60, %v2240_v37 }
0x1a0a   :  { %v2249_v3 = vsel %vm2246_vm3, %v2248_v62, %v2244_v56 }
0x1a0b   :  { %v2202_v4 = vsel %vm2201_vm2, %v3327_v10, %v2198_v53 }
0x1a0c   :  { %v2207_v2 = vsel %vm2204_vm4, %v2206_v31, %v2202_v4 }
0x1a0d   :  { %v2219_v46 = vsub.f32 1.0, %v2207_v2 }
0x1a5f   :  { %v2273_v32 = vpop.permute.xlu0 %2272 }
0x1a60   :  { %v2275_v26 = vmul.f32 %v2273_v32, %v2249_v3 }
0x1a61   :  { %v2210_v16 = vpop.permute.xlu1 %2209 }
0x1a62   :  { %v2212_v34 = vmul.f32 %v2210_v16, %v2207_v2  ;;  %2277 = vrot.lane.b32.xlu2 %v2275_v26, %s3627_s3 }
0x1a64   :  { %2214 = vrot.lane.b32.xlu0 %v2212_v34, %s3627_s3 }
0x1a6a   :  { %2288 = vrot.lane.b32.xlu2 %v4540_v43, %s3628_s4  ;;  %v2251_v43 = vadd.f32 %v4551_v25, %v4425_v20 }
0x1a6c   :  { %v3105_v19 = vmul.f32 -1.442695, %v2251_v43 }
0x1abc   :  { %v2278_v6 = vpop.permute.xlu2 %2277 }
0x1abd   :  { %v2280_v12 = vadd.f32 %v2278_v6, %v4425_v20 }
0x1abf   :  { %3328 = vtanh.f32 %v2280_v12 }
0x1ac4   :  { %v2289_v20 = vpop.permute.xlu2 %2288 }
0x1ac5   :  { %v3329_v15 = vpop.eup %3328 }
0x1ac6   :  { %2284 = vrot.lane.b32.xlu1 %v3329_v15, %s3628_s4 }
0x1ace   :  { %2226 = vrot.lane.b32.xlu1 %v2225_v63, %s3629_s13 }
0x1ad6   :  { %v2215_v45 = vpop.permute.xlu0 %2214 }
0x1ad7   :  { %v2217_v47 = vadd.f32 %v2215_v45, %v4413_v17 }
0x1ad9   :  { %3330 = vtanh.f32 %v2217_v47 }
0x1ada   :  { %3332 = vpow2.f32 %v3105_v19 }
0x1adf   :  { %v3331_v24 = vpop.eup %3330 }
0x1ae0   :  { %2221 = vrot.lane.b32.xlu0 %v3331_v24, %s3628_s4  ;;  %v3333_v27 = vpop.eup %3332 }
0x1ae1   :  { %v2255_v9 = vadd.f32 1.0, %v3333_v27 }
0x1ae3   :  { %3334 = vrcp.f32 %v2255_v9  ;;  %v2267_v48 = vand.u32 2147483648, %v2255_v9  ;;  %vm2261_vm6 = vweird.f32 %v2255_v9  ;;  %v2265_v38 = vand.u32 2147483647, %v2255_v9 }
0x1ae5   :  { %v2268_v61 = vor.u32 1.1754944e-38, %v2267_v48  ;;  %vm2266_vm8 = vcmp.eq.f32.partialorder %v2265_v38, 8.507059e+37 }
0x1ae9   :  { %v3335_v7 = vpop.eup %3334 }
0x1aea   :  { %v2257_v23 = vmul.f32 %v3335_v7, %v2255_v9  ;;  %vm2262_vm5 = vweird.f32 %v3335_v7 }
0x1aeb   :  { %vm2263_vm7 = vmor %vm2261_vm6, %vm2262_vm5 }
0x1aec   :  { %v2258_v42 = vsub.f32 1.0, %v2257_v23 }
0x1aee   :  { %v2259_v59 = vmul.f32 %v3335_v7, %v2258_v42 }
0x1af0   :  { %v2260_v44 = vadd.f32 %v3335_v7, %v2259_v59 }
0x1af2   :  { %v2264_v28 = vsel %vm2263_vm7, %v3335_v7, %v2260_v44 }
0x1af3   :  { %v2269_v22 = vsel %vm2266_vm8, %v2268_v61, %v2264_v28 }
0x1af4   :  { %v2282_v13 = vsub.f32 1.0, %v2269_v22  ;;  %v2291_v51 = vmul.f32 %v2289_v20, %v2269_v22 }
0x1b38   :  { %v2285_v25 = vpop.permute.xlu1 %2284 }
0x1b39   :  { %v2287_v41 = vmul.f32 %v2285_v25, %v2282_v13 }
0x1b3b   :  { %v2292_v40 = vadd.f32 %v2291_v51, %v2287_v41 }
0x1b3d   :  { %v2298_v14 = vrot.slane %v2292_v40, 2 }
0x1b3f   :  { %2299 = vrot.lane.b32.xlu0 %v2298_v14, %s3629_s13 }
0x1b40   :  { %v2227_v1 = vpop.permute.xlu1 %2226 }
0x1b41   :  { %v2229_v33 = vmul.f32 %v2227_v1, %v2207_v2 }
0x1b52   :  { %v2222_v29 = vpop.permute.xlu0 %2221 }
0x1b53   :  { %v2224_v50 = vmul.f32 %v2222_v29, %v2219_v46 }
0x1b55   :  { %v2230_v60 = vadd.f32 %v2229_v33, %v2224_v50 }
0x1b57   :  { %2294 = vrot.lane.b32.xlu2 %v2230_v60, %s3628_s4 }
0x1bb1   :  { %v2295_v10 = vpop.permute.xlu2 %2294  ;;  %v2300_v57 = vpop.permute.xlu0 %2299 }
0x1bb2   :  { %v2302_v36 = vsel %vm388_vm13, %v2295_v10, %v2300_v57 }
0x1bb3   :  { %v4573_v30 = vrot.slane %v2302_v36, 6 }
0x1bb5   :  { %3106 = vmatmul.msk.f32.vlgmr.msrb.gmra.mxu0 %vm233_vm14, %v4573_v30  ;;  %3107 = vmatmul.msk.f32.vlgmr.msrb.gmra.mxu1 %vm233_vm14, %v4573_v30 }
0x1c32   :  { %v2324_v39 = vpop.f32.mrf.mxu0  ;;  %v2344_v58 = vpop.f32.mrf.mxu1 }
0x1c33   :  { %v2325_v8 = vadd.f32 %v2324_v39, %v4386_v54  ;;  %v4581_v37 = vadd.f32 %v2344_v58, %v4394_v35 }
0x1c35   :  { %v2412_v52 = vrot.slane %v4581_v37, 2  ;;  %2368 = vrot.lane.b32.xlu2 %v2325_v8, %s3627_s3  ;;  %v2347_v11 = vadd.f32 %v2325_v8, %v4418_v55  ;;  %v2389_v0 = vrot.slane %v2325_v8, 2 }
0x1c37   :  { %2434 = vrot.lane.b32.xlu1 %v2412_v52, %s3627_s3  ;;  %v3108_v53 = vmul.f32 -1.442695, %v2347_v11  ;;  %v2391_v62 = vadd.f32 %v2389_v0, %v4413_v17  ;;  %v2414_v41 = vadd.f32 %v2412_v52, %v4415_v18 }
0x1c39   :  { %3336 = vpow2.f32 %v3108_v53  ;;  %v3109_v32 = vmul.f32 -1.442695, %v2391_v62  ;;  %v3110_v40 = vmul.f32 -1.442695, %v2414_v41 }
0x1c3f   :  { %v3337_v21 = vpop.eup %3336 }
0x1c40   :  { %v2351_v56 = vadd.f32 1.0, %v3337_v21 }
0x1c42   :  { %3338 = vrcp.f32 %v2351_v56  ;;  %v2363_v6 = vand.u32 2147483648, %v2351_v56  ;;  %vm2357_vm15 = vweird.f32 %v2351_v56  ;;  %v2361_v12 = vand.u32 2147483647, %v2351_v56 }
0x1c43   :  { %3340 = vpow2.f32 %v3109_v32 }
0x1c44   :  { %v2364_v63 = vor.u32 1.1754944e-38, %v2363_v6  ;;  %vm2362_vm1 = vcmp.eq.f32.partialorder %v2361_v12, 8.507059e+37 }
0x1c48   :  { %v3339_v4 = vpop.eup %3338 }
0x1c49   :  { %v2353_v3 = vmul.f32 %v3339_v4, %v2351_v56  ;;  %v3341_v16 = vpop.eup %3340  ;;  %vm2358_vm12 = vweird.f32 %v3339_v4 }
0x1c4a   :  { %v2395_v34 = vadd.f32 1.0, %v3341_v16  ;;  %vm2359_vm0 = vmor %vm2357_vm15, %vm2358_vm12 }
0x1c4b   :  { %v2354_v31 = vsub.f32 1.0, %v2353_v3 }
0x1c4c   :  { %3342 = vrcp.f32 %v2395_v34  ;;  %v2407_v23 = vand.u32 2147483648, %v2395_v34  ;;  %vm2401_vm11 = vweird.f32 %v2395_v34  ;;  %v2405_v42 = vand.u32 2147483647, %v2395_v34 }
0x1c4d   :  { %v2355_v26 = vmul.f32 %v3339_v4, %v2354_v31 }
0x1c4e   :  { %v2408_v44 = vor.u32 1.1754944e-38, %v2407_v23  ;;  %vm2406_vm3 = vcmp.eq.f32.partialorder %v2405_v42, 8.507059e+37 }
0x1c4f   :  { %v2356_v2 = vadd.f32 %v3339_v4, %v2355_v26 }
0x1c51   :  { %v2360_v15 = vsel %vm2359_vm0, %v3339_v4, %v2356_v2 }
0x1c52   :  { %v4588_v47 = vsel %vm2362_vm1, %v2364_v63, %v2360_v15  ;;  %v3343_v43 = vpop.eup %3342 }
0x1c53   :  { %v2397_v19 = vmul.f32 %v3343_v43, %v2395_v34  ;;  %vm2402_vm10 = vweird.f32 %v3343_v43  ;;  %v2378_v0 = vsub.f32 1.0, %v4588_v47 }
0x1c54   :  { %vm2403_vm2 = vmor %vm2401_vm11, %vm2402_vm10 }
0x1c55   :  { %v2398_v27 = vsub.f32 1.0, %v2397_v19 }
0x1c57   :  { %v2399_v9 = vmul.f32 %v3343_v43, %v2398_v27 }
0x1c59   :  { %v2400_v7 = vadd.f32 %v3343_v43, %v2399_v9 }
0x1c5b   :  { %v2404_v59 = vsel %vm2403_vm2, %v3343_v43, %v2400_v7 }
0x1c5c   :  { %v2409_v38 = vsel %vm2406_vm3, %v2408_v44, %v2404_v59 }
0x1c8f   :  { %v2369_v45 = vpop.permute.xlu2 %2368 }
0x1c90   :  { %v2371_v24 = vmul.f32 %v2369_v45, %v4588_v47 }
0x1c92   :  { %2373 = vrot.lane.b32.xlu1 %v2371_v24, %s3627_s3 }
0x1ca9   :  { %v2435_v48 = vpop.permute.xlu1 %2434 }
0x1caa   :  { %v2437_v28 = vmul.f32 %v2435_v48, %v2409_v38 }
0x1cac   :  { %2439 = vrot.lane.b32.xlu0 %v2437_v28, %s3627_s3 }
0x1cb4   :  { %2450 = vrot.lane.b32.xlu0 %v2302_v36, %s3628_s4 }
0x1d04   :  { %v2374_v61 = vpop.permute.xlu1 %2373 }
0x1d05   :  { %v2376_v22 = vadd.f32 %v2374_v61, %v4418_v55 }
0x1d07   :  { %3344 = vtanh.f32 %v2376_v22 }
0x1d0d   :  { %v3345_v20 = vpop.eup %3344 }
0x1d0e   :  { %2380 = vrot.lane.b32.xlu1 %v3345_v20, %s3628_s4 }
0x1d1e   :  { %v2440_v13 = vpop.permute.xlu0 %2439 }
0x1d1f   :  { %v2442_v25 = vadd.f32 %v2440_v13, %v4415_v18 }
0x1d21   :  { %3346 = vtanh.f32 %v2442_v25 }
0x1d22   :  { %3348 = vpow2.f32 %v3110_v40 }
0x1d26   :  { %v2451_v58 = vpop.permute.xlu0 %2450 }
0x1d27   :  { %v3347_v51 = vpop.eup %3346 }
0x1d28   :  { %2446 = vrot.lane.b32.xlu2 %v3347_v51, %s3628_s4  ;;  %v3349_v14 = vpop.eup %3348 }
0x1d29   :  { %v2418_v1 = vadd.f32 1.0, %v3349_v14 }
0x1d2b   :  { %3350 = vrcp.f32 %v2418_v1  ;;  %v2430_v10 = vand.u32 2147483648, %v2418_v1  ;;  %vm2424_vm5 = vweird.f32 %v2418_v1  ;;  %v2428_v57 = vand.u32 2147483647, %v2418_v1 }
0x1d2d   :  { %v2431_v39 = vor.u32 1.1754944e-38, %v2430_v10  ;;  %vm2429_vm7 = vcmp.eq.f32.partialorder %v2428_v57, 8.507059e+37 }
0x1d30   :  { %2384 = vrot.lane.b32.xlu2 %v4573_v30, %s3629_s13 }
0x1d31   :  { %v3351_v46 = vpop.eup %3350 }
0x1d32   :  { %v2420_v29 = vmul.f32 %v3351_v46, %v2418_v1  ;;  %vm2425_vm4 = vweird.f32 %v3351_v46 }
0x1d33   :  { %vm2426_vm6 = vmor %vm2424_vm5, %vm2425_vm4 }
0x1d34   :  { %v2421_v33 = vsub.f32 1.0, %v2420_v29 }
0x1d36   :  { %v2422_v50 = vmul.f32 %v3351_v46, %v2421_v33 }
0x1d38   :  { %v2423_v60 = vadd.f32 %v3351_v46, %v2422_v50 }
0x1d3a   :  { %v2427_v36 = vsel %vm2426_vm6, %v3351_v46, %v2423_v60 }
0x1d3b   :  { %v2432_v30 = vsel %vm2429_vm7, %v2431_v39, %v2427_v36 }
0x1d3c   :  { %v2444_v8 = vsub.f32 1.0, %v2432_v30  ;;  %v2453_v52 = vmul.f32 %v2451_v58, %v2432_v30 }
0x1d80   :  { %v2381_v56 = vpop.permute.xlu1 %2380 }
0x1d81   :  { %v2383_v4 = vmul.f32 %v2381_v56, %v2378_v0 }
0x1d82   :  { %v2447_v37 = vpop.permute.xlu2 %2446 }
0x1d83   :  { %v2449_v11 = vmul.f32 %v2447_v37, %v2444_v8 }
0x1d85   :  { %v2454_v53 = vadd.f32 %v2453_v52, %v2449_v11 }
0x1d87   :  { %v2460_v21 = vrot.slane %v2454_v53, 6 }
0x1d89   :  { %2461 = vrot.lane.b32.xlu1 %v2460_v21, %s3629_s13 }
0x1d8a   :  { %v2385_v62 = vpop.permute.xlu2 %2384 }
0x1d8b   :  { %v2387_v32 = vmul.f32 %v2385_v62, %v4588_v47 }
0x1d8d   :  { %v2388_v3 = vadd.f32 %v2387_v32, %v2383_v4 }
0x1d8f   :  { %2456 = vrot.lane.b32.xlu0 %v2388_v3, %s3628_s4 }
0x1dfb   :  { %v2462_v31 = vpop.permute.xlu1 %2461 }
0x1e01   :  { %v2457_v26 = vpop.permute.xlu0 %2456 }
0x1e02   :  { %v4606_v16 = vsel %vm388_vm13, %v2457_v26, %v2462_v31 }
0x1e03   :  { %3111 = vmatmul.msk.f32.vlgmr.msrb.gmra.mxu2 %vm233_vm14, %v4606_v16  ;;  %3112 = vmatmul.msk.f32.vlgmr.msrb.gmra.mxu3 %vm233_vm14, %v4606_v16  ;;  %v2614_v14 = vrot.slane %v4606_v16, 4  ;;  %v2547_v53 = vrot.slane %v4606_v16, 6 }
0x1e86   :  { %v2485_v2 = vpop.f32.mrf.mxu2  ;;  %v2505_v34 = vpop.f32.mrf.mxu3 }
0x1e87   :  { %v2486_v6 = vadd.f32 %v2485_v2, %v4386_v54  ;;  %v4614_v12 = vadd.f32 %v2505_v34, %v4394_v35 }
0x1e89   :  { %v2509_v15 = vrot.slane %v2486_v6, 6  ;;  %v2576_v63 = vrot.slane %v4614_v12, 4  ;;  %v2553_v45 = vrot.slane %v2486_v6, 4 }
0x1e8b   :  { %2598 = vrot.lane.b32.xlu2 %v2576_v63, %s3627_s3  ;;  %2531 = vrot.lane.b32.xlu0 %v2509_v15, %s3627_s3  ;;  %v2555_v47 = vadd.f32 %v2553_v45, %v4413_v17  ;;  %v2511_v27 = vadd.f32 %v2509_v15, %v4418_v55  ;;  %v2578_v21 = vadd.f32 %v2576_v63, %v4415_v18 }
0x1e8d   :  { %v3114_v24 = vmul.f32 -1.442695, %v2555_v47  ;;  %v3113_v7 = vmul.f32 -1.442695, %v2511_v27  ;;  %v3115_v56 = vmul.f32 -1.442695, %v2578_v21 }
0x1e8f   :  { %3352 = vpow2.f32 %v3114_v24 }
0x1e95   :  { %v3353_v43 = vpop.eup %3352 }
0x1e96   :  { %v2559_v19 = vadd.f32 1.0, %v3353_v43 }
0x1e98   :  { %3354 = vrcp.f32 %v2559_v19  ;;  %v2571_v28 = vand.u32 2147483648, %v2559_v19  ;;  %vm2565_vm12 = vweird.f32 %v2559_v19  ;;  %v2569_v61 = vand.u32 2147483647, %v2559_v19 }
0x1e99   :  { %3356 = vpow2.f32 %v3113_v7 }
0x1e9a   :  { %v2572_v20 = vor.u32 1.1754944e-38, %v2571_v28  ;;  %vm2570_vm0 = vcmp.eq.f32.partialorder %v2569_v61, 8.507059e+37 }
0x1e9e   :  { %v3355_v9 = vpop.eup %3354 }
0x1e9f   :  { %v2561_v23 = vmul.f32 %v3355_v9, %v2559_v19  ;;  %v3357_v59 = vpop.eup %3356  ;;  %vm2566_vm8 = vweird.f32 %v3355_v9 }
0x1ea0   :  { %v2515_v48 = vadd.f32 1.0, %v3357_v59  ;;  %vm2567_vm15 = vmor %vm2565_vm12, %vm2566_vm8 }
0x1ea1   :  { %v2562_v42 = vsub.f32 1.0, %v2561_v23 }
0x1ea2   :  { %3358 = vrcp.f32 %v2515_v48  ;;  %v2527_v33 = vand.u32 2147483648, %v2515_v48  ;;  %vm2521_vm10 = vweird.f32 %v2515_v48  ;;  %v2525_v50 = vand.u32 2147483647, %v2515_v48 }
0x1ea3   :  { %v2563_v44 = vmul.f32 %v3355_v9, %v2562_v42 }
0x1ea4   :  { %v2528_v10 = vor.u32 1.1754944e-38, %v2527_v33  ;;  %vm2526_vm2 = vcmp.eq.f32.partialorder %v2525_v50, 8.507059e+37 }
0x1ea5   :  { %v2564_v38 = vadd.f32 %v3355_v9, %v2563_v44 }
0x1ea7   :  { %v2568_v22 = vsel %vm2567_vm15, %v3355_v9, %v2564_v38 }
0x1ea8   :  { %v2573_v25 = vsel %vm2570_vm0, %v2572_v20, %v2568_v22  ;;  %v3359_v41 = vpop.eup %3358 }
0x1ea9   :  { %v2517_v40 = vmul.f32 %v3359_v41, %v2515_v48  ;;  %vm2522_vm1 = vweird.f32 %v3359_v41 }
0x1eaa   :  { %vm2523_vm11 = vmor %vm2521_vm10, %vm2522_vm1 }
0x1eab   :  { %v2518_v1 = vsub.f32 1.0, %v2517_v40 }
0x1ead   :  { %v2519_v46 = vmul.f32 %v3359_v41, %v2518_v1 }
0x1eaf   :  { %v2520_v29 = vadd.f32 %v3359_v41, %v2519_v46 }
0x1eb1   :  { %v2524_v60 = vsel %vm2523_vm11, %v3359_v41, %v2520_v29 }
0x1eb2   :  { %v2529_v36 = vsel %vm2526_vm2, %v2528_v10, %v2524_v60 }
0x1eb3   :  { %v2541_v9 = vsub.f32 1.0, %v2529_v36 }
0x1ee5   :  { %v2599_v13 = vpop.permute.xlu2 %2598 }
0x1ee6   :  { %v2601_v51 = vmul.f32 %v2599_v13, %v2573_v25 }
0x1ee8   :  { %2603 = vrot.lane.b32.xlu1 %v2601_v51, %s3627_s3 }
0x1ef0   :  { %2615 = vrot.lane.b32.xlu1 %v2614_v14, %s3628_s4 }
0x1efd   :  { %v2532_v57 = vpop.permute.xlu0 %2531 }
0x1efe   :  { %v2534_v39 = vmul.f32 %v2532_v57, %v2529_v36 }
0x1f00   :  { %2536 = vrot.lane.b32.xlu2 %v2534_v39, %s3627_s3 }
0x1f5a   :  { %v2604_v30 = vpop.permute.xlu1 %2603  ;;  %v2537_v58 = vpop.permute.xlu2 %2536 }
0x1f5b   :  { %v2606_v8 = vadd.f32 %v2604_v30, %v4415_v18  ;;  %v2539_v37 = vadd.f32 %v2537_v58, %v4418_v55 }
0x1f5d   :  { %3360 = vtanh.f32 %v2606_v8 }
0x1f5e   :  { %3362 = vtanh.f32 %v2539_v37 }
0x1f5f   :  { %3364 = vpow2.f32 %v3115_v56 }
0x1f62   :  { %v2616_v15 = vpop.permute.xlu1 %2615 }
0x1f63   :  { %v3361_v52 = vpop.eup %3360 }
0x1f64   :  { %v3363_v11 = vpop.eup %3362  ;;  %2610 = vrot.lane.b32.xlu0 %v3361_v52, %s3628_s4 }
0x1f65   :  { %2543 = vrot.lane.b32.xlu2 %v3363_v11, %s3628_s4  ;;  %v3365_v0 = vpop.eup %3364 }
0x1f66   :  { %v2582_v62 = vadd.f32 1.0, %v3365_v0 }
0x1f68   :  { %3366 = vrcp.f32 %v2582_v62  ;;  %v2594_v2 = vand.u32 2147483648, %v2582_v62  ;;  %vm2588_vm4 = vweird.f32 %v2582_v62  ;;  %v2592_v16 = vand.u32 2147483647, %v2582_v62 }
0x1f6a   :  { %v2595_v6 = vor.u32 1.1754944e-38, %v2594_v2  ;;  %vm2593_vm6 = vcmp.eq.f32.partialorder %v2592_v16, 8.507059e+37 }
0x1f6c   :  { %2548 = vrot.lane.b32.xlu0 %v2547_v53, %s3629_s13 }
0x1f6e   :  { %v3367_v4 = vpop.eup %3366 }
0x1f6f   :  { %v2584_v32 = vmul.f32 %v3367_v4, %v2582_v62  ;;  %vm2589_vm3 = vweird.f32 %v3367_v4 }
0x1f70   :  { %vm2590_vm5 = vmor %vm2588_vm4, %vm2589_vm3 }
0x1f71   :  { %v2585_v3 = vsub.f32 1.0, %v2584_v32 }
0x1f73   :  { %v2586_v31 = vmul.f32 %v3367_v4, %v2585_v3 }
0x1f75   :  { %v2587_v26 = vadd.f32 %v3367_v4, %v2586_v31 }
0x1f77   :  { %v2591_v34 = vsel %vm2590_vm5, %v3367_v4, %v2587_v26 }
0x1f78   :  { %v2596_v12 = vsel %vm2593_vm6, %v2595_v6, %v2591_v34 }
0x1f79   :  { %v2608_v63 = vsub.f32 1.0, %v2596_v12  ;;  %v2618_v47 = vmul.f32 %v2616_v15, %v2596_v12 }
0x1fbf   :  { %v2544_v27 = vpop.permute.xlu2 %2543 }
0x1fc0   :  { %v2546_v23 = vmul.f32 %v2544_v27, %v2541_v9 }
0x1fd6   :  { %v2611_v45 = vpop.permute.xlu0 %2610 }
0x1fd7   :  { %v2613_v24 = vmul.f32 %v2611_v45, %v2608_v63 }
0x1fd9   :  { %v2619_v43 = vadd.f32 %v2618_v47, %v2613_v24 }
0x1fdb   :  { %v2625_v19 = vrot.slane %v2619_v43, 2 }
0x1fdd   :  { %2626 = vrot.lane.b32.xlu2 %v2625_v19, %s3629_s13 }
0x1fde   :  { %v2549_v7 = vpop.permute.xlu0 %2548 }
0x1fdf   :  { %v2551_v42 = vmul.f32 %v2549_v7, %v2529_v36 }
0x1fe1   :  { %v2552_v59 = vadd.f32 %v2551_v42, %v2546_v23 }
0x1fe3   :  { %2621 = vrot.lane.b32.xlu1 %v2552_v59, %s3628_s4 }
0x2037   :  { %v2627_v44 = vpop.permute.xlu2 %2626 }
0x2055   :  { %v2622_v48 = vpop.permute.xlu1 %2621 }
0x2056   :  { %v4639_v38 = vsel %vm388_vm13, %v2622_v48, %v2627_v44 }
0x2057   :  { %v2631_v28 = vrot.slane %v4639_v38, 2  ;;  %v2713_v45 = vrot.slane %v4639_v38, 6 }
0x2059   :  { %3116 = vmatmul.msk.f32.vlgmr.msra.gmra.mxu0 %vm233_vm14, %v2631_v28  ;;  %3117 = vmatmul.msk.f32.vlgmr.msra.gmra.mxu1 %vm233_vm14, %v2631_v28 }
0x20d6   :  { %v2651_v61 = vpop.f32.mrf.mxu0  ;;  %v2671_v22 = vpop.f32.mrf.mxu1 }
0x20d7   :  { %v2652_v20 = vadd.f32 %v2651_v61, %v4386_v54  ;;  %v4646_v13 = vadd.f32 %v2671_v22, %v4394_v35 }
0x20d9   :  { %v2675_v25 = vrot.slane %v2652_v20, 4  ;;  %v2742_v51 = vrot.slane %v4646_v13, 6  ;;  %v2719_v41 = vrot.slane %v2652_v20, 6 }
0x20db   :  { %2764 = vrot.lane.b32.xlu0 %v2742_v51, %s3627_s3  ;;  %2697 = vrot.lane.b32.xlu1 %v2675_v25, %s3627_s3  ;;  %v2677_v40 = vadd.f32 %v2675_v25, %v4418_v55  ;;  %v2721_v14 = vadd.f32 %v2719_v41, %v4413_v17  ;;  %v2744_v19 = vadd.f32 %v2742_v51, %v4415_v18 }
0x20dd   :  { %v3118_v1 = vmul.f32 -1.442695, %v2677_v40  ;;  %v3119_v46 = vmul.f32 -1.442695, %v2721_v14  ;;  %v3120_v27 = vmul.f32 -1.442695, %v2744_v19 }
0x20df   :  { %3368 = vpow2.f32 %v3118_v1 }
0x20e0   :  { %3370 = vpow2.f32 %v3119_v46 }
0x20e5   :  { %v3369_v29 = vpop.eup %3368 }
0x20e6   :  { %v3371_v33 = vpop.eup %3370  ;;  %v2681_v50 = vadd.f32 1.0, %v3369_v29 }
0x20e7   :  { %v2725_v60 = vadd.f32 1.0, %v3371_v33 }
0x20e8   :  { %3372 = vrcp.f32 %v2681_v50  ;;  %vm2687_vm12 = vweird.f32 %v2681_v50  ;;  %v2693_v21 = vand.u32 2147483648, %v2681_v50  ;;  %v2691_v0 = vand.u32 2147483647, %v2681_v50 }
0x20e9   :  { %3374 = vrcp.f32 %v2725_v60  ;;  %v2737_v53 = vand.u32 2147483648, %v2725_v60  ;;  %vm2731_vm15 = vweird.f32 %v2725_v60  ;;  %v2735_v56 = vand.u32 2147483647, %v2725_v60 }
0x20ea   :  { %v2694_v3 = vor.u32 1.1754944e-38, %v2693_v21  ;;  %vm2692_vm11 = vcmp.eq.f32.partialorder %v2691_v0, 8.507059e+37 }
0x20eb   :  { %v2738_v32 = vor.u32 1.1754944e-38, %v2737_v53  ;;  %vm2736_vm10 = vcmp.eq.f32.partialorder %v2735_v56, 8.507059e+37 }
0x20ee   :  { %v3373_v10 = vpop.eup %3372 }
0x20ef   :  { %v3375_v57 = vpop.eup %3374  ;;  %v2683_v39 = vmul.f32 %v3373_v10, %v2681_v50  ;;  %vm2688_vm7 = vweird.f32 %v3373_v10 }
0x20f0   :  { %v2727_v36 = vmul.f32 %v3375_v57, %v2725_v60  ;;  %vm2732_vm8 = vweird.f32 %v3375_v57  ;;  %vm2689_vm0 = vmor %vm2687_vm12, %vm2688_vm7 }
0x20f1   :  { %v2684_v58 = vsub.f32 1.0, %v2683_v39  ;;  %vm2733_vm1 = vmor %vm2731_vm15, %vm2732_vm8 }
0x20f2   :  { %v2728_v30 = vsub.f32 1.0, %v2727_v36 }
0x20f3   :  { %v2685_v37 = vmul.f32 %v3373_v10, %v2684_v58 }
0x20f4   :  { %v2729_v8 = vmul.f32 %v3375_v57, %v2728_v30 }
0x20f5   :  { %v2686_v11 = vadd.f32 %v3373_v10, %v2685_v37 }
0x20f6   :  { %v2730_v52 = vadd.f32 %v3375_v57, %v2729_v8 }
0x20f7   :  { %v2690_v4 = vsel %vm2689_vm0, %v3373_v10, %v2686_v11 }
0x20f8   :  { %v2734_v62 = vsel %vm2733_vm1, %v3375_v57, %v2730_v52  ;;  %v2695_v16 = vsel %vm2692_vm11, %v2694_v3, %v2690_v4 }
0x20f9   :  { %v2739_v26 = vsel %vm2736_vm10, %v2738_v32, %v2734_v62  ;;  %v2707_v29 = vsub.f32 1.0, %v2695_v16 }
0x214d   :  { %v2765_v31 = vpop.permute.xlu0 %2764  ;;  %v2698_v2 = vpop.permute.xlu1 %2697 }
0x214e   :  { %v2767_v34 = vmul.f32 %v2765_v31, %v2739_v26  ;;  %v2700_v6 = vmul.f32 %v2698_v2, %v2695_v16 }
0x2150   :  { %2769 = vrot.lane.b32.xlu2 %v2767_v34, %s3627_s3  ;;  %2702 = vrot.lane.b32.xlu0 %v2700_v6, %s3627_s3 }
0x2158   :  { %2780 = vrot.lane.b32.xlu2 %v4639_v38, %s3628_s4 }
0x21aa   :  { %v2770_v12 = vpop.permute.xlu2 %2769 }
0x21ab   :  { %v2772_v15 = vadd.f32 %v2770_v12, %v4415_v18 }
0x21ad   :  { %3376 = vtanh.f32 %v2772_v15 }
0x21b2   :  { %v2781_v13 = vpop.permute.xlu2 %2780 }
0x21b3   :  { %v3377_v63 = vpop.eup %3376 }
0x21b4   :  { %2776 = vrot.lane.b32.xlu1 %v3377_v63, %s3628_s4 }
0x21bc   :  { %2714 = vrot.lane.b32.xlu1 %v2713_v45, %s3629_s13 }
0x21c2   :  { %v2703_v47 = vpop.permute.xlu0 %2702 }
0x21c3   :  { %v2705_v24 = vadd.f32 %v2703_v47, %v4418_v55 }
0x21c5   :  { %3378 = vtanh.f32 %v2705_v24 }
0x21c6   :  { %3380 = vpow2.f32 %v3120_v27 }
0x21cb   :  { %v3379_v43 = vpop.eup %3378 }
0x21cc   :  { %2709 = vrot.lane.b32.xlu0 %v3379_v43, %s3628_s4  ;;  %v3381_v9 = vpop.eup %3380 }
0x21cd   :  { %v2748_v7 = vadd.f32 1.0, %v3381_v9 }
0x21cf   :  { %3382 = vrcp.f32 %v2748_v7  ;;  %v2760_v38 = vand.u32 2147483648, %v2748_v7  ;;  %vm2754_vm3 = vweird.f32 %v2748_v7  ;;  %v2758_v28 = vand.u32 2147483647, %v2748_v7 }
0x21d1   :  { %v2761_v22 = vor.u32 1.1754944e-38, %v2760_v38  ;;  %vm2759_vm5 = vcmp.eq.f32.partialorder %v2758_v28, 8.507059e+37 }
0x21d5   :  { %v3383_v23 = vpop.eup %3382 }
0x21d6   :  { %v2750_v42 = vmul.f32 %v3383_v23, %v2748_v7  ;;  %vm2755_vm2 = vweird.f32 %v3383_v23 }
0x21d7   :  { %vm2756_vm4 = vmor %vm2754_vm3, %vm2755_vm2 }
0x21d8   :  { %v2751_v59 = vsub.f32 1.0, %v2750_v42 }
0x21da   :  { %v2752_v44 = vmul.f32 %v3383_v23, %v2751_v59 }
0x21dc   :  { %v2753_v48 = vadd.f32 %v3383_v23, %v2752_v44 }
0x21de   :  { %v2757_v61 = vsel %vm2756_vm4, %v3383_v23, %v2753_v48  ;;  %v1526_v48 = vrot.slane %v4308_v49, 2  ;;  %vm3019_vm4 = vcmask 175106  }
0x21df   :  { %v2762_v20 = vsel %vm2759_vm5, %v2761_v22, %v2757_v61  ;;  %vm3020_vm5 = vmor %vm3019_vm4, %vm1531_vm9 }
0x21e0   :  { %v2774_v25 = vsub.f32 1.0, %v2762_v20  ;;  %v2783_v41 = vmul.f32 %v2781_v13, %v2762_v20 }
0x2226   :  { %v2777_v51 = vpop.permute.xlu1 %2776 }
0x2227   :  { %v2779_v40 = vmul.f32 %v2777_v51, %v2774_v25 }
0x2229   :  { %v2784_v14 = vadd.f32 %v2783_v41, %v2779_v40 }
0x222b   :  { %v2790_v1 = vrot.slane %v2784_v14, 6 }
0x222d   :  { %2791 = vrot.lane.b32.xlu0 %v2790_v1, %s3629_s13 }
0x222e   :  { %v2715_v46 = vpop.permute.xlu1 %2714 }
0x222f   :  { %v2717_v50 = vmul.f32 %v2715_v46, %v2695_v16 }
0x223e   :  { %v2710_v33 = vpop.permute.xlu0 %2709 }
0x223f   :  { %v2712_v60 = vmul.f32 %v2710_v33, %v2707_v29 }
0x2241   :  { %v2718_v10 = vadd.f32 %v2717_v50, %v2712_v60 }
0x2243   :  { %2786 = vrot.lane.b32.xlu2 %v2718_v10, %s3628_s4 }
0x229d   :  { %v2787_v57 = vpop.permute.xlu2 %2786 }
0x229f   :  { %v2792_v36 = vpop.permute.xlu0 %2791 }
0x22a0   :  { %v4671_v39 = vsel %vm388_vm13, %v2787_v57, %v2792_v36 }
0x22a1   :  { %v2796_v30 = vrot.slane %v4671_v39, 4  ;;  %v2878_v25 = vrot.slane %v4671_v39, 6 }
0x22a3   :  { %3121 = vmatmul.msk.f32.vlgmr.msra.gmra.mxu2 %vm233_vm14, %v2796_v30  ;;  %3122 = vmatmul.msk.f32.vlgmr.msra.gmra.mxu3 %vm233_vm14, %v2796_v30 }
0x2326   :  { %v2816_v58 = vpop.f32.mrf.mxu2  ;;  %v2836_v8 = vpop.f32.mrf.mxu3 }
0x2327   :  { %v2817_v37 = vadd.f32 %v2816_v58, %v4386_v54  ;;  %v4678_v52 = vadd.f32 %v2836_v8, %v4394_v35 }
0x2329   :  { %v2840_v11 = vrot.slane %v2817_v37, 2  ;;  %2925 = vrot.lane.b32.xlu1 %v4678_v52, %s3627_s3  ;;  %v2884_v62 = vadd.f32 %v2817_v37, %v4413_v17  ;;  %v2904_v49 = vadd.f32 %v4678_v52, %v4415_v18  ;;  %v2961_v52 = vld [vmem:[#allocation11 + $0x38] sm:$0xff] }
0x232a   :  { %3006 = vmatpush.msrb.mxu1 %v2961_v52 }
0x232b   :  { %2862 = vrot.lane.b32.xlu2 %v2840_v11, %s3627_s3  ;;  %v2842_v53 = vadd.f32 %v2840_v11, %v4418_v55  ;;  %v3124_v4 = vmul.f32 -1.442695, %v2884_v62  ;;  %v3125_v51 = vmul.f32 -1.442695, %v2904_v49  ;;  %v2960_v11 = vld [vmem:[#allocation11 + $0x30] sm:$0xff]  ;;  %v2955_v62 = vld [vmem:[#allocation11 + $0x8] sm:$0xff] }
0x232c   :  { %2986 = vmatpush.msrb.mxu0 %v2960_v11 }
0x232d   :  { %v3123_v21 = vmul.f32 -1.442695, %v2842_v53  ;;  %v2959_v53 = vld [vmem:[#allocation11 + $0x28] sm:$0xff] }
0x232e   :  { %3007 = vmatpush.msrb.mxu1 %v2959_v53 }
0x232f   :  { %3384 = vpow2.f32 %v3123_v21  ;;  %v2958_v21 = vld [vmem:[#allocation11 + $0x20] sm:$0xff] }
0x2330   :  { %2987 = vmatpush.msrb.mxu0 %v2958_v21 }
0x2335   :  { %v3385_v56 = vpop.eup %3384 }
0x2336   :  { %v2846_v0 = vadd.f32 1.0, %v3385_v56  ;;  %v2957_v56 = vld [vmem:[#allocation11 + $0x18] sm:$0xff] }
0x2337   :  { %3008 = vmatpush.msrb.mxu1 %v2957_v56 }
0x2338   :  { %3386 = vrcp.f32 %v2846_v0  ;;  %v2858_v16 = vand.u32 2147483648, %v2846_v0  ;;  %vm2852_vm6 = vweird.f32 %v2846_v0  ;;  %v2856_v34 = vand.u32 2147483647, %v2846_v0 }
0x2339   :  { %3388 = vpow2.f32 %v3124_v4  ;;  %v2954_v4 = vld [vmem:[#allocation11] sm:$0xff]  ;;  %3009 = vmatpush.msrb.mxu1 %v2955_v62 }
0x233a   :  { %v2859_v12 = vor.u32 1.1754944e-38, %v2858_v16  ;;  %vm2857_vm8 = vcmp.eq.f32.partialorder %v2856_v34, 8.507059e+37 }
0x233e   :  { %v3387_v54 = vpop.eup %3386 }
0x233f   :  { %v2848_v35 = vmul.f32 %v3387_v54, %v2846_v0  ;;  %v3389_v3 = vpop.eup %3388  ;;  %vm2853_vm14 = vweird.f32 %v3387_v54  ;;  %v2956_v0 = vld [vmem:[#allocation11 + $0x10] sm:$0xff] }
0x2340   :  { %v2888_v26 = vadd.f32 1.0, %v3389_v3  ;;  %vm2854_vm7 = vmor %vm2852_vm6, %vm2853_vm14  ;;  %2988 = vmatpush.msrb.mxu0 %v2956_v0 }
0x2341   :  { %v2849_v32 = vsub.f32 1.0, %v2848_v35 }
0x2342   :  { %3390 = vrcp.f32 %v2888_v26  ;;  %v2900_v27 = vand.u32 2147483648, %v2888_v26  ;;  %vm2894_vm15 = vweird.f32 %v2888_v26  ;;  %v2898_v9 = vand.u32 2147483647, %v2888_v26  ;;  %2989 = vmatpush.msrb.mxu0 %v2954_v4 }
0x2343   :  { %v2850_v31 = vmul.f32 %v3387_v54, %v2849_v32 }
0x2344   :  { %v2901_v23 = vor.u32 1.1754944e-38, %v2900_v27  ;;  %vm2899_vm1 = vcmp.eq.f32.partialorder %v2898_v9, 8.507059e+37 }
0x2345   :  { %v2851_v2 = vadd.f32 %v3387_v54, %v2850_v31 }
0x2347   :  { %v2855_v6 = vsel %vm2854_vm7, %v3387_v54, %v2851_v2 }
0x2348   :  { %v3391_v15 = vpop.eup %3390  ;;  %v4685_v63 = vsel %vm2857_vm8, %v2859_v12, %v2855_v6 }
0x2349   :  { %v2890_v47 = vmul.f32 %v3391_v15, %v2888_v26  ;;  %vm2895_vm12 = vweird.f32 %v3391_v15  ;;  %v2872_v32 = vsub.f32 1.0, %v4685_v63 }
0x234a   :  { %vm2896_vm0 = vmor %vm2894_vm15, %vm2895_vm12 }
0x234b   :  { %v2891_v24 = vsub.f32 1.0, %v2890_v47  ;;  %v2962_v47 = vld [vmem:[#allocation13] sm:$0x3] }
0x234d   :  { %v2892_v43 = vmul.f32 %v3391_v15, %v2891_v24  ;;  %v2965_v24 = vperm.slane %v2962_v47, 1 }
0x234f   :  { %v2893_v19 = vadd.f32 %v3391_v15, %v2892_v43 }
0x2351   :  { %v2897_v7 = vsel %vm2896_vm0, %v3391_v15, %v2893_v19 }
0x2352   :  { %v2902_v59 = vsel %vm2899_vm1, %v2901_v23, %v2897_v7 }
0x2385   :  { %v2863_v17 = vpop.permute.xlu2 %2862 }
0x2386   :  { %v2865_v45 = vmul.f32 %v2863_v17, %v4685_v63 }
0x2388   :  { %2867 = vrot.lane.b32.xlu1 %v2865_v45, %s3627_s3 }
0x239b   :  { %v2926_v42 = vpop.permute.xlu1 %2925 }
0x239c   :  { %v2928_v44 = vmul.f32 %v2926_v42, %v2902_v59 }
0x239e   :  { %2930 = vrot.lane.b32.xlu0 %v2928_v44, %s3627_s3 }
0x23a6   :  { %2941 = vrot.lane.b32.xlu0 %v2796_v30, %s3628_s4 }
0x23ae   :  { %1527 = vrot.lane.b32.xlu0 %v1526_v48, %s3629_s13 }
0x23fa   :  { %v2868_v38 = vpop.permute.xlu1 %2867 }
0x23fb   :  { %v2870_v28 = vadd.f32 %v2868_v38, %v4418_v55 }
0x23fd   :  { %3392 = vtanh.f32 %v2870_v28 }
0x2403   :  { %v3393_v61 = vpop.eup %3392 }
0x2404   :  { %2874 = vrot.lane.b32.xlu1 %v3393_v61, %s3628_s4 }
0x2410   :  { %v2931_v22 = vpop.permute.xlu0 %2930 }
0x2411   :  { %v2933_v20 = vadd.f32 %v2931_v22, %v4415_v18 }
0x2413   :  { %3394 = vtanh.f32 %v2933_v20 }
0x2414   :  { %3396 = vpow2.f32 %v3125_v51 }
0x2418   :  { %v2942_v18 = vpop.permute.xlu0 %2941 }
0x2419   :  { %v3395_v13 = vpop.eup %3394 }
0x241a   :  { %2937 = vrot.lane.b32.xlu2 %v3395_v13, %s3628_s4  ;;  %v3397_v55 = vpop.eup %3396 }
0x241b   :  { %v2908_v41 = vadd.f32 1.0, %v3397_v55 }
0x241d   :  { %3398 = vrcp.f32 %v2908_v41  ;;  %v2920_v33 = vand.u32 2147483648, %v2908_v41  ;;  %vm2914_vm11 = vweird.f32 %v2908_v41  ;;  %v2918_v50 = vand.u32 2147483647, %v2908_v41 }
0x241f   :  { %v2921_v10 = vor.u32 1.1754944e-38, %v2920_v33  ;;  %vm2919_vm3 = vcmp.eq.f32.partialorder %v2918_v50, 8.507059e+37 }
0x2420   :  { %v1528_v26 = vpop.permute.xlu0 %1527 }
0x2421   :  { %v1530_v16 = vadd.f32 %v1528_v26, %v4329_v5 }
0x2422   :  { %2879 = vrot.lane.b32.xlu2 %v2878_v25, %s3629_s13 }
0x2423   :  { %v3399_v40 = vpop.eup %3398 }
0x2424   :  { %v2910_v14 = vmul.f32 %v3399_v40, %v2908_v41  ;;  %vm2915_vm10 = vweird.f32 %v3399_v40 }
0x2425   :  { %vm2916_vm2 = vmor %vm2914_vm11, %vm2915_vm10 }
0x2426   :  { %v2911_v1 = vsub.f32 1.0, %v2910_v14 }
0x2428   :  { %v2912_v46 = vmul.f32 %v3399_v40, %v2911_v1 }
0x242a   :  { %v2913_v29 = vadd.f32 %v3399_v40, %v2912_v46 }
0x242c   :  { %v2917_v60 = vsel %vm2916_vm2, %v3399_v40, %v2913_v29 }
0x242d   :  { %v2922_v57 = vsel %vm2919_vm3, %v2921_v10, %v2917_v60 }
0x242e   :  { %v2935_v36 = vsub.f32 1.0, %v2922_v57  ;;  %v2944_v30 = vmul.f32 %v2942_v18, %v2922_v57 }
0x2474   :  { %v2938_v39 = vpop.permute.xlu2 %2937 }
0x2475   :  { %v2940_v58 = vmul.f32 %v2938_v39, %v2935_v36 }
0x2476   :  { %v2875_v35 = vpop.permute.xlu1 %2874 }
0x2477   :  { %v2945_v8 = vadd.f32 %v2944_v30, %v2940_v58  ;;  %v2877_v31 = vmul.f32 %v2875_v35, %v2872_v32 }
0x2479   :  { %v2948_v37 = vrot.slane %v2945_v8, 2 }
0x247b   :  { %2949 = vrot.lane.b32.xlu1 %v2948_v37, %s3629_s13 }
0x247c   :  { %v2880_v54 = vpop.permute.xlu2 %2879 }
0x247d   :  { %v2882_v3 = vmul.f32 %v2880_v54, %v4685_v63  ;;  %v2964_v63 = vperm.slane %v2962_v47, 0 }
0x247f   :  { %v2883_v2 = vadd.f32 %v2882_v3, %v2877_v31 }
0x2481   :  { %v2946_v34 = vadd.f32 %v2883_v2, %v1530_v16 }
0x24ed   :  { %v2950_v6 = vpop.permute.xlu1 %2949 }
0x24ee   :  { %v2952_v12 = vadd.f32 %v2950_v6, %v2946_v34 }
0x24f0   :  { %v2953_v15 = vmul.f32 0.25, %v2952_v12 }
0x24f2   :  { %v2969_v17 = vrot.slane %v2953_v15, 6 }
0x24f4   :  { %2970 = vrot.lane.b32.xlu2 %v2969_v17, %s3628_s4 }
0x254e   :  { %v2971_v45 = vpop.permute.xlu2 %2970 }
0x254f   :  { %3126 = vmatmul.msk.f32.vlgmr.msrb.gmra.mxu0 %vm388_vm13, %v2971_v45  ;;  %3127 = vmatmul.msk.f32.vlgmr.msrb.gmra.mxu1 %vm388_vm13, %v2971_v45 }
0x25cc   :  { %v2991_v43 = vpop.f32.mrf.mxu0  ;;  %v3011_v19 = vpop.f32.mrf.mxu1 }
0x25cd   :  { %v3012_v27 = vadd.f32 %v3011_v19, %v2965_v24  ;;  %v2992_v5 = vadd.f32 %v2991_v43, %v2964_v63 }
0x25cf   :  { %v3016_v9 = vrot.slane %v3012_v27, 6 }
0x25d1   :  { %v3017_v7 = vsel %vm1531_vm9, %v2992_v5, %v3016_v9 }
0x25d2   :  { %3021 = vst.msk [vmem:[#allocation14] sm:$0xf] %vm3020_vm5, %v3017_v7 }
0x25d3   :  { %3032 = dma.vmem_to_hbm [thread:$0]  %s3028_s9, 64, %s3030_s19, [#allocation4]  }
0x25d4   :  { %3613 = dma.done.wait [#allocation4], 64  }
0x25d5   :  { %3614 = vsyncadd [#allocation4], 4294967232 }
0x25d6   :  { %3037 = vsyncpa [#allocation3], 1 }
0x25d7   :  { %3038 = vsyncpa [#allocation6], 1 }
0x25d8   :  { %3039 = vsyncpa [#allocation9], 1 }
0x25d9   :  { %3040 = vsyncpa [#allocation12], 1 }
0x25da   :  { %3041 = vsyncpa [#allocation4], 1 }

</bundles_post_ra>
